<compile_context>
chip_gen: v6e
topology: v6e:2x2x1
jax: 0.10.0
libtpu: 0.0.40
codegen_flags: <defaults>
</compile_context>

<pallas_src>
import functools

import jax
import jax.numpy as jnp
from jax.experimental import pallas as pl
from jax.experimental.pallas import tpu as pltpu


# --------------------------------------------------------------------------
# Kernel
# --------------------------------------------------------------------------
def _grid_sample_kernel(fg_ref, img_ref, out_ref, *, H, W, use_roll):
    """Bilinear grid_sample for one (batch, output-tile) grid step.

    fg_ref : (1, 2, TQ)    f32 flow grid in [-1, 1]; row 0 = x (width), row 1 = y.
    img_ref: (1, C, HW_in) bf16 image slab (channels on sublanes, HW on lanes).
    out_ref: (1, C, TQ)    deformed output tile.
    """
    HW_in = img_ref.shape[2]
    tq = out_ref.shape[2]

    fg = fg_ref[0]                       # (2, TQ) f32, lane-dense
    x = fg[0:1, :]                       # (1, TQ)
    y = fg[1:2, :]                       # (1, TQ)

    # align_corners=True unnormalization.
    ix = (x + 1.0) * (0.5 * (W - 1))
    iy = (y + 1.0) * (0.5 * (H - 1))
    x0f = jnp.floor(ix)
    y0f = jnp.floor(iy)
    wx1 = ix - x0f
    wx0 = 1.0 - wx1
    wy1 = iy - y0f
    wy0 = 1.0 - wy1
    x0 = x0f.astype(jnp.int32)
    x1 = x0 + 1
    y0 = y0f.astype(jnp.int32)
    y1 = y0 + 1

    img = img_ref[0]                                                # (C, HW_in) bf16
    row_ids = jax.lax.broadcasted_iota(jnp.int32, (HW_in, tq), 0)   # (HW_in, TQ)

    def masked_w(xc, yc, w):
        # padding_mode='zeros': out-of-range corners contribute nothing.
        # NOTE: aliased out-of-range gathers are zeroed here; a NaN/Inf pixel
        # at the aliased location would leak (0*NaN) — images assumed finite.
        valid = (xc >= 0) & (xc <= W - 1) & (yc >= 0) & (yc <= H - 1)   # (1, TQ)
        return jnp.where(valid, w, 0.0)

    def gather(onehot):
        # Exact one-hot gather on the MXU (bf16 x bf16 -> f32 accumulate);
        # the bilinear weight & validity are applied after the matmul.
        return jnp.dot(img, onehot.astype(img.dtype),
                       preferred_element_type=jnp.float32)           # (C, TQ)

    if use_roll:
        # Build ONE one-hot (corner (x0, y0)); derive the other three corners
        # with XLU sublane rotations: flat(x0+dx, y0+dy) = flat(x0, y0) + dy*W + dx.
        # Whenever any corner is valid, x0 >= -1 and y0 >= -1, so wrapping the
        # base flat index into [0, HW) only ever needs "+HW when negative";
        # roll's cyclic wrap-around then only lands on invalid corners, which
        # the post-matmul validity mask zeroes.
        flat00 = y0 * W + x0                                         # (1, TQ)
        flat00 = jnp.where(flat00 < 0, flat00 + HW_in, flat00)
        oh00 = (row_ids == flat00).astype(jnp.float32)               # (HW_in, TQ)
        # TODO(synk): roll directly in bf16 once packed-sublane rotates are
        #   guaranteed on every target generation; f32 rolls are always safe.
        oh10 = pltpu.roll(oh00, shift=1, axis=0)        # corner (x1, y0)
        oh01 = pltpu.roll(oh00, shift=W, axis=0)        # corner (x0, y1)
        oh11 = pltpu.roll(oh00, shift=W + 1, axis=0)    # corner (x1, y1)
        out = (gather(oh00) * masked_w(x0, y0, wx0 * wy0) +
               gather(oh10) * masked_w(x1, y0, wx1 * wy0) +
               gather(oh01) * masked_w(x0, y1, wx0 * wy1) +
               gather(oh11) * masked_w(x1, y1, wx1 * wy1))
    else:
        # Fallback (HW not sublane-aligned): per-corner one-hot build.
        def corner(xc, yc, w):
            flat = yc * W + xc
            onehot = (row_ids == flat).astype(jnp.float32)
            return gather(onehot) * masked_w(xc, yc, w)
        out = (corner(x0, y0, wx0 * wy0) +
               corner(x1, y0, wx1 * wy0) +
               corner(x0, y1, wx0 * wy1) +
               corner(x1, y1, wx1 * wy1))

    out_ref[0] = out.astype(out_ref.dtype)


# --------------------------------------------------------------------------
# Generation-aware VMEM budgeting + tile selection
# --------------------------------------------------------------------------
def _vmem_limit_bytes():
    """~3/4 of per-core VMEM (headroom for compiler scratch / double buffers).

    Falls back to 48 MiB (fits v7x's 64 MiB per-TC VMEM) if the hardware
    query is unavailable; clamps to a sane [32 MiB, 96 MiB] range.
    """
    cap = None
    try:
        info = pltpu.get_tpu_info()
        for name in ("vmem_capacity_bytes", "vmem_bytes"):
            cap = getattr(info, name, None)
            if cap:
                break
    except Exception:
        cap = None
    limit = int(cap) * 3 // 4 if cap else 48 * 1024 * 1024
    return max(32 * 1024 * 1024, min(limit, 96 * 1024 * 1024))


def _pick_tile_q(hw, c, batch, vmem_limit,
                 gather_bytes=2, plane_bytes=4, live_planes=4):
    """Pick the output-spatial tile TQ (queries per grid step).

    VMEM model per grid step: a double-buffered bf16 (C, HW) image slab plus
    ~`live_planes` f32/int32 (HW, TQ) temporaries (iota, one-hot, rolls,
    bf16 casts), kept under ~half the per-generation limit so pipelining
    headroom remains on every chip (v5e/v6e 128 MiB, v7x 64 MiB).
    """
    if hw % 128 != 0:
        return hw                                   # single full-extent tile
    budget = vmem_limit // 2 - 2 * c * hw * gather_bytes
    per_q = live_planes * plane_bytes * hw          # temp bytes per query column
    tq = 128                                        # floor (TODO: DMA gather path)
    for cand in range(128, hw + 1, 128):
        if hw % cand == 0 and per_q * cand <= budget:
            tq = cand
    # v7x shards the 'parallel' grid axes over 2 TensorCores: make sure a
    # tiny single-step grid (B == 1, one tile) still exposes >= 2 grid steps.
    if batch == 1 and tq == hw and hw % 256 == 0:
        tq = hw // 2
    return tq


# --------------------------------------------------------------------------
# Wrapper
# --------------------------------------------------------------------------
def spatial_transformer(img, matrix, matrix_type="grid", *, tile_q=None):
    """Forward pass of SpatialTransformer (2-D, matrix_type='grid').

    img    : (B, C, H, W)
    matrix : (B, H, W, 2)  'grid' matrix: positions in image-dimension units
    returns (deformed (B, C, H, W), {'flow_grid': (B, H, W, 2)})
    """
    assert matrix_type == "grid", "only matrix_type='grid' is implemented"
    B, C, H, W = img.shape
    assert matrix.shape == (B, H, W, 2)
    HW = H * W

    # convert_grid, module-literal convention: flow_grid[..., k] =
    # matrix[..., k] * 2 / (H, W)[k] - 1 (channel 0 scaled by H, channel 1 by
    # W), then channel 0 is consumed as grid_sample's x (width) and channel 1
    # as y (height) — exactly what the reference PyTorch module does.
    dims = jnp.array([H, W], dtype=jnp.float32)
    flow_grid = matrix.astype(jnp.float32) * (2.0 / dims) - 1.0        # (B,H,W,2)

    # bf16 gather operands: MXU DEFAULT precision truncates f32 to bf16 anyway,
    # so this halves DMA / resident slab / MXU feed at unchanged numerics.
    # Accumulation and bilinear weights stay f32.
    img_flat = img.reshape(B, C, HW).astype(jnp.bfloat16)              # (B,C,HW)
    fg_flat = jnp.transpose(flow_grid.reshape(B, HW, 2), (0, 2, 1))    # (B,2,HW)

    vmem_limit = _vmem_limit_bytes()
    if tile_q is None:
        tile_q = _pick_tile_q(HW, C, B, vmem_limit)
    assert HW % tile_q == 0 and (tile_q % 128 == 0 or tile_q == HW)
    n_q = HW // tile_q

    use_roll = (HW % 8 == 0) and (W + 1 < HW)

    def run(single_buffer_img, roll):
        kernel = functools.partial(_grid_sample_kernel, H=H, W=W, use_roll=roll)
        if single_buffer_img:
            # Image block index never changes across the q axis: single-buffer
            # it to save a full (C, HW) slab of VMEM.
            img_spec = pl.BlockSpec((1, C, HW), lambda b, q: (b, 0, 0),
                                    pipeline_mode=pl.Buffered(1))
        else:
            img_spec = pl.BlockSpec((1, C, HW), lambda b, q: (b, 0, 0))
        return pl.pallas_call(
            kernel,
            out_shape=jax.ShapeDtypeStruct((B, C, HW), img.dtype),
            grid_spec=pltpu.PrefetchScalarGridSpec(
                num_scalar_prefetch=0,
                grid=(B, n_q),
                in_specs=[
                    pl.BlockSpec((1, 2, tile_q), lambda b, q: (b, 0, q)),
                    img_spec,
                ],
                out_specs=pl.BlockSpec((1, C, tile_q), lambda b, q: (b, 0, q)),
            ),
            compiler_params=pltpu.CompilerParams(
                dimension_semantics=("parallel", "parallel"),
                vmem_limit_bytes=vmem_limit,
            ),
        )(fg_flat, img_flat)

    # Capability ladder (lowering-time fallback only; numeric bugs are NOT
    # masked — the last error re-raises and results are checked by the test):
    # prefer single-buffered image slab + roll-derived one-hots, degrade if
    # the installed jax/libtpu rejects pipeline_mode or the sublane roll.
    configs = [(True, use_roll), (False, use_roll)]
    if use_roll:
        configs.append((False, False))
    out_flat, err = None, None
    for single_buf, roll in configs:
        try:
            out_flat = run(single_buf, roll)
            break
        except Exception as e:   # compile-capability fallback
            err = e
    if out_flat is None:
        raise err

    deformed = out_flat.reshape(B, C, H, W)
    return deformed, {"flow_grid": flow_grid}


# ---------------- pure-JAX reference (for verification only) ----------------
def _ref_forward(img, matrix):
    B, C, H, W = img.shape
    dims = jnp.array([H, W], dtype=jnp.float32)
    fg = matrix.astype(jnp.float32) * (2.0 / dims) - 1.0               # (B,H,W,2)

    x = fg[..., 0]
    y = fg[..., 1]
    ix = (x + 1.0) * (0.5 * (W - 1))
    iy = (y + 1.0) * (0.5 * (H - 1))
    x0 = jnp.floor(ix)
    y0 = jnp.floor(iy)
    wx1 = ix - x0
    wy1 = iy - y0

    img_flat = img.reshape(B, C, H * W)

    def gather(xc, yc, w):
        valid = (xc >= 0) & (xc <= W - 1) & (yc >= 0) & (yc <= H - 1)
        xi = jnp.clip(xc, 0, W - 1).astype(jnp.int32)
        yi = jnp.clip(yc, 0, H - 1).astype(jnp.int32)
        idx = (yi * W + xi).reshape(B, 1, H * W)
        vals = jnp.take_along_axis(img_flat, idx, axis=2).reshape(B, C, H, W)
        wm = (w * valid.astype(jnp.float32))[:, None, :, :]
        return vals * wm

    out = (gather(x0, y0, (1.0 - wx1) * (1.0 - wy1)) +
           gather(x0 + 1, y0, wx1 * (1.0 - wy1)) +
           gather(x0, y0 + 1, (1.0 - wx1) * wy1) +
           gather(x0 + 1, y0 + 1, wx1 * wy1))
    return out, fg


if __name__ == "__main__":
    key = jax.random.PRNGKey(0)
    k1, k2, k3, k4, k5, k6 = jax.random.split(key, 6)

    def _make_case(ki, kg, shape):
        B_, C_, H_, W_ = shape
        im = jax.random.normal(ki, (B_, C_, H_, W_), dtype=jnp.float32)
        # Pre-round to bf16-representable values: the gather contraction runs
        # in bf16 (== MXU DEFAULT truncation), one-hots are exact, so the
        # comparison against the f32 reference is exact up to f32 weight math.
        im = im.astype(jnp.bfloat16).astype(jnp.float32)
        d = jnp.array([H_, W_], dtype=jnp.float32)
        gr = jax.random.uniform(kg, (B_, H_, W_, 2), dtype=jnp.float32,
                                minval=-0.15, maxval=1.15) * d   # incl. out-of-range
        return im, gr

    # Case 1: B=2, C=4, 16x16 (single output tile per batch; grid=(2,1)).
    img, grid = _make_case(k1, k2, (2, 4, 16, 16))
    deformed, aux = spatial_transformer(img, grid, matrix_type="grid")
    deformed = jax.block_until_ready(deformed)
    ref_out, ref_fg = _ref_forward(img, grid)
    assert jnp.allclose(deformed, ref_out, atol=1e-5, rtol=1e-5), "deformed mismatch (1)"
    assert jnp.allclose(aux["flow_grid"], ref_fg, atol=1e-6, rtol=1e-6), "flow_grid mismatch (1)"

    # Case 2: non-square, odd C, explicit tile_q=128 (multi-tile grid, W=32 rolls).
    img2, grid2 = _make_case(k3, k4, (1, 3, 8, 32))
    deformed2, aux2 = spatial_transformer(img2, grid2, matrix_type="grid", tile_q=128)
    deformed2 = jax.block_until_ready(deformed2)
    ref_out2, ref_fg2 = _ref_forward(img2, grid2)
    assert jnp.allclose(deformed2, ref_out2, atol=1e-5, rtol=1e-5), "deformed mismatch (2)"
    assert jnp.allclose(aux2["flow_grid"], ref_fg2, atol=1e-6, rtol=1e-6), "flow_grid mismatch (2)"

    # Case 3: B=1 with automatic tile pick (exercises the >=2-grid-step split).
    img3, grid3 = _make_case(k5, k6, (1, 2, 16, 32))
    deformed3, aux3 = spatial_transformer(img3, grid3, matrix_type="grid")
    deformed3 = jax.block_until_ready(deformed3)
    ref_out3, ref_fg3 = _ref_forward(img3, grid3)
    assert jnp.allclose(deformed3, ref_out3, atol=1e-5, rtol=1e-5), "deformed mismatch (3)"
    assert jnp.allclose(aux3["flow_grid"], ref_fg3, atol=1e-6, rtol=1e-6), "flow_grid mismatch (3)"

    print("KERNEL_OK")
</pallas_src>

<mosaic_0001>
module attributes {stable_mosaic.version = 11 : i64} {
  func.func @_grid_sample_kernel(%arg0: i32, %arg1: i32, %arg2: memref<1x2x256xf32, #tpu.memory_space<vmem>>, %arg3: memref<1x4x256xbf16, #tpu.memory_space<vmem>>, %arg4: memref<1x4x256xf32, #tpu.memory_space<vmem>>) attributes {dimension_semantics = [#tpu.dimension_semantics<parallel>, #tpu.dimension_semantics<parallel>], iteration_bounds = array<i64: 2, 1>, scalar_prefetch = 0 : i64, scratch_operands = 0 : i64, tpu.core_type = #tpu.core_type<tc>, window_params = [{transform_indices = @transform_0, window_bounds = array<i64: 1, 2, 256>}, {pipeline_mode = #tpu.pipeline_mode<synchronous>, transform_indices = @transform_1, window_bounds = array<i64: 1, 4, 256>}, {transform_indices = @transform_2, window_bounds = array<i64: 1, 4, 256>}]} {
    %c0 = arith.constant 0 : index
    %c0_0 = arith.constant 0 : index
    %c0_1 = arith.constant 0 : index
    %0 = vector.load %arg2[%c0, %c0_0, %c0_1] : memref<1x2x256xf32, #tpu.memory_space<vmem>>, vector<1x2x256xf32>
    %1 = vector.shape_cast %0 : vector<1x2x256xf32> to vector<2x256xf32>
    %2 = vector.extract_strided_slice %1 {offsets = [0, 0], sizes = [1, 256], strides = [1, 1]} : vector<2x256xf32> to vector<1x256xf32>
    %3 = vector.extract_strided_slice %1 {offsets = [1, 0], sizes = [1, 256], strides = [1, 1]} : vector<2x256xf32> to vector<1x256xf32>
    %cst = arith.constant 1.000000e+00 : f32
    %4 = vector.broadcast %cst : f32 to vector<1x256xf32>
    %5 = arith.addf %2, %4 : vector<1x256xf32>
    %cst_2 = arith.constant 7.500000e+00 : f32
    %6 = vector.broadcast %cst_2 : f32 to vector<1x256xf32>
    %7 = arith.mulf %5, %6 : vector<1x256xf32>
    %cst_3 = arith.constant 1.000000e+00 : f32
    %8 = vector.broadcast %cst_3 : f32 to vector<1x256xf32>
    %9 = arith.addf %3, %8 : vector<1x256xf32>
    %cst_4 = arith.constant 7.500000e+00 : f32
    %10 = vector.broadcast %cst_4 : f32 to vector<1x256xf32>
    %11 = arith.mulf %9, %10 : vector<1x256xf32>
    %12 = math.floor %7 : vector<1x256xf32>
    %13 = math.floor %11 : vector<1x256xf32>
    %14 = arith.subf %7, %12 : vector<1x256xf32>
    %cst_5 = arith.constant 1.000000e+00 : f32
    %15 = vector.broadcast %cst_5 : f32 to vector<1x256xf32>
    %16 = arith.subf %15, %14 : vector<1x256xf32>
    %17 = arith.subf %11, %13 : vector<1x256xf32>
    %cst_6 = arith.constant 1.000000e+00 : f32
    %18 = vector.broadcast %cst_6 : f32 to vector<1x256xf32>
    %19 = arith.subf %18, %17 : vector<1x256xf32>
    %20 = arith.fptosi %12 : vector<1x256xf32> to vector<1x256xi32>
    %c1_i32 = arith.constant 1 : i32
    %21 = vector.broadcast %c1_i32 : i32 to vector<1x256xi32>
    %22 = arith.addi %20, %21 : vector<1x256xi32>
    %23 = arith.fptosi %13 : vector<1x256xf32> to vector<1x256xi32>
    %c1_i32_7 = arith.constant 1 : i32
    %24 = vector.broadcast %c1_i32_7 : i32 to vector<1x256xi32>
    %25 = arith.addi %23, %24 : vector<1x256xi32>
    %c0_8 = arith.constant 0 : index
    %c0_9 = arith.constant 0 : index
    %c0_10 = arith.constant 0 : index
    %26 = vector.load %arg3[%c0_8, %c0_9, %c0_10] : memref<1x4x256xbf16, #tpu.memory_space<vmem>>, vector<1x4x256xbf16>
    %27 = vector.shape_cast %26 : vector<1x4x256xbf16> to vector<4x256xbf16>
    %28 = tpu.iota {dimensions = array<i32: 0>} : vector<256x256xi32>
    %c16_i32 = arith.constant 16 : i32
    %29 = vector.broadcast %c16_i32 : i32 to vector<1x256xi32>
    %30 = arith.muli %23, %29 : vector<1x256xi32>
    %31 = arith.addi %30, %20 : vector<1x256xi32>
    %c0_i32 = arith.constant 0 : i32
    %32 = vector.broadcast %c0_i32 : i32 to vector<1x256xi32>
    %33 = arith.cmpi slt, %31, %32 : vector<1x256xi32>
    %c256_i32 = arith.constant 256 : i32
    %34 = vector.broadcast %c256_i32 : i32 to vector<1x256xi32>
    %35 = arith.addi %31, %34 : vector<1x256xi32>
    %36 = arith.select %33, %35, %31 : vector<1x256xi1>, vector<1x256xi32>
    %37 = vector.broadcast %36 : vector<1x256xi32> to vector<256x256xi32>
    %38 = arith.cmpi eq, %28, %37 : vector<256x256xi32>
    %39 = arith.extui %38 : vector<256x256xi1> to vector<256x256xi32>
    %40 = arith.sitofp %39 : vector<256x256xi32> to vector<256x256xf32>
    %c1_i32_11 = arith.constant 1 : i32
    %41 = tpu.dynamic_rotate %40 by %c1_i32_11 dim 0 : vector<256x256xf32>, i32 -> vector<256x256xf32>
    %c16_i32_12 = arith.constant 16 : i32
    %42 = tpu.dynamic_rotate %40 by %c16_i32_12 dim 0 : vector<256x256xf32>, i32 -> vector<256x256xf32>
    %c17_i32 = arith.constant 17 : i32
    %43 = tpu.dynamic_rotate %40 by %c17_i32 dim 0 : vector<256x256xf32>, i32 -> vector<256x256xf32>
    %44 = arith.truncf %40 : vector<256x256xf32> to vector<256x256xbf16>
    %cst_13 = arith.constant dense<0.000000e+00> : vector<4x256xf32>
    %45 = tpu.matmul %27, %44, %cst_13 {dimension_numbers = #tpu.dot_dimension_numbers<[1], [0], [0], [1], [0, 0, 1, 1], [], []>} : vector<4x256xbf16>, vector<256x256xbf16>, vector<4x256xf32> -> vector<4x256xf32>
    %46 = arith.mulf %16, %19 : vector<1x256xf32>
    %c0_i32_14 = arith.constant 0 : i32
    %47 = vector.broadcast %c0_i32_14 : i32 to vector<1x256xi32>
    %48 = arith.cmpi sge, %20, %47 : vector<1x256xi32>
    %c15_i32 = arith.constant 15 : i32
    %49 = vector.broadcast %c15_i32 : i32 to vector<1x256xi32>
    %50 = arith.cmpi sle, %20, %49 : vector<1x256xi32>
    %51 = arith.andi %48, %50 : vector<1x256xi1>
    %c0_i32_15 = arith.constant 0 : i32
    %52 = vector.broadcast %c0_i32_15 : i32 to vector<1x256xi32>
    %53 = arith.cmpi sge, %23, %52 : vector<1x256xi32>
    %54 = arith.andi %51, %53 : vector<1x256xi1>
    %c15_i32_16 = arith.constant 15 : i32
    %55 = vector.broadcast %c15_i32_16 : i32 to vector<1x256xi32>
    %56 = arith.cmpi sle, %23, %55 : vector<1x256xi32>
    %57 = arith.andi %54, %56 : vector<1x256xi1>
    %cst_17 = arith.constant 0.000000e+00 : f32
    %58 = vector.broadcast %cst_17 : f32 to vector<1x256xf32>
    %59 = arith.select %57, %46, %58 : vector<1x256xi1>, vector<1x256xf32>
    %60 = vector.broadcast %59 : vector<1x256xf32> to vector<4x256xf32>
    %61 = arith.mulf %45, %60 : vector<4x256xf32>
    %62 = arith.truncf %41 : vector<256x256xf32> to vector<256x256xbf16>
    %cst_18 = arith.constant dense<0.000000e+00> : vector<4x256xf32>
    %63 = tpu.matmul %27, %62, %cst_18 {dimension_numbers = #tpu.dot_dimension_numbers<[1], [0], [0], [1], [0, 0, 1, 1], [], []>} : vector<4x256xbf16>, vector<256x256xbf16>, vector<4x256xf32> -> vector<4x256xf32>
    %64 = arith.mulf %14, %19 : vector<1x256xf32>
    %c0_i32_19 = arith.constant 0 : i32
    %65 = vector.broadcast %c0_i32_19 : i32 to vector<1x256xi32>
    %66 = arith.cmpi sge, %22, %65 : vector<1x256xi32>
    %c15_i32_20 = arith.constant 15 : i32
    %67 = vector.broadcast %c15_i32_20 : i32 to vector<1x256xi32>
    %68 = arith.cmpi sle, %22, %67 : vector<1x256xi32>
    %69 = arith.andi %66, %68 : vector<1x256xi1>
    %c0_i32_21 = arith.constant 0 : i32
    %70 = vector.broadcast %c0_i32_21 : i32 to vector<1x256xi32>
    %71 = arith.cmpi sge, %23, %70 : vector<1x256xi32>
    %72 = arith.andi %69, %71 : vector<1x256xi1>
    %c15_i32_22 = arith.constant 15 : i32
    %73 = vector.broadcast %c15_i32_22 : i32 to vector<1x256xi32>
    %74 = arith.cmpi sle, %23, %73 : vector<1x256xi32>
    %75 = arith.andi %72, %74 : vector<1x256xi1>
    %cst_23 = arith.constant 0.000000e+00 : f32
    %76 = vector.broadcast %cst_23 : f32 to vector<1x256xf32>
    %77 = arith.select %75, %64, %76 : vector<1x256xi1>, vector<1x256xf32>
    %78 = vector.broadcast %77 : vector<1x256xf32> to vector<4x256xf32>
    %79 = arith.mulf %63, %78 : vector<4x256xf32>
    %80 = arith.addf %61, %79 : vector<4x256xf32>
    %81 = arith.truncf %42 : vector<256x256xf32> to vector<256x256xbf16>
    %cst_24 = arith.constant dense<0.000000e+00> : vector<4x256xf32>
    %82 = tpu.matmul %27, %81, %cst_24 {dimension_numbers = #tpu.dot_dimension_numbers<[1], [0], [0], [1], [0, 0, 1, 1], [], []>} : vector<4x256xbf16>, vector<256x256xbf16>, vector<4x256xf32> -> vector<4x256xf32>
    %83 = arith.mulf %16, %17 : vector<1x256xf32>
    %c0_i32_25 = arith.constant 0 : i32
    %84 = vector.broadcast %c0_i32_25 : i32 to vector<1x256xi32>
    %85 = arith.cmpi sge, %20, %84 : vector<1x256xi32>
    %c15_i32_26 = arith.constant 15 : i32
    %86 = vector.broadcast %c15_i32_26 : i32 to vector<1x256xi32>
    %87 = arith.cmpi sle, %20, %86 : vector<1x256xi32>
    %88 = arith.andi %85, %87 : vector<1x256xi1>
    %c0_i32_27 = arith.constant 0 : i32
    %89 = vector.broadcast %c0_i32_27 : i32 to vector<1x256xi32>
    %90 = arith.cmpi sge, %25, %89 : vector<1x256xi32>
    %91 = arith.andi %88, %90 : vector<1x256xi1>
    %c15_i32_28 = arith.constant 15 : i32
    %92 = vector.broadcast %c15_i32_28 : i32 to vector<1x256xi32>
    %93 = arith.cmpi sle, %25, %92 : vector<1x256xi32>
    %94 = arith.andi %91, %93 : vector<1x256xi1>
    %cst_29 = arith.constant 0.000000e+00 : f32
    %95 = vector.broadcast %cst_29 : f32 to vector<1x256xf32>
    %96 = arith.select %94, %83, %95 : vector<1x256xi1>, vector<1x256xf32>
    %97 = vector.broadcast %96 : vector<1x256xf32> to vector<4x256xf32>
    %98 = arith.mulf %82, %97 : vector<4x256xf32>
    %99 = arith.addf %80, %98 : vector<4x256xf32>
    %100 = arith.truncf %43 : vector<256x256xf32> to vector<256x256xbf16>
    %cst_30 = arith.constant dense<0.000000e+00> : vector<4x256xf32>
    %101 = tpu.matmul %27, %100, %cst_30 {dimension_numbers = #tpu.dot_dimension_numbers<[1], [0], [0], [1], [0, 0, 1, 1], [], []>} : vector<4x256xbf16>, vector<256x256xbf16>, vector<4x256xf32> -> vector<4x256xf32>
    %102 = arith.mulf %14, %17 : vector<1x256xf32>
    %c0_i32_31 = arith.constant 0 : i32
    %103 = vector.broadcast %c0_i32_31 : i32 to vector<1x256xi32>
    %104 = arith.cmpi sge, %22, %103 : vector<1x256xi32>
    %c15_i32_32 = arith.constant 15 : i32
    %105 = vector.broadcast %c15_i32_32 : i32 to vector<1x256xi32>
    %106 = arith.cmpi sle, %22, %105 : vector<1x256xi32>
    %107 = arith.andi %104, %106 : vector<1x256xi1>
    %c0_i32_33 = arith.constant 0 : i32
    %108 = vector.broadcast %c0_i32_33 : i32 to vector<1x256xi32>
    %109 = arith.cmpi sge, %25, %108 : vector<1x256xi32>
    %110 = arith.andi %107, %109 : vector<1x256xi1>
    %c15_i32_34 = arith.constant 15 : i32
    %111 = vector.broadcast %c15_i32_34 : i32 to vector<1x256xi32>
    %112 = arith.cmpi sle, %25, %111 : vector<1x256xi32>
    %113 = arith.andi %110, %112 : vector<1x256xi1>
    %cst_35 = arith.constant 0.000000e+00 : f32
    %114 = vector.broadcast %cst_35 : f32 to vector<1x256xf32>
    %115 = arith.select %113, %102, %114 : vector<1x256xi1>, vector<1x256xf32>
    %116 = vector.broadcast %115 : vector<1x256xf32> to vector<4x256xf32>
    %117 = arith.mulf %101, %116 : vector<4x256xf32>
    %118 = arith.addf %99, %117 : vector<4x256xf32>
    %c0_36 = arith.constant 0 : index
    %c0_37 = arith.constant 0 : index
    %c0_38 = arith.constant 0 : index
    %119 = vector.load %arg4[%c0_36, %c0_37, %c0_38] : memref<1x4x256xf32, #tpu.memory_space<vmem>>, vector<1x4x256xf32>
    %120 = vector.shape_cast %119 : vector<1x4x256xf32> to vector<4x256xf32>
    %121 = vector.shape_cast %118 : vector<4x256xf32> to vector<1x4x256xf32>
    tpu.vector_store %arg4[%c0_36, %c0_37, %c0_38], %121 {strides = array<i32>} : memref<1x4x256xf32, #tpu.memory_space<vmem>>, vector<1x4x256xf32>,
    return
  }
  func.func @transform_0(%arg0: i32, %arg1: i32) -> (i32, i32, i32) {
    %c0_i32 = arith.constant 0 : i32
    %c0_i32_0 = arith.constant 0 : i32
    return %arg0, %c0_i32, %arg1 : i32, i32, i32
  }
  func.func @transform_1(%arg0: i32, %arg1: i32) -> (i32, i32, i32) {
    %c0_i32 = arith.constant 0 : i32
    %c0_i32_0 = arith.constant 0 : i32
    %c0_i32_1 = arith.constant 0 : i32
    return %arg0, %c0_i32, %c0_i32_0 : i32, i32, i32
  }
  func.func @transform_2(%arg0: i32, %arg1: i32) -> (i32, i32, i32) {
    %c0_i32 = arith.constant 0 : i32
    %c0_i32_0 = arith.constant 0 : i32
    return %arg0, %c0_i32, %arg1 : i32, i32, i32
  }
}

module attributes {stable_mosaic.version = 11 : i64} {
  func.func @_grid_sample_kernel(%arg0: i32, %arg1: i32, %arg2: memref<1x2x256xf32, #tpu.memory_space<vmem>>, %arg3: memref<1x4x256xbf16, #tpu.memory_space<vmem>>, %arg4: memref<1x4x256xf32, #tpu.memory_space<vmem>>) attributes {dimension_semantics = [#tpu.dimension_semantics<parallel>, #tpu.dimension_semantics<parallel>], iteration_bounds = array<i64: 2, 1>, scalar_prefetch = 0 : i64, scratch_operands = 0 : i64, tpu.core_type = #tpu.core_type<tc>, window_params = [{transform_indices = @transform_0, window_bounds = array<i64: 1, 2, 256>}, {transform_indices = @transform_1, window_bounds = array<i64: 1, 4, 256>}, {transform_indices = @transform_2, window_bounds = array<i64: 1, 4, 256>}]} {
    %c0 = arith.constant 0 : index
    %c0_0 = arith.constant 0 : index
    %c0_1 = arith.constant 0 : index
    %0 = vector.load %arg2[%c0, %c0_0, %c0_1] : memref<1x2x256xf32, #tpu.memory_space<vmem>>, vector<1x2x256xf32>
    %1 = vector.shape_cast %0 : vector<1x2x256xf32> to vector<2x256xf32>
    %2 = vector.extract_strided_slice %1 {offsets = [0, 0], sizes = [1, 256], strides = [1, 1]} : vector<2x256xf32> to vector<1x256xf32>
    %3 = vector.extract_strided_slice %1 {offsets = [1, 0], sizes = [1, 256], strides = [1, 1]} : vector<2x256xf32> to vector<1x256xf32>
    %cst = arith.constant 1.000000e+00 : f32
    %4 = vector.broadcast %cst : f32 to vector<1x256xf32>
    %5 = arith.addf %2, %4 : vector<1x256xf32>
    %cst_2 = arith.constant 7.500000e+00 : f32
    %6 = vector.broadcast %cst_2 : f32 to vector<1x256xf32>
    %7 = arith.mulf %5, %6 : vector<1x256xf32>
    %cst_3 = arith.constant 1.000000e+00 : f32
    %8 = vector.broadcast %cst_3 : f32 to vector<1x256xf32>
    %9 = arith.addf %3, %8 : vector<1x256xf32>
    %cst_4 = arith.constant 7.500000e+00 : f32
    %10 = vector.broadcast %cst_4 : f32 to vector<1x256xf32>
    %11 = arith.mulf %9, %10 : vector<1x256xf32>
    %12 = math.floor %7 : vector<1x256xf32>
    %13 = math.floor %11 : vector<1x256xf32>
    %14 = arith.subf %7, %12 : vector<1x256xf32>
    %cst_5 = arith.constant 1.000000e+00 : f32
    %15 = vector.broadcast %cst_5 : f32 to vector<1x256xf32>
    %16 = arith.subf %15, %14 : vector<1x256xf32>
    %17 = arith.subf %11, %13 : vector<1x256xf32>
    %cst_6 = arith.constant 1.000000e+00 : f32
    %18 = vector.broadcast %cst_6 : f32 to vector<1x256xf32>
    %19 = arith.subf %18, %17 : vector<1x256xf32>
    %20 = arith.fptosi %12 : vector<1x256xf32> to vector<1x256xi32>
    %c1_i32 = arith.constant 1 : i32
    %21 = vector.broadcast %c1_i32 : i32 to vector<1x256xi32>
    %22 = arith.addi %20, %21 : vector<1x256xi32>
    %23 = arith.fptosi %13 : vector<1x256xf32> to vector<1x256xi32>
    %c1_i32_7 = arith.constant 1 : i32
    %24 = vector.broadcast %c1_i32_7 : i32 to vector<1x256xi32>
    %25 = arith.addi %23, %24 : vector<1x256xi32>
    %c0_8 = arith.constant 0 : index
    %c0_9 = arith.constant 0 : index
    %c0_10 = arith.constant 0 : index
    %26 = vector.load %arg3[%c0_8, %c0_9, %c0_10] : memref<1x4x256xbf16, #tpu.memory_space<vmem>>, vector<1x4x256xbf16>
    %27 = vector.shape_cast %26 : vector<1x4x256xbf16> to vector<4x256xbf16>
    %28 = tpu.iota {dimensions = array<i32: 0>} : vector<256x256xi32>
    %c16_i32 = arith.constant 16 : i32
    %29 = vector.broadcast %c16_i32 : i32 to vector<1x256xi32>
    %30 = arith.muli %23, %29 : vector<1x256xi32>
    %31 = arith.addi %30, %20 : vector<1x256xi32>
    %c0_i32 = arith.constant 0 : i32
    %32 = vector.broadcast %c0_i32 : i32 to vector<1x256xi32>
    %33 = arith.cmpi slt, %31, %32 : vector<1x256xi32>
    %c256_i32 = arith.constant 256 : i32
    %34 = vector.broadcast %c256_i32 : i32 to vector<1x256xi32>
    %35 = arith.addi %31, %34 : vector<1x256xi32>
    %36 = arith.select %33, %35, %31 : vector<1x256xi1>, vector<1x256xi32>
    %37 = vector.broadcast %36 : vector<1x256xi32> to vector<256x256xi32>
    %38 = arith.cmpi eq, %28, %37 : vector<256x256xi32>
    %39 = arith.extui %38 : vector<256x256xi1> to vector<256x256xi32>
    %40 = arith.sitofp %39 : vector<256x256xi32> to vector<256x256xf32>
    %c1_i32_11 = arith.constant 1 : i32
    %41 = tpu.dynamic_rotate %40 by %c1_i32_11 dim 0 : vector<256x256xf32>, i32 -> vector<256x256xf32>
    %c16_i32_12 = arith.constant 16 : i32
    %42 = tpu.dynamic_rotate %40 by %c16_i32_12 dim 0 : vector<256x256xf32>, i32 -> vector<256x256xf32>
    %c17_i32 = arith.constant 17 : i32
    %43 = tpu.dynamic_rotate %40 by %c17_i32 dim 0 : vector<256x256xf32>, i32 -> vector<256x256xf32>
    %44 = arith.truncf %40 : vector<256x256xf32> to vector<256x256xbf16>
    %cst_13 = arith.constant dense<0.000000e+00> : vector<4x256xf32>
    %45 = tpu.matmul %27, %44, %cst_13 {dimension_numbers = #tpu.dot_dimension_numbers<[1], [0], [0], [1], [0, 0, 1, 1], [], []>} : vector<4x256xbf16>, vector<256x256xbf16>, vector<4x256xf32> -> vector<4x256xf32>
    %46 = arith.mulf %16, %19 : vector<1x256xf32>
    %c0_i32_14 = arith.constant 0 : i32
    %47 = vector.broadcast %c0_i32_14 : i32 to vector<1x256xi32>
    %48 = arith.cmpi sge, %20, %47 : vector<1x256xi32>
    %c15_i32 = arith.constant 15 : i32
    %49 = vector.broadcast %c15_i32 : i32 to vector<1x256xi32>
    %50 = arith.cmpi sle, %20, %49 : vector<1x256xi32>
    %51 = arith.andi %48, %50 : vector<1x256xi1>
    %c0_i32_15 = arith.constant 0 : i32
    %52 = vector.broadcast %c0_i32_15 : i32 to vector<1x256xi32>
    %53 = arith.cmpi sge, %23, %52 : vector<1x256xi32>
    %54 = arith.andi %51, %53 : vector<1x256xi1>
    %c15_i32_16 = arith.constant 15 : i32
    %55 = vector.broadcast %c15_i32_16 : i32 to vector<1x256xi32>
    %56 = arith.cmpi sle, %23, %55 : vector<1x256xi32>
    %57 = arith.andi %54, %56 : vector<1x256xi1>
    %cst_17 = arith.constant 0.000000e+00 : f32
    %58 = vector.broadcast %cst_17 : f32 to vector<1x256xf32>
    %59 = arith.select %57, %46, %58 : vector<1x256xi1>, vector<1x256xf32>
    %60 = vector.broadcast %59 : vector<1x256xf32> to vector<4x256xf32>
    %61 = arith.mulf %45, %60 : vector<4x256xf32>
    %62 = arith.truncf %41 : vector<256x256xf32> to vector<256x256xbf16>
    %cst_18 = arith.constant dense<0.000000e+00> : vector<4x256xf32>
    %63 = tpu.matmul %27, %62, %cst_18 {dimension_numbers = #tpu.dot_dimension_numbers<[1], [0], [0], [1], [0, 0, 1, 1], [], []>} : vector<4x256xbf16>, vector<256x256xbf16>, vector<4x256xf32> -> vector<4x256xf32>
    %64 = arith.mulf %14, %19 : vector<1x256xf32>
    %c0_i32_19 = arith.constant 0 : i32
    %65 = vector.broadcast %c0_i32_19 : i32 to vector<1x256xi32>
    %66 = arith.cmpi sge, %22, %65 : vector<1x256xi32>
    %c15_i32_20 = arith.constant 15 : i32
    %67 = vector.broadcast %c15_i32_20 : i32 to vector<1x256xi32>
    %68 = arith.cmpi sle, %22, %67 : vector<1x256xi32>
    %69 = arith.andi %66, %68 : vector<1x256xi1>
    %c0_i32_21 = arith.constant 0 : i32
    %70 = vector.broadcast %c0_i32_21 : i32 to vector<1x256xi32>
    %71 = arith.cmpi sge, %23, %70 : vector<1x256xi32>
    %72 = arith.andi %69, %71 : vector<1x256xi1>
    %c15_i32_22 = arith.constant 15 : i32
    %73 = vector.broadcast %c15_i32_22 : i32 to vector<1x256xi32>
    %74 = arith.cmpi sle, %23, %73 : vector<1x256xi32>
    %75 = arith.andi %72, %74 : vector<1x256xi1>
    %cst_23 = arith.constant 0.000000e+00 : f32
    %76 = vector.broadcast %cst_23 : f32 to vector<1x256xf32>
    %77 = arith.select %75, %64, %76 : vector<1x256xi1>, vector<1x256xf32>
    %78 = vector.broadcast %77 : vector<1x256xf32> to vector<4x256xf32>
    %79 = arith.mulf %63, %78 : vector<4x256xf32>
    %80 = arith.addf %61, %79 : vector<4x256xf32>
    %81 = arith.truncf %42 : vector<256x256xf32> to vector<256x256xbf16>
    %cst_24 = arith.constant dense<0.000000e+00> : vector<4x256xf32>
    %82 = tpu.matmul %27, %81, %cst_24 {dimension_numbers = #tpu.dot_dimension_numbers<[1], [0], [0], [1], [0, 0, 1, 1], [], []>} : vector<4x256xbf16>, vector<256x256xbf16>, vector<4x256xf32> -> vector<4x256xf32>
    %83 = arith.mulf %16, %17 : vector<1x256xf32>
    %c0_i32_25 = arith.constant 0 : i32
    %84 = vector.broadcast %c0_i32_25 : i32 to vector<1x256xi32>
    %85 = arith.cmpi sge, %20, %84 : vector<1x256xi32>
    %c15_i32_26 = arith.constant 15 : i32
    %86 = vector.broadcast %c15_i32_26 : i32 to vector<1x256xi32>
    %87 = arith.cmpi sle, %20, %86 : vector<1x256xi32>
    %88 = arith.andi %85, %87 : vector<1x256xi1>
    %c0_i32_27 = arith.constant 0 : i32
    %89 = vector.broadcast %c0_i32_27 : i32 to vector<1x256xi32>
    %90 = arith.cmpi sge, %25, %89 : vector<1x256xi32>
    %91 = arith.andi %88, %90 : vector<1x256xi1>
    %c15_i32_28 = arith.constant 15 : i32
    %92 = vector.broadcast %c15_i32_28 : i32 to vector<1x256xi32>
    %93 = arith.cmpi sle, %25, %92 : vector<1x256xi32>
    %94 = arith.andi %91, %93 : vector<1x256xi1>
    %cst_29 = arith.constant 0.000000e+00 : f32
    %95 = vector.broadcast %cst_29 : f32 to vector<1x256xf32>
    %96 = arith.select %94, %83, %95 : vector<1x256xi1>, vector<1x256xf32>
    %97 = vector.broadcast %96 : vector<1x256xf32> to vector<4x256xf32>
    %98 = arith.mulf %82, %97 : vector<4x256xf32>
    %99 = arith.addf %80, %98 : vector<4x256xf32>
    %100 = arith.truncf %43 : vector<256x256xf32> to vector<256x256xbf16>
    %cst_30 = arith.constant dense<0.000000e+00> : vector<4x256xf32>
    %101 = tpu.matmul %27, %100, %cst_30 {dimension_numbers = #tpu.dot_dimension_numbers<[1], [0], [0], [1], [0, 0, 1, 1], [], []>} : vector<4x256xbf16>, vector<256x256xbf16>, vector<4x256xf32> -> vector<4x256xf32>
    %102 = arith.mulf %14, %17 : vector<1x256xf32>
    %c0_i32_31 = arith.constant 0 : i32
    %103 = vector.broadcast %c0_i32_31 : i32 to vector<1x256xi32>
    %104 = arith.cmpi sge, %22, %103 : vector<1x256xi32>
    %c15_i32_32 = arith.constant 15 : i32
    %105 = vector.broadcast %c15_i32_32 : i32 to vector<1x256xi32>
    %106 = arith.cmpi sle, %22, %105 : vector<1x256xi32>
    %107 = arith.andi %104, %106 : vector<1x256xi1>
    %c0_i32_33 = arith.constant 0 : i32
    %108 = vector.broadcast %c0_i32_33 : i32 to vector<1x256xi32>
    %109 = arith.cmpi sge, %25, %108 : vector<1x256xi32>
    %110 = arith.andi %107, %109 : vector<1x256xi1>
    %c15_i32_34 = arith.constant 15 : i32
    %111 = vector.broadcast %c15_i32_34 : i32 to vector<1x256xi32>
    %112 = arith.cmpi sle, %25, %111 : vector<1x256xi32>
    %113 = arith.andi %110, %112 : vector<1x256xi1>
    %cst_35 = arith.constant 0.000000e+00 : f32
    %114 = vector.broadcast %cst_35 : f32 to vector<1x256xf32>
    %115 = arith.select %113, %102, %114 : vector<1x256xi1>, vector<1x256xf32>
    %116 = vector.broadcast %115 : vector<1x256xf32> to vector<4x256xf32>
    %117 = arith.mulf %101, %116 : vector<4x256xf32>
    %118 = arith.addf %99, %117 : vector<4x256xf32>
    %c0_36 = arith.constant 0 : index
    %c0_37 = arith.constant 0 : index
    %c0_38 = arith.constant 0 : index
    %119 = vector.load %arg4[%c0_36, %c0_37, %c0_38] : memref<1x4x256xf32, #tpu.memory_space<vmem>>, vector<1x4x256xf32>
    %120 = vector.shape_cast %119 : vector<1x4x256xf32> to vector<4x256xf32>
    %121 = vector.shape_cast %118 : vector<4x256xf32> to vector<1x4x256xf32>
    tpu.vector_store %arg4[%c0_36, %c0_37, %c0_38], %121 {strides = array<i32>} : memref<1x4x256xf32, #tpu.memory_space<vmem>>, vector<1x4x256xf32>,
    return
  }
  func.func @transform_0(%arg0: i32, %arg1: i32) -> (i32, i32, i32) {
    %c0_i32 = arith.constant 0 : i32
    %c0_i32_0 = arith.constant 0 : i32
    return %arg0, %c0_i32, %arg1 : i32, i32, i32
  }
  func.func @transform_1(%arg0: i32, %arg1: i32) -> (i32, i32, i32) {
    %c0_i32 = arith.constant 0 : i32
    %c0_i32_0 = arith.constant 0 : i32
    %c0_i32_1 = arith.constant 0 : i32
    return %arg0, %c0_i32, %c0_i32_0 : i32, i32, i32
  }
  func.func @transform_2(%arg0: i32, %arg1: i32) -> (i32, i32, i32) {
    %c0_i32 = arith.constant 0 : i32
    %c0_i32_0 = arith.constant 0 : i32
    return %arg0, %c0_i32, %arg1 : i32, i32, i32
  }
}

module attributes {stable_mosaic.version = 11 : i64} {
  func.func @_grid_sample_kernel(%arg0: i32, %arg1: i32, %arg2: memref<1x2x256xf32, #tpu.memory_space<vmem>>, %arg3: memref<1x4x256xbf16, #tpu.memory_space<vmem>>, %arg4: memref<1x4x256xf32, #tpu.memory_space<vmem>>) attributes {dimension_semantics = [#tpu.dimension_semantics<parallel>, #tpu.dimension_semantics<parallel>], iteration_bounds = array<i64: 2, 1>, scalar_prefetch = 0 : i64, scratch_operands = 0 : i64, tpu.core_type = #tpu.core_type<tc>, window_params = [{transform_indices = @transform_0, window_bounds = array<i64: 1, 2, 256>}, {transform_indices = @transform_1, window_bounds = array<i64: 1, 4, 256>}, {transform_indices = @transform_2, window_bounds = array<i64: 1, 4, 256>}]} {
    %c0 = arith.constant 0 : index
    %c0_0 = arith.constant 0 : index
    %c0_1 = arith.constant 0 : index
    %0 = vector.load %arg2[%c0, %c0_0, %c0_1] : memref<1x2x256xf32, #tpu.memory_space<vmem>>, vector<1x2x256xf32>
    %1 = vector.shape_cast %0 : vector<1x2x256xf32> to vector<2x256xf32>
    %2 = vector.extract_strided_slice %1 {offsets = [0, 0], sizes = [1, 256], strides = [1, 1]} : vector<2x256xf32> to vector<1x256xf32>
    %3 = vector.extract_strided_slice %1 {offsets = [1, 0], sizes = [1, 256], strides = [1, 1]} : vector<2x256xf32> to vector<1x256xf32>
    %cst = arith.constant 1.000000e+00 : f32
    %4 = vector.broadcast %cst : f32 to vector<1x256xf32>
    %5 = arith.addf %2, %4 : vector<1x256xf32>
    %cst_2 = arith.constant 7.500000e+00 : f32
    %6 = vector.broadcast %cst_2 : f32 to vector<1x256xf32>
    %7 = arith.mulf %5, %6 : vector<1x256xf32>
    %cst_3 = arith.constant 1.000000e+00 : f32
    %8 = vector.broadcast %cst_3 : f32 to vector<1x256xf32>
    %9 = arith.addf %3, %8 : vector<1x256xf32>
    %cst_4 = arith.constant 7.500000e+00 : f32
    %10 = vector.broadcast %cst_4 : f32 to vector<1x256xf32>
    %11 = arith.mulf %9, %10 : vector<1x256xf32>
    %12 = math.floor %7 : vector<1x256xf32>
    %13 = math.floor %11 : vector<1x256xf32>
    %14 = arith.subf %7, %12 : vector<1x256xf32>
    %cst_5 = arith.constant 1.000000e+00 : f32
    %15 = vector.broadcast %cst_5 : f32 to vector<1x256xf32>
    %16 = arith.subf %15, %14 : vector<1x256xf32>
    %17 = arith.subf %11, %13 : vector<1x256xf32>
    %cst_6 = arith.constant 1.000000e+00 : f32
    %18 = vector.broadcast %cst_6 : f32 to vector<1x256xf32>
    %19 = arith.subf %18, %17 : vector<1x256xf32>
    %20 = arith.fptosi %12 : vector<1x256xf32> to vector<1x256xi32>
    %c1_i32 = arith.constant 1 : i32
    %21 = vector.broadcast %c1_i32 : i32 to vector<1x256xi32>
    %22 = arith.addi %20, %21 : vector<1x256xi32>
    %23 = arith.fptosi %13 : vector<1x256xf32> to vector<1x256xi32>
    %c1_i32_7 = arith.constant 1 : i32
    %24 = vector.broadcast %c1_i32_7 : i32 to vector<1x256xi32>
    %25 = arith.addi %23, %24 : vector<1x256xi32>
    %c0_8 = arith.constant 0 : index
    %c0_9 = arith.constant 0 : index
    %c0_10 = arith.constant 0 : index
    %26 = vector.load %arg3[%c0_8, %c0_9, %c0_10] : memref<1x4x256xbf16, #tpu.memory_space<vmem>>, vector<1x4x256xbf16>
    %27 = vector.shape_cast %26 : vector<1x4x256xbf16> to vector<4x256xbf16>
    %28 = tpu.iota {dimensions = array<i32: 0>} : vector<256x256xi32>
    %29 = arith.mulf %16, %19 : vector<1x256xf32>
    %c16_i32 = arith.constant 16 : i32
    %30 = vector.broadcast %c16_i32 : i32 to vector<1x256xi32>
    %31 = arith.muli %23, %30 : vector<1x256xi32>
    %32 = arith.addi %31, %20 : vector<1x256xi32>
    %33 = vector.broadcast %32 : vector<1x256xi32> to vector<256x256xi32>
    %34 = arith.cmpi eq, %28, %33 : vector<256x256xi32>
    %35 = arith.extui %34 : vector<256x256xi1> to vector<256x256xi32>
    %36 = arith.sitofp %35 : vector<256x256xi32> to vector<256x256xf32>
    %37 = arith.truncf %36 : vector<256x256xf32> to vector<256x256xbf16>
    %cst_11 = arith.constant dense<0.000000e+00> : vector<4x256xf32>
    %38 = tpu.matmul %27, %37, %cst_11 {dimension_numbers = #tpu.dot_dimension_numbers<[1], [0], [0], [1], [0, 0, 1, 1], [], []>} : vector<4x256xbf16>, vector<256x256xbf16>, vector<4x256xf32> -> vector<4x256xf32>
    %c0_i32 = arith.constant 0 : i32
    %39 = vector.broadcast %c0_i32 : i32 to vector<1x256xi32>
    %40 = arith.cmpi sge, %20, %39 : vector<1x256xi32>
    %c15_i32 = arith.constant 15 : i32
    %41 = vector.broadcast %c15_i32 : i32 to vector<1x256xi32>
    %42 = arith.cmpi sle, %20, %41 : vector<1x256xi32>
    %43 = arith.andi %40, %42 : vector<1x256xi1>
    %c0_i32_12 = arith.constant 0 : i32
    %44 = vector.broadcast %c0_i32_12 : i32 to vector<1x256xi32>
    %45 = arith.cmpi sge, %23, %44 : vector<1x256xi32>
    %46 = arith.andi %43, %45 : vector<1x256xi1>
    %c15_i32_13 = arith.constant 15 : i32
    %47 = vector.broadcast %c15_i32_13 : i32 to vector<1x256xi32>
    %48 = arith.cmpi sle, %23, %47 : vector<1x256xi32>
    %49 = arith.andi %46, %48 : vector<1x256xi1>
    %cst_14 = arith.constant 0.000000e+00 : f32
    %50 = vector.broadcast %cst_14 : f32 to vector<1x256xf32>
    %51 = arith.select %49, %29, %50 : vector<1x256xi1>, vector<1x256xf32>
    %52 = vector.broadcast %51 : vector<1x256xf32> to vector<4x256xf32>
    %53 = arith.mulf %38, %52 : vector<4x256xf32>
    %54 = arith.mulf %14, %19 : vector<1x256xf32>
    %c16_i32_15 = arith.constant 16 : i32
    %55 = vector.broadcast %c16_i32_15 : i32 to vector<1x256xi32>
    %56 = arith.muli %23, %55 : vector<1x256xi32>
    %57 = arith.addi %56, %22 : vector<1x256xi32>
    %58 = vector.broadcast %57 : vector<1x256xi32> to vector<256x256xi32>
    %59 = arith.cmpi eq, %28, %58 : vector<256x256xi32>
    %60 = arith.extui %59 : vector<256x256xi1> to vector<256x256xi32>
    %61 = arith.sitofp %60 : vector<256x256xi32> to vector<256x256xf32>
    %62 = arith.truncf %61 : vector<256x256xf32> to vector<256x256xbf16>
    %cst_16 = arith.constant dense<0.000000e+00> : vector<4x256xf32>
    %63 = tpu.matmul %27, %62, %cst_16 {dimension_numbers = #tpu.dot_dimension_numbers<[1], [0], [0], [1], [0, 0, 1, 1], [], []>} : vector<4x256xbf16>, vector<256x256xbf16>, vector<4x256xf32> -> vector<4x256xf32>
    %c0_i32_17 = arith.constant 0 : i32
    %64 = vector.broadcast %c0_i32_17 : i32 to vector<1x256xi32>
    %65 = arith.cmpi sge, %22, %64 : vector<1x256xi32>
    %c15_i32_18 = arith.constant 15 : i32
    %66 = vector.broadcast %c15_i32_18 : i32 to vector<1x256xi32>
    %67 = arith.cmpi sle, %22, %66 : vector<1x256xi32>
    %68 = arith.andi %65, %67 : vector<1x256xi1>
    %c0_i32_19 = arith.constant 0 : i32
    %69 = vector.broadcast %c0_i32_19 : i32 to vector<1x256xi32>
    %70 = arith.cmpi sge, %23, %69 : vector<1x256xi32>
    %71 = arith.andi %68, %70 : vector<1x256xi1>
    %c15_i32_20 = arith.constant 15 : i32
    %72 = vector.broadcast %c15_i32_20 : i32 to vector<1x256xi32>
    %73 = arith.cmpi sle, %23, %72 : vector<1x256xi32>
    %74 = arith.andi %71, %73 : vector<1x256xi1>
    %cst_21 = arith.constant 0.000000e+00 : f32
    %75 = vector.broadcast %cst_21 : f32 to vector<1x256xf32>
    %76 = arith.select %74, %54, %75 : vector<1x256xi1>, vector<1x256xf32>
    %77 = vector.broadcast %76 : vector<1x256xf32> to vector<4x256xf32>
    %78 = arith.mulf %63, %77 : vector<4x256xf32>
    %79 = arith.addf %53, %78 : vector<4x256xf32>
    %80 = arith.mulf %16, %17 : vector<1x256xf32>
    %c16_i32_22 = arith.constant 16 : i32
    %81 = vector.broadcast %c16_i32_22 : i32 to vector<1x256xi32>
    %82 = arith.muli %25, %81 : vector<1x256xi32>
    %83 = arith.addi %82, %20 : vector<1x256xi32>
    %84 = vector.broadcast %83 : vector<1x256xi32> to vector<256x256xi32>
    %85 = arith.cmpi eq, %28, %84 : vector<256x256xi32>
    %86 = arith.extui %85 : vector<256x256xi1> to vector<256x256xi32>
    %87 = arith.sitofp %86 : vector<256x256xi32> to vector<256x256xf32>
    %88 = arith.truncf %87 : vector<256x256xf32> to vector<256x256xbf16>
    %cst_23 = arith.constant dense<0.000000e+00> : vector<4x256xf32>
    %89 = tpu.matmul %27, %88, %cst_23 {dimension_numbers = #tpu.dot_dimension_numbers<[1], [0], [0], [1], [0, 0, 1, 1], [], []>} : vector<4x256xbf16>, vector<256x256xbf16>, vector<4x256xf32> -> vector<4x256xf32>
    %c0_i32_24 = arith.constant 0 : i32
    %90 = vector.broadcast %c0_i32_24 : i32 to vector<1x256xi32>
    %91 = arith.cmpi sge, %20, %90 : vector<1x256xi32>
    %c15_i32_25 = arith.constant 15 : i32
    %92 = vector.broadcast %c15_i32_25 : i32 to vector<1x256xi32>
    %93 = arith.cmpi sle, %20, %92 : vector<1x256xi32>
    %94 = arith.andi %91, %93 : vector<1x256xi1>
    %c0_i32_26 = arith.constant 0 : i32
    %95 = vector.broadcast %c0_i32_26 : i32 to vector<1x256xi32>
    %96 = arith.cmpi sge, %25, %95 : vector<1x256xi32>
    %97 = arith.andi %94, %96 : vector<1x256xi1>
    %c15_i32_27 = arith.constant 15 : i32
    %98 = vector.broadcast %c15_i32_27 : i32 to vector<1x256xi32>
    %99 = arith.cmpi sle, %25, %98 : vector<1x256xi32>
    %100 = arith.andi %97, %99 : vector<1x256xi1>
    %cst_28 = arith.constant 0.000000e+00 : f32
    %101 = vector.broadcast %cst_28 : f32 to vector<1x256xf32>
    %102 = arith.select %100, %80, %101 : vector<1x256xi1>, vector<1x256xf32>
    %103 = vector.broadcast %102 : vector<1x256xf32> to vector<4x256xf32>
    %104 = arith.mulf %89, %103 : vector<4x256xf32>
    %105 = arith.addf %79, %104 : vector<4x256xf32>
    %106 = arith.mulf %14, %17 : vector<1x256xf32>
    %c16_i32_29 = arith.constant 16 : i32
    %107 = vector.broadcast %c16_i32_29 : i32 to vector<1x256xi32>
    %108 = arith.muli %25, %107 : vector<1x256xi32>
    %109 = arith.addi %108, %22 : vector<1x256xi32>
    %110 = vector.broadcast %109 : vector<1x256xi32> to vector<256x256xi32>
    %111 = arith.cmpi eq, %28, %110 : vector<256x256xi32>
    %112 = arith.extui %111 : vector<256x256xi1> to vector<256x256xi32>
    %113 = arith.sitofp %112 : vector<256x256xi32> to vector<256x256xf32>
    %114 = arith.truncf %113 : vector<256x256xf32> to vector<256x256xbf16>
    %cst_30 = arith.constant dense<0.000000e+00> : vector<4x256xf32>
    %115 = tpu.matmul %27, %114, %cst_30 {dimension_numbers = #tpu.dot_dimension_numbers<[1], [0], [0], [1], [0, 0, 1, 1], [], []>} : vector<4x256xbf16>, vector<256x256xbf16>, vector<4x256xf32> -> vector<4x256xf32>
    %c0_i32_31 = arith.constant 0 : i32
    %116 = vector.broadcast %c0_i32_31 : i32 to vector<1x256xi32>
    %117 = arith.cmpi sge, %22, %116 : vector<1x256xi32>
    %c15_i32_32 = arith.constant 15 : i32
    %118 = vector.broadcast %c15_i32_32 : i32 to vector<1x256xi32>
    %119 = arith.cmpi sle, %22, %118 : vector<1x256xi32>
    %120 = arith.andi %117, %119 : vector<1x256xi1>
    %c0_i32_33 = arith.constant 0 : i32
    %121 = vector.broadcast %c0_i32_33 : i32 to vector<1x256xi32>
    %122 = arith.cmpi sge, %25, %121 : vector<1x256xi32>
    %123 = arith.andi %120, %122 : vector<1x256xi1>
    %c15_i32_34 = arith.constant 15 : i32
    %124 = vector.broadcast %c15_i32_34 : i32 to vector<1x256xi32>
    %125 = arith.cmpi sle, %25, %124 : vector<1x256xi32>
    %126 = arith.andi %123, %125 : vector<1x256xi1>
    %cst_35 = arith.constant 0.000000e+00 : f32
    %127 = vector.broadcast %cst_35 : f32 to vector<1x256xf32>
    %128 = arith.select %126, %106, %127 : vector<1x256xi1>, vector<1x256xf32>
    %129 = vector.broadcast %128 : vector<1x256xf32> to vector<4x256xf32>
    %130 = arith.mulf %115, %129 : vector<4x256xf32>
    %131 = arith.addf %105, %130 : vector<4x256xf32>
    %c0_36 = arith.constant 0 : index
    %c0_37 = arith.constant 0 : index
    %c0_38 = arith.constant 0 : index
    %132 = vector.load %arg4[%c0_36, %c0_37, %c0_38] : memref<1x4x256xf32, #tpu.memory_space<vmem>>, vector<1x4x256xf32>
    %133 = vector.shape_cast %132 : vector<1x4x256xf32> to vector<4x256xf32>
    %134 = vector.shape_cast %131 : vector<4x256xf32> to vector<1x4x256xf32>
    tpu.vector_store %arg4[%c0_36, %c0_37, %c0_38], %134 {strides = array<i32>} : memref<1x4x256xf32, #tpu.memory_space<vmem>>, vector<1x4x256xf32>,
    return
  }
  func.func @transform_0(%arg0: i32, %arg1: i32) -> (i32, i32, i32) {
    %c0_i32 = arith.constant 0 : i32
    %c0_i32_0 = arith.constant 0 : i32
    return %arg0, %c0_i32, %arg1 : i32, i32, i32
  }
  func.func @transform_1(%arg0: i32, %arg1: i32) -> (i32, i32, i32) {
    %c0_i32 = arith.constant 0 : i32
    %c0_i32_0 = arith.constant 0 : i32
    %c0_i32_1 = arith.constant 0 : i32
    return %arg0, %c0_i32, %c0_i32_0 : i32, i32, i32
  }
  func.func @transform_2(%arg0: i32, %arg1: i32) -> (i32, i32, i32) {
    %c0_i32 = arith.constant 0 : i32
    %c0_i32_0 = arith.constant 0 : i32
    return %arg0, %c0_i32, %arg1 : i32, i32, i32
  }
}

</mosaic_0001>

<bundles_post_ra>
// kernel: tpu_custom_call.1
= control target key start
LH: loop header
LB: loop body
LE: loop exit
PB: predicated region body
PF: predicated region fallthrough
CT: control target
= control target key end

     0   :  { %7 = vsyncpa [#allocation3], 0  ;;  %s2659_s0 = inlined_call_operand.hbm [shape: f32[2,2,256], index: 0, kind: input, shape index: {}]   ;;  %s2660_s1 = inlined_call_operand.hbm [shape: bf16[2,4,256], index: 1, kind: input, shape index: {}]   ;;  %s2661_s2 = inlined_call_operand.hbm [shape: f32[2,4,256], index: 2, kind: output, shape index: {}]  }
   0x1   :  { %9 = vsyncpa [#allocation3 + $0x1], 0 }
   0x2   :  { %10 = vsyncpa [#allocation6], 0 }
   0x3   :  { %11 = vsyncpa [#allocation4], 0 }
   0x4   :  { %13 = vsyncpa [#allocation4 + $0x1], 0  ;;  %s1533_s9 = smov 0   ;;  %s1535_s10 = smov 0  }
   0x5   :  { %s1537_s11 = smov 0   ;;  %s1539_s12 = smov 0  }
   0x6   :  { %s1541_s13 = smov 0   ;;  %s1543_s14 = smov 0  }
   0x7 LB: > { %s1079_s15 = sadd.s32 4294967295, %s1510_s14   ;;  %s1080_s16 = sadd.s32 4294967294, %s1510_s14   ;;  %s1510_s14 = sphi %s1543_s14, %s19_s14   ;;  %s1506_s13 = sphi %s1541_s13, %s2869_s13   ;;  %s1502_s12 = sphi %s1539_s12, %s2868_s12   ;;  %s1498_s11 = sphi %s1537_s11, %s2867_s11   ;;  %s1494_s10 = sphi %s1535_s10, %s2866_s10   ;;  %s1490_s9 = sphi %s1533_s9, %s2865_s9  }
   0x8   : > { %p53_p0 = scmp.ne.s32.totalorder %s1494_s10, %s1490_s9  ;;  %p54_p1 = scmp.eq.s32.totalorder %s1079_s15, 0 }
   0x9   : > { %p1567_p2 = scmp.eq.s32.totalorder %s1079_s15, 1  ;;  %p111_p3 = scmp.eq.s32.totalorder %s1080_s16, 1 }
   0xa   : > { %p1571_p4 = por %p54_p1, %p53_p0  ;;  %p1081_p5 = scmp.ge.s32.totalorder %s1510_s14, 1 }
   0xb   : > { %s2714_s17 = scalar_select %p1567_p2, 1, 0 }
   0xc   : > { %s2715_s18 = scalar_select %p1571_p4, 1, 0 }
   0xd   : > { %p1576_p6 = por %p111_p3, %p53_p0  ;;  %p118_p7 = scmp.lt.s32.totalorder %s1510_s14, 3 }
   0xe   : > { %s1293_s20 = sshll.u32 %s1502_s12, 6  ;;  %s1512_s25 = smov [#allocation5]  }
   0xf   : > { %s2716_s19 = scalar_select %p1576_p6, 1, 0 }
  0x10   : > { %p1582_p8 = pnand %p1081_p5, %p118_p7  ;;  %s1589_s24 = scalar_lea.hbm %s2660_s1, %s1293_s20 }
  0x11   : > { %s134_s26 = sshll.u32 %s1512_s25, 4  ;;  %s31_s28 = sadd.s32 1, %s1506_s13  ;;  %s135_s26 = int_to_ptr.vmem [resolvable:$true] %s134_s26 }
  0x12   : > { %s2717_s21 = scalar_select %p1582_p8, 1, 0 }
  0x13   : > { %p1304_p10 = pneg %p1582_p8  ;;  %p1601_p12 = scmp.ge.s32.totalorder %s31_s28, 2 }
  0x14   : > { %s1370_s30 = scalar_lea.hbm %s1589_s24, 64  ;;  %s1375_s5 = scalar_lea.hbm %s2660_s1, 128 }
  0x15   : > { %p1596_p11 = pnand %p1304_p10, %p1571_p4  ;;  %p1371_p13 = scmp.ne.s32.totalorder %s1589_s24, %s1370_s30 }
  0x16   : > { %s2719_s29 = scalar_select %p1601_p12, 1, 0 }
  0x17   : > { %p1372_p0 = pneg %p1596_p11  ;;  %p1376_p5 = scmp.lt.s32.totalorder %s1589_s24, %s2660_s1 }
  0x18   : > { %p1377_p7 = scmp.lt.s32.totalorder %s1375_s5, %s1370_s30 }
  0x19   : > { %p1373_p1 = pnand %p1372_p0, %p1371_p13 }
  0x1a   : > { %p1378_p10 = por %p1377_p7, %p1376_p5 }
  0x1b   : > { %p1374_p3 = pneg %p1373_p1 }
  0x1d   : > { %p1379_p9 = pnand %p1378_p10, %p1374_p3 }
  0x1f   : > { %1382 = shalt.err (!%p1379_p9)
}
  0x20   : > { %s1383_s8 = scalar_lea.vmem %s135_s26, 64  ;;  %p1391_p2 = scmp.lt.s32.totalorder %s135_s26, %s135_s26 }
  0x21   : > { %p1384_p6 = scmp.ne.s32.totalorder %s135_s26, %s1383_s8  ;;  %p1392_p12 = scmp.lt.s32.totalorder %s1383_s8, %s1383_s8 }
  0x23   : > { %p1386_p4 = pnand %p1384_p6, %p1372_p0  ;;  %p1393_p13 = por %p1392_p12, %p1391_p2 }
  0x25   : > { %p1387_p8 = pneg %p1386_p4 }
  0x27   : > { %p1394_p1 = pnand %p1393_p13, %p1387_p8 }
  0x29   : > { %1397 = shalt.err (!%p1394_p1)
}
  0x2a   : > { %1307 = dma.hbm_to_vmem [thread:$0]  (!%p1596_p11), %s1589_s24, 64, %s135_s26, [#allocation6]  }
  0x2b   : > { %p2720_p4 = scmp.ne.s32.totalorder %s2719_s29, 0  ;;  %s40_s15 = sadd.s32 1, %s1498_s11 }
  0x2c   : > { %p47_p2 = scmp.ne.s32.totalorder %s1498_s11, %s1494_s10  ;;  %p48_p6 = scmp.eq.s32.totalorder %s1510_s14, 0 }
  0x2d   : > { %s2871_s28 = smov (%p2720_p4, %s31_s28), 0  ;;  %p2721_p9 = scmp.ne.s32.totalorder %s2714_s17, 0 }
  0x2e   : > { %s35_s16 = ssub.s32 %s1506_s13, %s2871_s28  ;;  %p49_p0 = por %p48_p6, %p47_p2 }
  0x2f   : > { %p38_p8 = scmp.eq.s32.totalorder %s35_s16, 0  ;;  %p1631_p12 = por %p2721_p9, %p47_p2 }
  0x30   : > { %p1316_p3 = scmp.lt.s32.totalorder %s1510_s14, 2  ;;  %s145_s23 = sand.u32 1, %s1498_s11  }
  0x31   : > { %s1637_s22 = scalar_select %p38_p8, %s1498_s11, %s40_s15  }
  0x32   : > { %s1294_s24 = sshll.u32 %s1506_s13, 6  ;;  %s1085_s25 = sshll.u32 %s145_s23, 2 }
  0x33   : > { %s157_s29 = scalar_lea.hbm %s2659_s0, %s1294_s24  ;;  %s149_s30 = scalar_lea.vmem [#allocation2], %s1085_s25 }
  0x34   : > { %s159_s3 = sshll.u32 %s149_s30, 4  ;;  %p1644_p11 = pnand %p1316_p3, %p49_p0  ;;  %s160_s3 = int_to_ptr.vmem [resolvable:$true] %s159_s3 }
  0x35   : > { %s146_s17 = scalar_lea.sflag [#allocation3], %s145_s23  ;;  %s1411_s5 = scalar_lea.vmem %s160_s3, 64 }
  0x36   : > { %p1400_p5 = pneg %p1644_p11  ;;  %p1412_p7 = scmp.ne.s32.totalorder %s160_s3, %s1411_s5 }
  0x37   : > { %s1513_s6 = smov [#allocation2]  }
  0x38   : > { %p1414_p10 = pnand %p1412_p7, %p1400_p5  ;;  %s1416_s7 = sshll.u32 %s1513_s6, 4  ;;  %s1417_s7 = int_to_ptr.vmem [resolvable:$false] %s1416_s7 }
  0x39   : > { %s1418_s8 = scalar_lea.vmem %s1417_s7, 128  ;;  %p1419_p1 = scmp.lt.s32.totalorder %s160_s3, %s1417_s7 }
  0x3a   : > { %p1415_p13 = pneg %p1414_p10  ;;  %p1420_p4 = scmp.lt.s32.totalorder %s1418_s8, %s1411_s5 }
  0x3c   : > { %p1421_p2 = por %p1420_p4, %p1419_p1 }
  0x3e   : > { %p1422_p6 = pnand %p1421_p2, %p1415_p13 }
  0x40   : > { %1425 = shalt.err (!%p1422_p6)
}
  0x41   : > { %1311 = dma.hbm_to_vmem [thread:$0]  (!%p1644_p11), %s157_s29, 64, %s160_s3, %s146_s17  }
  0x42   : > { %p2724_p8 = scmp.ne.s32.totalorder %s2717_s21, 0 }
  0x44   : > { %168 = sbr.rel (%p2724_p8) target bundleno = 470 (0x1d6), region = 28 }
  0x49   : > { %s1655_s15 = sand.u32 1, %s1494_s10   ;;  %p2725_p9 = scmp.ne.s32.totalorder %s2715_s18, 0 }
  0x4a   : > { %s1089_s16 = sshll.u32 %s1655_s15, 2  ;;  %s171_s23 = scalar_lea.sflag [#allocation3], %s1655_s15 }
  0x4b   : > { %s174_s24 = scalar_lea.vmem [#allocation2], %s1089_s16 }
  0x4c   : > { %1477 = dma.done.wait (%p2725_p9), %s171_s23, 64  }
  0x4d   : > { %1479 = vsyncadd (%p2725_p9), %s171_s23, 4294967232 }
  0x4e   : > { %1481 = dma.done.wait (%p2725_p9), [#allocation6], 64  }
  0x4f   : > { %1483 = vsyncadd (%p2725_p9), [#allocation6], 4294967232  ;;  %v201_v0 = vld [vmem:[%s174_s24] sm:$0xf]  ;;  %v210_v3 = vlaneseq  ;;  %v2680_v52 = vmov 0.0   ;;  %v2728_v55 = vmov 0 }
  0x50   : > { %v202_v1 = vadd.f32 1.0, %v201_v0  ;;  %v1670_v5 = vld.sshfl [vmem:[#allocation5] sm:$0x33 pattern:$0x76325410]  ;;  %v2731_v63 = vmov 0 }
  0x51   : > { %v1674_v7 = vshrl.u32 %v210_v3, 7  ;;  %v1678_v8 = vcombine.high %v1670_v5, %v1670_v5  ;;  %v2675_v60 = vmov 1.0|1.0   ;;  %s1090_s18 = sshll.u32 %s1655_s15, 3  ;;  %s1295_s21 = sshll.u32 %s1502_s12, 7 }
  0x52   : > { %v1667_v2 = vmul.f32 7.5, %v202_v1  ;;  %s198_s25 = scalar_lea.vmem [#allocation7], %s1090_s18  ;;  %s981_s30 = scalar_lea.hbm %s2661_s2, %s1295_s21 }
  0x53   : > { %661 = vmatprep.mubr.bf16.mxu0 %v1678_v8  ;;  %774 = vmatprep.mubr.bf16.mxu1 %v1678_v8  ;;  %v251_v12 = vsub.s32 1, %v1674_v7  ;;  %v255_v13 = vsub.s32 3, %v1674_v7  ;;  %v225_v14 = vadd.s32 112, %v1674_v7  ;;  %v226_v15 = vadd.s32 120, %v1674_v7  ;;  %s983_s26 = sshll.u32 %s198_s25, 4  ;;  %s967_s3 = scalar_lea.sflag [#allocation4], %s1655_s15  ;;  %s984_s26 = int_to_ptr.vmem [resolvable:$true] %s983_s26 }
  0x54   : > { %2726 = vst [vmem:[#allocation11_spill] sm:$0xff] %v1667_v2  ;;  %v2665_v4 = vfloor.f32 %v1667_v2  ;;  %v1691_v16 = vadd.s32 96, %v1674_v7  ;;  %v1694_v18 = vadd.s32 104, %v1674_v7  ;;  %v1697_v19 = vadd.s32 80, %v1674_v7  ;;  %s1426_s4 = scalar_lea.vmem %s984_s26, 128  ;;  %s1517_s17 = smov [#allocation7]  }
  0x55   : > { %v1700_v20 = vadd.s32 88, %v1674_v7  ;;  %v1703_v21 = vadd.s32 64, %v1674_v7  ;;  %v1706_v22 = vadd.s32 72, %v1674_v7  ;;  %v1709_v23 = vadd.s32 48, %v1674_v7  ;;  %p1427_p0 = scmp.ne.s32.totalorder %s984_s26, %s1426_s4  ;;  %s1430_s12 = sshll.u32 %s1517_s17, 4  ;;  %s1431_s12 = int_to_ptr.vmem [resolvable:$false] %s1430_s12 }
  0x56   : > { %v1296_v6 = vtrunc.f32 %v2665_v4  ;;  %v1712_v24 = vadd.s32 56, %v1674_v7  ;;  %v1715_v26 = vadd.s32 32, %v1674_v7  ;;  %v1718_v27 = vadd.s32 40, %v1674_v7  ;;  %s1432_s5 = scalar_lea.vmem %s1431_s12, 256  ;;  %p1433_p5 = scmp.lt.s32.totalorder %s984_s26, %s1431_s12 }
  0x57   : > { %v1721_v28 = vadd.s32 16, %v1674_v7  ;;  %v1724_v29 = vadd.s32 24, %v1674_v7  ;;  %v1727_v30 = vadd.s32 8, %v1674_v7  ;;  %v1730_v31 = vadd.s32 240, %v1674_v7  ;;  %p1428_p3 = pnand %p1427_p0, %p1631_p12  ;;  %p1434_p7 = scmp.lt.s32.totalorder %s1432_s5, %s1426_s4 }
  0x58   : > { %v1680_v9 = vcvt.f32.s32 %v1296_v6  ;;  %vm521_vm1 = vcmp.lt.s32.totalorder %v1674_v7, 1  ;;  %v1734_v33 = vadd.s32 248, %v1674_v7  ;;  %v1737_v34 = vadd.s32 224, %v1674_v7 }
  0x59   : > { %v1740_v35 = vadd.s32 232, %v1674_v7  ;;  %v1743_v38 = vadd.s32 208, %v1674_v7  ;;  %v1746_v39 = vadd.s32 216, %v1674_v7  ;;  %v1749_v40 = vadd.s32 192, %v1674_v7  ;;  %p1429_p11 = pneg %p1428_p3  ;;  %p1435_p10 = por %p1434_p7, %p1433_p5 }
  0x5a   : > { %2727 = vst [vmem:[#allocation12_spill] sm:$0xff] %v1680_v9  ;;  %v243_v10 = vmul.u32 16, %v1680_v9  ;;  %v244_v11 = vrot.slane %v1680_v9, 7  ;;  %v1752_v41 = vadd.s32 200, %v1674_v7  ;;  %v1755_v42 = vadd.s32 176, %v1674_v7 }
  0x5b   : > { %v1758_v43 = vadd.s32 184, %v1674_v7  ;;  %v1765_v46 = vadd.s32 160, %v1674_v7  ;;  %v1768_v47 = vadd.s32 168, %v1674_v7  ;;  %v1771_v48 = vadd.s32 144, %v1674_v7  ;;  %p1436_p13 = pnand %p1435_p10, %p1429_p11 }
  0x5c   : > { %v245_v17 = vadd.s32 %v244_v11, %v243_v10  ;;  %v1774_v49 = vadd.s32 152, %v1674_v7  ;;  %v1777_v50 = vadd.s32 128, %v1674_v7  ;;  %v1780_v51 = vadd.s32 136, %v1674_v7 }
  0x5e   : > { %vm246_vm0 = vcmp.lt.s32.totalorder %v245_v17, 0  ;;  %v247_v25 = vadd.s32 256, %v245_v17 }
  0x60   : > { %v248_v32 = vsel %vm246_vm0, %v247_v25, %v245_v17 }
  0x61   : > { %v252_v36 = vrot.slane %v248_v32, %v251_v12  ;;  %v256_v37 = vrot.slane %v248_v32, %v255_v13 }
  0x63   : > { %v1760_v44 = vrot.slane %v252_v36, %v251_v12  ;;  %v1762_v45 = vrot.slane %v256_v37, %v251_v12 }
  0x65   : > { %vm294_vm2 = vcmp.eq.s32.totalorder %v225_v14, %v1762_v45  ;;  %vm296_vm3 = vcmp.eq.s32.totalorder %v226_v15, %v1762_v45  ;;  %vm293_vm4 = vcmp.eq.s32.totalorder %v225_v14, %v1760_v44  ;;  %vm295_vm5 = vcmp.eq.s32.totalorder %v226_v15, %v1760_v44 }
  0x66   : > { %v1120_v53 = vsel %vm294_vm2, 1.0, %v2680_v52  ;;  %v1788_v54 = vsel %vm296_vm3, 1.0, %v2680_v52  ;;  %vm1790_vm6 = vmpackc.low %vm296_vm3, %vm294_vm2  ;;  %v1119_v56 = vsel %vm293_vm4, 1.0, %v2680_v52  ;;  %v1796_v57 = vsel %vm295_vm5, 1.0, %v2680_v52 }
  0x67   : > { %v2729_v55 = vsel %vm1790_vm6, 4294967295, %v2728_v55  ;;  %v486_v58 = vrot.slane %v1120_v53, 7  ;;  %v2667_v59 = vrot.slane %v1788_v54, 7  ;;  %1157 = vmatprep.subr.msk.bf16.mxu0 %vm1790_vm6, %v2675_v60  ;;  %v485_v61 = vrot.slane %v1119_v56, 7  ;;  %vm1803_vm7 = vmpackc.low %vm295_vm5, %vm293_vm4 }
  0x68   : > { %2730 = vst [vmem:[#allocation13_spill] sm:$0xff] %v2729_v55  ;;  %v2666_v62 = vrot.slane %v1796_v57, 7  ;;  %v2732_v63 = vsel %vm1803_vm7, 4294967295, %v2731_v63  ;;  %1159 = vmatpush1.bf16.msk.msra.mxu0 %vm1803_vm7, %v2675_v60  ;;  %vm290_vm8 = vcmp.eq.s32.totalorder %v1691_v16, %v1762_v45  ;;  %vm292_vm9 = vcmp.eq.s32.totalorder %v1694_v18, %v1762_v45 }
  0x69   : > { %2733 = vst [vmem:[#allocation14_spill] sm:$0xff] %v2732_v63  ;;  %vm289_vm10 = vcmp.eq.s32.totalorder %v1691_v16, %v1760_v44  ;;  %vm291_vm11 = vcmp.eq.s32.totalorder %v1694_v18, %v1760_v44  ;;  %v1116_v0 = vsel %vm290_vm8, 1.0, %v2680_v52  ;;  %v1118_v1 = vsel %vm292_vm9, 1.0, %v2680_v52  ;;  %vm1820_vm12 = vmpackc.low %vm292_vm9, %vm290_vm8 }
  0x6a   : > { %v1115_v6 = vsel %vm289_vm10, 1.0, %v2680_v52  ;;  %v1117_v10 = vsel %vm291_vm11, 1.0, %v2680_v52  ;;  %v482_v11 = vrot.slane %v1116_v0, 7  ;;  %v484_v12 = vrot.slane %v1118_v1, 7  ;;  %1161 = vmatprep.subr.msk.bf16.mxu0 %vm1820_vm12, %v2675_v60  ;;  %vm1829_vm13 = vmpackc.low %vm291_vm11, %vm289_vm10 }
  0x6b   : > { %v481_v13 = vrot.slane %v1115_v6, 7  ;;  %v483_v14 = vrot.slane %v1117_v10, 7  ;;  %v555_v16 = vsel %vm521_vm1, %v486_v58, %v2667_v59  ;;  %v554_v17 = vsel %vm521_vm1, %v485_v61, %v2666_v62 }
  0x6c   : > { %vm286_vm14 = vcmp.eq.s32.totalorder %v1697_v19, %v1762_v45  ;;  %vm288_vm15 = vcmp.eq.s32.totalorder %v1700_v20, %v1762_v45  ;;  %1163 = vmatpush1.bf16.msk.msra.mxu0 %vm1829_vm13, %v2675_v60  ;;  %v557_v18 = vsel %vm521_vm1, %v484_v12, %v486_v58  ;;  %vm285_vm2 = vcmp.eq.s32.totalorder %v1697_v19, %v1760_v44 }
  0x6d   : > { %v556_v25 = vsel %vm521_vm1, %v483_v14, %v485_v61  ;;  %v1112_v32 = vsel %vm286_vm14, 1.0, %v2680_v52  ;;  %v1114_v36 = vsel %vm288_vm15, 1.0, %v2680_v52  ;;  %vm1854_vm0 = vmpackc.low %vm288_vm15, %vm286_vm14  ;;  %v1858_v53 = vpack.c.bf16 %v555_v16, %v557_v18 }
  0x6e   : > { %v1860_v56 = vpack.c.bf16 %v554_v17, %v556_v25  ;;  %v478_v0 = vrot.slane %v1112_v32, 7  ;;  %v480_v1 = vrot.slane %v1114_v36, 7  ;;  %1165 = vmatprep.subr.msk.bf16.mxu0 %vm1854_vm0, %v2675_v60  ;;  %vm287_vm3 = vcmp.eq.s32.totalorder %v1700_v20, %v1760_v44 }
  0x6f   : > { %2740 = vst [vmem:[#allocation15_spill] sm:$0xff] %v1858_v53  ;;  %v559_v58 = vsel %vm521_vm1, %v482_v11, %v484_v12  ;;  %v558_v61 = vsel %vm521_vm1, %v481_v13, %v483_v14  ;;  %742 = vmatprep.subr.bf16.mxu1 %v1858_v53  ;;  %v1111_v6 = vsel %vm285_vm2, 1.0, %v2680_v52  ;;  %v1113_v10 = vsel %vm287_vm3, 1.0, %v2680_v52  ;;  %vm1876_vm4 = vmpackc.low %vm287_vm3, %vm285_vm2 }
  0x70   : > { %2741 = vst [vmem:[#allocation16_spill] sm:$0xff] %v1860_v56  ;;  %v561_v19 = vsel %vm521_vm1, %v480_v1, %v482_v11  ;;  %vm282_vm5 = vcmp.eq.s32.totalorder %v1703_v21, %v1762_v45  ;;  %743 = vmatpush1.bf16.msra.mxu1 %v1860_v56  ;;  %v477_v20 = vrot.slane %v1111_v6, 7  ;;  %v479_v12 = vrot.slane %v1113_v10, 7  ;;  %1167 = vmatpush1.bf16.msk.msra.mxu0 %vm1876_vm4, %v2675_v60 }
  0x71   : > { %v1888_v14 = vpack.c.bf16 %v559_v58, %v561_v19  ;;  %vm284_vm8 = vcmp.eq.s32.totalorder %v1706_v22, %v1762_v45  ;;  %v1108_v17 = vsel %vm282_vm5, 1.0, %v2680_v52  ;;  %vm281_vm10 = vcmp.eq.s32.totalorder %v1703_v21, %v1760_v44 }
  0x72   : > { %v1110_v11 = vsel %vm284_vm8, 1.0, %v2680_v52  ;;  %vm1894_vm9 = vmpackc.low %vm284_vm8, %vm282_vm5  ;;  %vm283_vm11 = vcmp.eq.s32.totalorder %v1706_v22, %v1760_v44  ;;  %v560_v25 = vsel %vm521_vm1, %v479_v12, %v481_v13  ;;  %v474_v32 = vrot.slane %v1108_v17, 7 }
  0x73   : > { %744 = vmatprep.subr.bf16.mxu1 %v1888_v14  ;;  %v476_v36 = vrot.slane %v1110_v11, 7  ;;  %1169 = vmatprep.subr.msk.bf16.mxu0 %vm1894_vm9, %v2675_v60  ;;  %v1107_v58 = vsel %vm281_vm10, 1.0, %v2680_v52  ;;  %vm1909_vm14 = vmpackc.low %vm283_vm11, %vm281_vm10  ;;  %v1913_v21 = vpack.c.bf16 %v558_v61, %v560_v25  ;;  %v1109_v22 = vsel %vm283_vm11, 1.0, %v2680_v52 }
  0x74   : > { %v473_v10 = vrot.slane %v1107_v58, 7  ;;  %v563_v13 = vsel %vm521_vm1, %v478_v0, %v480_v1  ;;  %v475_v19 = vrot.slane %v1109_v22, 7  ;;  %1171 = vmatpush1.bf16.msk.msra.mxu0 %vm1909_vm14, %v2675_v60  ;;  %v562_v11 = vsel %vm521_vm1, %v477_v20, %v479_v12 }
  0x75   : > { %v565_v17 = vsel %vm521_vm1, %v476_v36, %v478_v0  ;;  %vm278_vm15 = vcmp.eq.s32.totalorder %v1709_v23, %v1762_v45  ;;  %745 = vmatpush1.bf16.msra.mxu1 %v1913_v21  ;;  %vm280_vm2 = vcmp.eq.s32.totalorder %v1712_v24, %v1762_v45  ;;  %vm277_vm3 = vcmp.eq.s32.totalorder %v1709_v23, %v1760_v44 }
  0x76   : > { %v1928_v61 = vpack.c.bf16 %v563_v13, %v565_v17  ;;  %v1104_v1 = vsel %vm278_vm15, 1.0, %v2680_v52  ;;  %v564_v0 = vsel %vm521_vm1, %v475_v19, %v477_v20  ;;  %v1106_v12 = vsel %vm280_vm2, 1.0, %v2680_v52  ;;  %vm1938_vm5 = vmpackc.low %vm280_vm2, %vm278_vm15 }
  0x77   : > { %v470_v25 = vrot.slane %v1104_v1, 7  ;;  %vm279_vm8 = vcmp.eq.s32.totalorder %v1712_v24, %v1760_v44  ;;  %v1945_v22 = vpack.c.bf16 %v562_v11, %v564_v0  ;;  %v472_v13 = vrot.slane %v1106_v12, 7  ;;  %1173 = vmatprep.subr.msk.bf16.mxu0 %vm1938_vm5, %v2675_v60 }
  0x78   : > { %746 = vmatprep.subr.bf16.mxu1 %v1928_v61  ;;  %v1103_v23 = vsel %vm277_vm3, 1.0, %v2680_v52  ;;  %v1105_v20 = vsel %vm279_vm8, 1.0, %v2680_v52  ;;  %vm1952_vm10 = vmpackc.low %vm279_vm8, %vm277_vm3  ;;  %v567_v24 = vsel %vm521_vm1, %v474_v32, %v476_v36  ;;  %v566_v11 = vsel %vm521_vm1, %v473_v10, %v475_v19 }
  0x79   : > { %v469_v1 = vrot.slane %v1103_v23, 7  ;;  %v471_v4 = vrot.slane %v1105_v20, 7  ;;  %1175 = vmatpush1.bf16.msk.msra.mxu0 %vm1952_vm10, %v2675_v60  ;;  %747 = vmatpush1.bf16.msra.mxu1 %v1945_v22  ;;  %v569_v0 = vsel %vm521_vm1, %v472_v13, %v474_v32  ;;  %vm274_vm11 = vcmp.eq.s32.totalorder %v1715_v26, %v1762_v45  ;;  %v2848_v32 = vld [vmem:[#allocation14_spill] sm:$0xff] }
  0x7a   : > { %vm276_vm15 = vcmp.eq.s32.totalorder %v1718_v27, %v1762_v45  ;;  %vm273_vm2 = vcmp.eq.s32.totalorder %v1715_v26, %v1760_v44  ;;  %v1972_v12 = vpack.c.bf16 %v567_v24, %v569_v0  ;;  %v1100_v19 = vsel %vm274_vm11, 1.0, %v2680_v52  ;;  %v2851_v24 = vld [vmem:[#allocation16_spill] sm:$0xff] }
  0x7b   : > { %v568_v36 = vsel %vm521_vm1, %v471_v4, %v473_v10  ;;  %v1102_v23 = vsel %vm276_vm15, 1.0, %v2680_v52  ;;  %vm1978_vm3 = vmpackc.low %vm276_vm15, %vm274_vm11  ;;  %v466_v62 = vrot.slane %v1100_v19, 7  ;;  %vm275_vm8 = vcmp.eq.s32.totalorder %v1718_v27, %v1760_v44 }
  0x7c   : > { %v1982_v20 = vpack.c.bf16 %v566_v11, %v568_v36  ;;  %v468_v59 = vrot.slane %v1102_v23, 7  ;;  %1177 = vmatprep.subr.msk.bf16.mxu0 %vm1978_vm3, %v2675_v60  ;;  %748 = vmatprep.subr.bf16.mxu1 %v1972_v12  ;;  %v1099_v26 = vsel %vm273_vm2, 1.0, %v2680_v52  ;;  %v1101_v10 = vsel %vm275_vm8, 1.0, %v2680_v52  ;;  %vm1992_vm11 = vmpackc.low %vm275_vm8, %vm273_vm2 }
  0x7d   : > { %v571_v11 = vsel %vm521_vm1, %v470_v25, %v472_v13  ;;  %v570_v0 = vsel %vm521_vm1, %v469_v1, %v471_v4  ;;  %v465_v36 = vrot.slane %v1099_v26, 7  ;;  %v467_v27 = vrot.slane %v1101_v10, 7  ;;  %1179 = vmatpush1.bf16.msk.msra.mxu0 %vm1992_vm11, %v2675_v60 }
  0x7e   : > { %749 = vmatpush1.bf16.msra.mxu1 %v1982_v20  ;;  %v573_v19 = vsel %vm521_vm1, %v468_v59, %v470_v25  ;;  %vm270_vm15 = vcmp.eq.s32.totalorder %v1721_v28, %v1762_v45  ;;  %vm272_vm2 = vcmp.eq.s32.totalorder %v1724_v29, %v1762_v45  ;;  %vm269_vm8 = vcmp.eq.s32.totalorder %v1721_v28, %v1760_v44 }
  0x7f   : > { %v2008_v23 = vpack.c.bf16 %v571_v11, %v573_v19  ;;  %v1096_v4 = vsel %vm270_vm15, 1.0, %v2680_v52  ;;  %v572_v13 = vsel %vm521_vm1, %v467_v27, %v469_v1  ;;  %v1098_v26 = vsel %vm272_vm2, 1.0, %v2680_v52  ;;  %vm2018_vm7 = vmpackc.low %vm272_vm2, %vm270_vm15 }
  0x80   : > { %v462_v10 = vrot.slane %v1096_v4, 7  ;;  %v2756_v25 = vmov 0  ;;  %vm271_vm6 = vcmp.eq.s32.totalorder %v1724_v29, %v1760_v44  ;;  %v2025_v11 = vpack.c.bf16 %v570_v0, %v572_v13  ;;  %1181 = vmatprep.subr.msk.bf16.mxu0 %vm2018_vm7, %v2675_v60 }
  0x81   : > { %v2757_v25 = vsel %vm2018_vm7, 4294967295, %v2756_v25  ;;  %750 = vmatprep.subr.bf16.mxu1 %v2008_v23  ;;  %v464_v19 = vrot.slane %v1098_v26, 7  ;;  %v1095_v28 = vsel %vm269_vm8, 1.0, %v2680_v52  ;;  %v1097_v1 = vsel %vm271_vm6, 1.0, %v2680_v52  ;;  %vm2032_vm15 = vmpackc.low %vm271_vm6, %vm269_vm8 }
  0x82   : > { %v2758_v4 = vmov 0  ;;  %v461_v2 = vrot.slane %v1095_v28, 7  ;;  %v463_v9 = vrot.slane %v1097_v1, 7  ;;  %1183 = vmatpush1.bf16.msk.msra.mxu0 %vm2032_vm15, %v2675_v60  ;;  %v575_v29 = vsel %vm521_vm1, %v466_v62, %v468_v59  ;;  %751 = vmatpush1.bf16.msra.mxu1 %v2025_v11 }
  0x83   : > { %v2759_v4 = vsel %vm2032_vm15, 4294967295, %v2758_v4  ;;  %v574_v0 = vsel %vm521_vm1, %v465_v36, %v467_v27  ;;  %v577_v13 = vsel %vm521_vm1, %v464_v19, %v466_v62  ;;  %vm266_vm6 = vcmp.eq.s32.totalorder %v1674_v7, %v1762_v45 }
  0x84   : > { %vm268_vm2 = vcmp.eq.s32.totalorder %v1727_v30, %v1762_v45  ;;  %vm265_vm8 = vcmp.eq.s32.totalorder %v1674_v7, %v1760_v44  ;;  %v2052_v26 = vpack.c.bf16 %v575_v29, %v577_v13  ;;  %v576_v59 = vsel %vm521_vm1, %v463_v9, %v465_v36 }
  0x85   : > { %v1092_v27 = vsel %vm266_vm6, 1.0, %v2680_v52  ;;  %v1094_v28 = vsel %vm268_vm2, 1.0, %v2680_v52  ;;  %vm2058_vm15 = vmpackc.low %vm268_vm2, %vm266_vm6  ;;  %v2760_v62 = vmov 0  ;;  %v2062_v1 = vpack.c.bf16 %v574_v0, %v576_v59 }
  0x86   : > { %v2761_v62 = vsel %vm2058_vm15, 4294967295, %v2760_v62  ;;  %v458_v60 = vrot.slane %v1092_v27, 7  ;;  %v460_v56 = vrot.slane %v1094_v28, 7  ;;  %v2763_v53 = vmov 1.0|1.0   ;;  %752 = vmatprep.subr.bf16.mxu1 %v2052_v26 }
  0x87   : > { %2762 = vst [vmem:[#allocation17_spill] sm:$0xff] %v2062_v1  ;;  %1185 = vmatprep.subr.msk.bf16.mxu0 %vm2058_vm15, %v2763_v53  ;;  %vm267_vm7 = vcmp.eq.s32.totalorder %v1727_v30, %v1760_v44  ;;  %v1091_v36 = vsel %vm265_vm8, 1.0, %v2680_v52  ;;  %v2764_v13 = vmov 0  ;;  %v579_v0 = vsel %vm521_vm1, %v462_v10, %v464_v19  ;;  %753 = vmatpush1.bf16.msra.mxu1 %v2062_v1 }
  0x88   : > { %v1093_v29 = vsel %vm267_vm7, 1.0, %v2680_v52  ;;  %vm2072_vm6 = vmpackc.low %vm267_vm7, %vm265_vm8  ;;  %v578_v59 = vsel %vm521_vm1, %v461_v2, %v463_v9  ;;  %v457_v27 = vrot.slane %v1091_v36, 7  ;;  %v581_v28 = vsel %vm521_vm1, %v460_v56, %v462_v10 }
  0x89   : > { %v2765_v13 = vsel %vm2072_vm6, 4294967295, %v2764_v13  ;;  %v459_v30 = vrot.slane %v1093_v29, 7  ;;  %1187 = vmatpush1.bf16.msk.msra.mxu0 %vm2072_vm6, %v2763_v53  ;;  %vm326_vm7 = vcmp.eq.s32.totalorder %v1730_v31, %v1762_v45  ;;  %v2088_v52 = vpack.c.bf16 %v579_v0, %v581_v28 }
  0x8a   : > { %vm328_vm2 = vcmp.eq.s32.totalorder %v1734_v33, %v1762_v45  ;;  %v2766_v9 = vmov 0.0   ;;  %vm325_vm8 = vcmp.eq.s32.totalorder %v1730_v31, %v1760_v44  ;;  %v2767_v10 = vmov 0 }
  0x8b   : > { %v1152_v19 = vsel %vm326_vm7, 1.0, %v2766_v9  ;;  %v580_v36 = vsel %vm521_vm1, %v459_v30, %v461_v2  ;;  %v1154_v29 = vsel %vm328_vm2, 1.0, %v2766_v9  ;;  %vm2098_vm6 = vmpackc.low %vm328_vm2, %vm326_vm7  ;;  %vm327_vm15 = vcmp.eq.s32.totalorder %v1734_v33, %v1760_v44  ;;  %754 = vmatprep.subr.bf16.mxu1 %v2088_v52 }
  0x8c   : > { %v518_v63 = vrot.slane %v1152_v19, 7  ;;  %v2768_v10 = vsel %vm2098_vm6, 4294967295, %v2767_v10  ;;  %v2105_v0 = vpack.c.bf16 %v578_v59, %v580_v36  ;;  %v520_v28 = vrot.slane %v1154_v29, 7  ;;  %1189 = vmatprep.subr.msk.bf16.mxu0 %vm2098_vm6, %v2763_v53  ;;  %vm2112_vm7 = vmpackc.low %vm327_vm15, %vm325_vm8 }
  0x8d   : > { %v1151_v2 = vsel %vm325_vm8, 1.0, %v2766_v9  ;;  %v1153_v31 = vsel %vm327_vm15, 1.0, %v2766_v9  ;;  %v2770_v19 = vmov 0  ;;  %1191 = vmatpush2.bf16.msk.msra.mxu0 %vm2112_vm7, %v2763_v53  ;;  %v583_v33 = vsel %vm521_vm1, %v458_v60, %v460_v56 }
  0x8e   : > { %2769 = vst [vmem:[#allocation18_spill] sm:$0xff] %v2105_v0  ;;  %v2771_v19 = vsel %vm2112_vm7, 4294967295, %v2770_v19  ;;  %v517_v55 = vrot.slane %v1151_v2, 7  ;;  %v519_v1 = vrot.slane %v1153_v31, 7  ;;  %v582_v59 = vsel %vm521_vm1, %v457_v27, %v459_v30  ;;  %755 = vmatpush1.bf16.msra.mxu1 %v2105_v0 }
  0x8f   : > { %2772 = vst [vmem:[#allocation19_spill] sm:$0xff] %v2771_v19  ;;  %v585_v36 = vsel %vm521_vm1, %v520_v28, %v458_v60  ;;  %vm322_vm15 = vcmp.eq.s32.totalorder %v1737_v34, %v1762_v45  ;;  %vm324_vm2 = vcmp.eq.s32.totalorder %v1740_v35, %v1762_v45  ;;  %vm321_vm8 = vcmp.eq.s32.totalorder %v1737_v34, %v1760_v44 }
  0x90   : > { %v2132_v29 = vpack.c.bf16 %v583_v33, %v585_v36  ;;  %v584_v56 = vsel %vm521_vm1, %v519_v1, %v457_v27  ;;  %v1148_v30 = vsel %vm322_vm15, 1.0, %v2766_v9  ;;  %v1150_v2 = vsel %vm324_vm2, 1.0, %v2766_v9  ;;  %vm2138_vm7 = vmpackc.low %vm324_vm2, %vm322_vm15 }
  0x91   : > { %v2773_v60 = vmov 0  ;;  %v2142_v31 = vpack.c.bf16 %v582_v59, %v584_v56  ;;  %v514_v0 = vrot.slane %v1148_v30, 7  ;;  %v516_v19 = vrot.slane %v1150_v2, 7  ;;  %1193 = vmatprep.subr.msk.bf16.mxu0 %vm2138_vm7, %v2763_v53 }
  0x92   : > { %v2774_v60 = vsel %vm2138_vm7, 4294967295, %v2773_v60  ;;  %vm323_vm6 = vcmp.eq.s32.totalorder %v1740_v35, %v1760_v44  ;;  %756 = vmatprep.subr.bf16.mxu1 %v2132_v29  ;;  %v1147_v34 = vsel %vm321_vm8, 1.0, %v2766_v9  ;;  %v2776_v33 = vmov 0 }
  0x93   : > { %2775 = vst [vmem:[#allocation20_spill] sm:$0xff] %v2142_v31  ;;  %v1149_v27 = vsel %vm323_vm6, 1.0, %v2766_v9  ;;  %vm2152_vm15 = vmpackc.low %vm323_vm6, %vm321_vm8  ;;  %v523_v59 = vsel %vm521_vm1, %v518_v63, %v520_v28  ;;  %v522_v36 = vsel %vm521_vm1, %v517_v55, %v519_v1  ;;  %757 = vmatpush1.bf16.msra.mxu1 %v2142_v31  ;;  %v513_v56 = vrot.slane %v1147_v34, 7 }
  0x94   : > { %v2777_v33 = vsel %vm2152_vm15, 4294967295, %v2776_v33  ;;  %v515_v35 = vrot.slane %v1149_v27, 7  ;;  %1195 = vmatpush2.bf16.msk.msra.mxu0 %vm2152_vm15, %v2763_v53  ;;  %v525_v30 = vsel %vm521_vm1, %v516_v19, %v518_v63  ;;  %vm318_vm6 = vcmp.eq.s32.totalorder %v1743_v38, %v1762_v45 }
  0x95   : > { %2778 = vst [vmem:[#allocation21_spill] sm:$0xff] %v2777_v33  ;;  %v2168_v2 = vpack.c.bf16 %v523_v59, %v525_v30  ;;  %vm320_vm2 = vcmp.eq.s32.totalorder %v1746_v39, %v1762_v45  ;;  %v1144_v1 = vsel %vm318_vm6, 1.0, %v2766_v9  ;;  %vm317_vm8 = vcmp.eq.s32.totalorder %v1743_v38, %v1760_v44  ;;  %v2822_v15 = vld [vmem:[#allocation18_spill] sm:$0xff] }
  0x96   : > { %v524_v28 = vsel %vm521_vm1, %v515_v35, %v517_v55  ;;  %v1146_v34 = vsel %vm320_vm2, 1.0, %v2766_v9  ;;  %v510_v27 = vrot.slane %v1144_v1, 7  ;;  %vm2178_vm15 = vmpackc.low %vm320_vm2, %vm318_vm6  ;;  %v2779_v63 = vmov 0 }
  0x97   : > { %v2780_v63 = vsel %vm2178_vm15, 4294967295, %v2779_v63  ;;  %vm319_vm7 = vcmp.eq.s32.totalorder %v1746_v39, %v1760_v44  ;;  %758 = vmatprep.subr.bf16.mxu1 %v2168_v2  ;;  %v2185_v59 = vpack.c.bf16 %v522_v36, %v524_v28  ;;  %v512_v30 = vrot.slane %v1146_v34, 7  ;;  %1197 = vmatprep.subr.msk.bf16.mxu0 %vm2178_vm15, %v2763_v53 }
  0x98   : > { %v1143_v38 = vsel %vm317_vm8, 1.0, %v2766_v9  ;;  %v1145_v55 = vsel %vm319_vm7, 1.0, %v2766_v9  ;;  %vm2192_vm6 = vmpackc.low %vm319_vm7, %vm317_vm8  ;;  %v2782_v1 = vmov 0  ;;  %v527_v39 = vsel %vm521_vm1, %v514_v0, %v516_v19 }
  0x99   : > { %2781 = vst [vmem:[#allocation22_spill] sm:$0xff] %v2185_v59  ;;  %v2783_v1 = vsel %vm2192_vm6, 4294967295, %v2782_v1  ;;  %v509_v31 = vrot.slane %v1143_v38, 7  ;;  %v511_v33 = vrot.slane %v1145_v55, 7  ;;  %1199 = vmatpush2.bf16.msk.msra.mxu0 %vm2192_vm6, %v2763_v53  ;;  %v526_v36 = vsel %vm521_vm1, %v513_v56, %v515_v35  ;;  %759 = vmatpush2.bf16.msra.mxu1 %v2185_v59 }
  0x9a   : > { %2784 = vst [vmem:[#allocation23_spill] sm:$0xff] %v2783_v1  ;;  %v529_v28 = vsel %vm521_vm1, %v512_v30, %v514_v0  ;;  %vm314_vm7 = vcmp.eq.s32.totalorder %v1749_v40, %v1762_v45  ;;  %vm316_vm2 = vcmp.eq.s32.totalorder %v1752_v41, %v1762_v45  ;;  %vm313_vm8 = vcmp.eq.s32.totalorder %v1749_v40, %v1760_v44  ;;  %v2826_v16 = vld [vmem:[#allocation20_spill] sm:$0xff] }
  0x9b   : > { %v2212_v34 = vpack.c.bf16 %v527_v39, %v529_v28  ;;  %v528_v19 = vsel %vm521_vm1, %v511_v33, %v513_v56  ;;  %v1140_v35 = vsel %vm314_vm7, 1.0, %v2766_v9  ;;  %v1142_v38 = vsel %vm316_vm2, 1.0, %v2766_v9  ;;  %vm2218_vm6 = vmpackc.low %vm316_vm2, %vm314_vm7 }
  0x9c   : > { %v2785_v0 = vmov 0  ;;  %v2222_v55 = vpack.c.bf16 %v526_v36, %v528_v19  ;;  %v506_v59 = vrot.slane %v1140_v35, 7  ;;  %v508_v1 = vrot.slane %v1142_v38, 7  ;;  %1201 = vmatprep.subr.msk.bf16.mxu0 %vm2218_vm6, %v2763_v53  ;;  %v2824_v37 = vld [vmem:[#allocation21_spill] sm:$0xff] }
  0x9d   : > { %v2786_v0 = vsel %vm2218_vm6, 4294967295, %v2785_v0  ;;  %vm315_vm15 = vcmp.eq.s32.totalorder %v1752_v41, %v1760_v44  ;;  %760 = vmatprep.subr.bf16.mxu1 %v2212_v34  ;;  %v1139_v40 = vsel %vm313_vm8, 1.0, %v2766_v9  ;;  %v2788_v39 = vmov 0 }
  0x9e   : > { %2787 = vst [vmem:[#allocation24_spill] sm:$0xff] %v2222_v55  ;;  %v1141_v56 = vsel %vm315_vm15, 1.0, %v2766_v9  ;;  %vm2232_vm7 = vmpackc.low %vm315_vm15, %vm313_vm8  ;;  %v531_v36 = vsel %vm521_vm1, %v510_v27, %v512_v30  ;;  %v530_v28 = vsel %vm521_vm1, %v509_v31, %v511_v33  ;;  %761 = vmatpush2.bf16.msra.mxu1 %v2222_v55  ;;  %v505_v19 = vrot.slane %v1139_v40, 7 }
  0x9f   : > { %v2789_v39 = vsel %vm2232_vm7, 4294967295, %v2788_v39  ;;  %v507_v41 = vrot.slane %v1141_v56, 7  ;;  %1203 = vmatpush2.bf16.msk.msra.mxu0 %vm2232_vm7, %v2763_v53  ;;  %v533_v35 = vsel %vm521_vm1, %v508_v1, %v510_v27  ;;  %vm310_vm15 = vcmp.eq.s32.totalorder %v1755_v42, %v1762_v45 }
  0xa0   : > { %2790 = vst [vmem:[#allocation25_spill] sm:$0xff] %v2789_v39  ;;  %v2248_v38 = vpack.c.bf16 %v531_v36, %v533_v35  ;;  %vm312_vm2 = vcmp.eq.s32.totalorder %v1758_v43, %v1762_v45  ;;  %v1136_v33 = vsel %vm310_vm15, 1.0, %v2766_v9  ;;  %vm309_vm8 = vcmp.eq.s32.totalorder %v1755_v42, %v1760_v44 }
  0xa1   : > { %v532_v30 = vsel %vm521_vm1, %v507_v41, %v509_v31  ;;  %v1138_v40 = vsel %vm312_vm2, 1.0, %v2766_v9  ;;  %v502_v56 = vrot.slane %v1136_v33, 7  ;;  %vm2258_vm7 = vmpackc.low %vm312_vm2, %vm310_vm15  ;;  %v2791_v27 = vmov 0 }
  0xa2   : > { %v2792_v27 = vsel %vm2258_vm7, 4294967295, %v2791_v27  ;;  %vm311_vm6 = vcmp.eq.s32.totalorder %v1758_v43, %v1760_v44  ;;  %762 = vmatprep.subr.bf16.mxu1 %v2248_v38  ;;  %v2265_v36 = vpack.c.bf16 %v530_v28, %v532_v30  ;;  %v504_v35 = vrot.slane %v1138_v40, 7  ;;  %1205 = vmatprep.subr.msk.bf16.mxu0 %vm2258_vm7, %v2763_v53 }
  0xa3   : > { %v1135_v42 = vsel %vm309_vm8, 1.0, %v2766_v9  ;;  %v1137_v31 = vsel %vm311_vm6, 1.0, %v2766_v9  ;;  %vm2272_vm15 = vmpackc.low %vm311_vm6, %vm309_vm8  ;;  %v2794_v33 = vmov 0  ;;  %v535_v43 = vsel %vm521_vm1, %v506_v59, %v508_v1 }
  0xa4   : > { %2793 = vst [vmem:[#allocation26_spill] sm:$0xff] %v2265_v36  ;;  %v2795_v33 = vsel %vm2272_vm15, 4294967295, %v2794_v33  ;;  %v501_v55 = vrot.slane %v1135_v42, 7  ;;  %v503_v39 = vrot.slane %v1137_v31, 7  ;;  %1207 = vmatpush2.bf16.msk.msra.mxu0 %vm2272_vm15, %v2763_v53  ;;  %v534_v28 = vsel %vm521_vm1, %v505_v19, %v507_v41  ;;  %763 = vmatpush2.bf16.msra.mxu1 %v2265_v36 }
  0xa5   : > { %2796 = vst [vmem:[#allocation27_spill] sm:$0xff] %v2795_v33  ;;  %v537_v30 = vsel %vm521_vm1, %v504_v35, %v506_v59  ;;  %vm306_vm6 = vcmp.eq.s32.totalorder %v1765_v46, %v1762_v45  ;;  %vm308_vm2 = vcmp.eq.s32.totalorder %v1768_v47, %v1762_v45  ;;  %vm305_vm8 = vcmp.eq.s32.totalorder %v1765_v46, %v1760_v44  ;;  %v2834_v6 = vld [vmem:[#allocation24_spill] sm:$0xff] }
  0xa6   : > { %v2292_v40 = vpack.c.bf16 %v535_v43, %v537_v30  ;;  %v536_v1 = vsel %vm521_vm1, %v503_v39, %v505_v19  ;;  %v1132_v41 = vsel %vm306_vm6, 1.0, %v2766_v9  ;;  %v1134_v42 = vsel %vm308_vm2, 1.0, %v2766_v9  ;;  %vm2298_vm15 = vmpackc.low %vm308_vm2, %vm306_vm6 }
  0xa7   : > { %v2797_v59 = vmov 0  ;;  %v2302_v31 = vpack.c.bf16 %v534_v28, %v536_v1  ;;  %v498_v36 = vrot.slane %v1132_v41, 7  ;;  %v500_v33 = vrot.slane %v1134_v42, 7  ;;  %1209 = vmatprep.subr.msk.bf16.mxu0 %vm2298_vm15, %v2763_v53  ;;  %v2832_v18 = vld [vmem:[#allocation25_spill] sm:$0xff] }
  0xa8   : > { %v2798_v59 = vsel %vm2298_vm15, 4294967295, %v2797_v59  ;;  %vm307_vm7 = vcmp.eq.s32.totalorder %v1768_v47, %v1760_v44  ;;  %764 = vmatprep.subr.bf16.mxu1 %v2292_v40  ;;  %v1131_v46 = vsel %vm305_vm8, 1.0, %v2766_v9  ;;  %v2800_v43 = vmov 0 }
  0xa9   : > { %2799 = vst [vmem:[#allocation28_spill] sm:$0xff] %v2302_v31  ;;  %v1133_v19 = vsel %vm307_vm7, 1.0, %v2766_v9  ;;  %vm2312_vm6 = vmpackc.low %vm307_vm7, %vm305_vm8  ;;  %v539_v28 = vsel %vm521_vm1, %v502_v56, %v504_v35  ;;  %v538_v30 = vsel %vm521_vm1, %v501_v55, %v503_v39  ;;  %765 = vmatpush2.bf16.msra.mxu1 %v2302_v31  ;;  %v497_v1 = vrot.slane %v1131_v46, 7 }
  0xaa   : > { %v2801_v43 = vsel %vm2312_vm6, 4294967295, %v2800_v43  ;;  %v499_v47 = vrot.slane %v1133_v19, 7  ;;  %1211 = vmatpush2.bf16.msk.msra.mxu0 %vm2312_vm6, %v2763_v53  ;;  %v541_v41 = vsel %vm521_vm1, %v500_v33, %v502_v56  ;;  %vm302_vm7 = vcmp.eq.s32.totalorder %v1771_v48, %v1762_v45 }
  0xab   : > { %2802 = vst [vmem:[#allocation29_spill] sm:$0xff] %v2801_v43  ;;  %v2328_v42 = vpack.c.bf16 %v539_v28, %v541_v41  ;;  %vm304_vm2 = vcmp.eq.s32.totalorder %v1774_v49, %v1762_v45  ;;  %v1128_v39 = vsel %vm302_vm7, 1.0, %v2766_v9  ;;  %vm301_vm8 = vcmp.eq.s32.totalorder %v1771_v48, %v1760_v44 }
  0xac   : > { %v540_v35 = vsel %vm521_vm1, %v499_v47, %v501_v55  ;;  %v1130_v46 = vsel %vm304_vm2, 1.0, %v2766_v9  ;;  %v494_v19 = vrot.slane %v1128_v39, 7  ;;  %vm2338_vm6 = vmpackc.low %vm304_vm2, %vm302_vm7  ;;  %v2803_v56 = vmov 0 }
  0xad   : > { %v2804_v56 = vsel %vm2338_vm6, 4294967295, %v2803_v56  ;;  %vm303_vm15 = vcmp.eq.s32.totalorder %v1774_v49, %v1760_v44  ;;  %766 = vmatprep.subr.bf16.mxu1 %v2328_v42  ;;  %v2345_v28 = vpack.c.bf16 %v538_v30, %v540_v35  ;;  %v496_v41 = vrot.slane %v1130_v46, 7  ;;  %1213 = vmatprep.subr.msk.bf16.mxu0 %vm2338_vm6, %v2763_v53 }
  0xae   : > { %v1127_v48 = vsel %vm301_vm8, 1.0, %v2766_v9  ;;  %v1129_v55 = vsel %vm303_vm15, 1.0, %v2766_v9  ;;  %vm2352_vm7 = vmpackc.low %vm303_vm15, %vm301_vm8  ;;  %v2806_v39 = vmov 0  ;;  %v543_v49 = vsel %vm521_vm1, %v498_v36, %v500_v33 }
  0xaf   : > { %2805 = vst [vmem:[#allocation30_spill] sm:$0xff] %v2345_v28  ;;  %v2807_v39 = vsel %vm2352_vm7, 4294967295, %v2806_v39  ;;  %v493_v31 = vrot.slane %v1127_v48, 7  ;;  %v495_v43 = vrot.slane %v1129_v55, 7  ;;  %1215 = vmatpush2.bf16.msk.msra.mxu0 %vm2352_vm7, %v2763_v53  ;;  %v542_v30 = vsel %vm521_vm1, %v497_v1, %v499_v47  ;;  %767 = vmatpush2.bf16.msra.mxu1 %v2345_v28 }
  0xb0   : > { %v545_v35 = vsel %vm521_vm1, %v496_v41, %v498_v36  ;;  %vm298_vm15 = vcmp.eq.s32.totalorder %v1777_v50, %v1762_v45  ;;  %vm300_vm2 = vcmp.eq.s32.totalorder %v1780_v51, %v1762_v45  ;;  %vm297_vm8 = vcmp.eq.s32.totalorder %v1777_v50, %v1760_v44 }
  0xb1   : > { %v2372_v46 = vpack.c.bf16 %v543_v49, %v545_v35  ;;  %v544_v33 = vsel %vm521_vm1, %v495_v43, %v497_v1  ;;  %v1124_v47 = vsel %vm298_vm15, 1.0, %v2766_v9  ;;  %v1126_v48 = vsel %vm300_vm2, 1.0, %v2766_v9  ;;  %vm2378_vm7 = vmpackc.low %vm300_vm2, %vm298_vm15 }
  0xb2   : > { %v2382_v55 = vpack.c.bf16 %v542_v30, %v544_v33  ;;  %v490_v28 = vrot.slane %v1124_v47, 7  ;;  %v492_v45 = vrot.slane %v1126_v48, 7  ;;  %1217 = vmatprep.subr.msk.bf16.mxu0 %vm2378_vm7, %v2763_v53  ;;  %vm299_vm6 = vcmp.eq.s32.totalorder %v1780_v51, %v1760_v44  ;;  %v2840_v58 = vld [vmem:[#allocation29_spill] sm:$0xff] }
  0xb3   : > { %768 = vmatprep.subr.bf16.mxu1 %v2372_v46  ;;  %v1123_v50 = vsel %vm297_vm8, 1.0, %v2766_v9  ;;  %v1125_v1 = vsel %vm299_vm6, 1.0, %v2766_v9  ;;  %vm2392_vm15 = vmpackc.low %vm299_vm6, %vm297_vm8  ;;  %v547_v30 = vsel %vm521_vm1, %v494_v19, %v496_v41  ;;  %v546_v35 = vsel %vm521_vm1, %v493_v31, %v495_v43 }
  0xb4   : > { %769 = vmatpush2.bf16.msra.mxu1 %v2382_v55  ;;  %v489_v33 = vrot.slane %v1123_v50, 7  ;;  %v491_v44 = vrot.slane %v1125_v1, 7  ;;  %1219 = vmatpush2.bf16.msk.msra.mxu0 %vm2392_vm15, %v2763_v53  ;;  %v549_v51 = vsel %vm521_vm1, %v492_v45, %v494_v19  ;;  %v551_v9 = vsel %vm521_vm1, %v490_v28, %v492_v45 }
  0xb5   : > { %v2408_v47 = vpack.c.bf16 %v547_v30, %v549_v51  ;;  %1223 = vmatprep.subr.msk.bf16.mxu0 %vm1820_vm12, %v2763_v53  ;;  %v2812_v43 = vrot.slane %v1788_v54, 7  ;;  %v2813_v45 = vrot.slane %v1796_v57, 7  ;;  %vm2815_vm12 = vnez %v2759_v4  ;;  %v2820_v57 = vld [vmem:[#allocation19_spill] sm:$0xff] }
  0xb6   : > { %v548_v48 = vsel %vm521_vm1, %v491_v44, %v493_v31  ;;  %v550_v19 = vsel %vm521_vm1, %v489_v33, %v491_v44  ;;  %vm2833_vm6 = vnez %v2832_v18  ;;  %vm2835_vm2 = vnez %v2792_v27  ;;  %v2845_v17 = vld [vmem:[#allocation30_spill] sm:$0xff] }
  0xb7   : > { %v553_v41 = vsel %vm521_vm1, %v2812_v43, %v490_v28  ;;  %v552_v1 = vsel %vm521_vm1, %v2813_v45, %v489_v33  ;;  %770 = vmatprep.subr.bf16.mxu1 %v2408_v47  ;;  %v2428_v3 = vpack.c.bf16 %v546_v35, %v548_v48  ;;  %662 = vmatmul.mubr.bf16.vlgmr.msra.gmra.mxu0 %v1670_v5  ;;  %v696_v48 = vsub.s32 2, %v1674_v7 }
  0xb8   : > { %v2419_v50 = vpack.c.bf16 %v551_v9, %v553_v41  ;;  %1225 = vmatpush1.bf16.msk.msra.mxu0 %vm1829_vm13, %v2763_v53  ;;  %845 = vmatprep.mubr.bf16.mxu0 %v1678_v8  ;;  %v2436_v54 = vpack.c.bf16 %v550_v19, %v552_v1  ;;  %vm2814_vm1 = vnez %v2757_v25  ;;  %vm2816_vm13 = vnez %v2761_v62 }
  0xb9   : > { %771 = vmatpush2.bf16.msra.mxu1 %v2428_v3  ;;  %1227 = vmatprep.subr.msk.bf16.mxu0 %vm1854_vm0, %v2763_v53  ;;  %vm2817_vm0 = vnez %v2765_v13  ;;  %v692_v9 = vsub.s32 0, %v1674_v7 }
  0xba   : > { %772 = vmatprep.subr.bf16.mxu1 %v2419_v50 }
  0xbc   : > { %1229 = vmatpush1.bf16.msk.msra.mxu0 %vm1876_vm4, %v2763_v53  ;;  %vm2819_vm4 = vnez %v2768_v10  ;;  %v2852_v10 = vld [vmem:[#allocation12_spill] sm:$0xff] }
  0xbd   : > { %773 = vmatpush2.bf16.msra.mxu1 %v2436_v54  ;;  %1231 = vmatprep.subr.msk.bf16.mxu0 %vm1894_vm9, %v2763_v53  ;;  %vm2821_vm9 = vnez %v2820_v57 }
  0xbe   : > { %893 = vmatprep.subr.bf16.mxu1 %v1888_v14  ;;  %v2830_v14 = vld [vmem:[#allocation22_spill] sm:$0xff] }
  0xc0   : > { %775 = vmatmul.mubr.bf16.vlgmr.msra.gmra.mxu1 %v1670_v5  ;;  %1233 = vmatpush1.bf16.msk.msra.mxu0 %vm1909_vm14, %v2763_v53  ;;  %vm2823_vm14 = vnez %v2774_v60 }
  0xc1   : > { %894 = vmatpush1.bf16.msra.mxu1 %v1913_v21  ;;  %1235 = vmatprep.subr.msk.bf16.mxu0 %vm1938_vm5, %v2763_v53  ;;  %vm2825_vm5 = vnez %v2824_v37  ;;  %v2836_v21 = vld [vmem:[#allocation27_spill] sm:$0xff] }
  0xc2   : > { %895 = vmatprep.subr.bf16.mxu1 %v1928_v61  ;;  %925 = vmatprep.mubr.bf16.mxu1 %v1678_v8  ;;  %v2818_v8 = vld [vmem:[#allocation17_spill] sm:$0xff]  ;;  %vm2837_vm8 = vnez %v2836_v21  ;;  %v2838_v61 = vld [vmem:[#allocation26_spill] sm:$0xff] }
  0xc4   : > { %1237 = vmatpush1.bf16.msk.msra.mxu0 %vm1952_vm10, %v2763_v53  ;;  %vm2827_vm10 = vnez %v2780_v63  ;;  %v1516_v63 = vmov 0  }
  0xc5   : > { %896 = vmatpush1.bf16.msra.mxu1 %v1945_v22  ;;  %1239 = vmatprep.subr.msk.bf16.mxu0 %vm1978_vm3, %v2763_v53  ;;  %v2842_v22 = vld [vmem:[#allocation28_spill] sm:$0xff] }
  0xc6   : > { %897 = vmatprep.subr.bf16.mxu1 %v1972_v12  ;;  %v2846_v12 = vld [vmem:[#allocation13_spill] sm:$0xff] }
  0xc8   : > { %1241 = vmatpush1.bf16.msk.msra.mxu0 %vm1992_vm11, %v2763_v53  ;;  %vm2831_vm11 = vnez %v2786_v0 }
  0xc9   : > { %898 = vmatpush1.bf16.msra.mxu1 %v1982_v20  ;;  %1243 = vmatprep.subr.msk.bf16.mxu0 %vm2814_vm1, %v2763_v53  ;;  %vm2839_vm1 = vnez %v2798_v59  ;;  %v2850_v20 = vld [vmem:[#allocation15_spill] sm:$0xff] }
  0xca   : > { %899 = vmatprep.subr.bf16.mxu1 %v2008_v23 }
  0xcc   : > { %1245 = vmatpush1.bf16.msk.msra.mxu0 %vm2815_vm12, %v2763_v53  ;;  %vm2841_vm12 = vnez %v2840_v58 }
  0xcd   : > { %900 = vmatpush1.bf16.msra.mxu1 %v2025_v11  ;;  %1247 = vmatprep.subr.msk.bf16.mxu0 %vm2816_vm13, %v2763_v53  ;;  %vm2843_vm13 = vnez %v2804_v56 }
  0xce   : > { %901 = vmatprep.subr.bf16.mxu1 %v2052_v26 }
  0xd0   : > { %1249 = vmatpush1.bf16.msk.msra.mxu0 %vm2817_vm0, %v2763_v53  ;;  %vm2844_vm0 = vnez %v2807_v39 }
  0xd1   : > { %902 = vmatpush1.bf16.msra.mxu1 %v2818_v8  ;;  %1251 = vmatprep.subr.msk.bf16.mxu0 %vm2819_vm4, %v2763_v53  ;;  %vm2847_vm4 = vnez %v2846_v12 }
  0xd2   : > { %903 = vmatprep.subr.bf16.mxu1 %v2088_v52  ;;  %v2828_v52 = vld [vmem:[#allocation23_spill] sm:$0xff] }
  0xd3   : > { %vm2829_vm3 = vnez %v2828_v52 }
  0xd4   : > { %1253 = vmatpush1.bf16.msk.msra.mxu0 %vm2821_vm9, %v2763_v53  ;;  %vm2849_vm9 = vnez %v2848_v32 }
  0xd5   : > { %904 = vmatpush1.bf16.msra.mxu1 %v2822_v15  ;;  %1255 = vmatprep.subr.msk.bf16.mxu0 %vm2823_vm14, %v2763_v53 }
  0xd6   : > { %905 = vmatprep.subr.bf16.mxu1 %v2132_v29  ;;  %v2853_v29 = vld [vmem:[#allocation11_spill] sm:$0xff] }
  0xd7   : > { %v2854_v60 = vfloor.f32 %v2853_v29 }
  0xd8   : > { %1257 = vmatpush2.bf16.msk.msra.mxu0 %vm2825_vm5, %v2763_v53 }
  0xd9   : > { %906 = vmatpush1.bf16.msra.mxu1 %v2826_v16  ;;  %1259 = vmatprep.subr.msk.bf16.mxu0 %vm2827_vm10, %v2763_v53 }
  0xda   : > { %907 = vmatprep.subr.bf16.mxu1 %v2168_v2  ;;  %v205_v2 = vsub.f32 %v2853_v29, %v2854_v60 }
  0xdc   : > { %1261 = vmatpush2.bf16.msk.msra.mxu0 %vm2829_vm3, %v2763_v53  ;;  %v206_v0 = vsub.f32 1.0, %v205_v2 }
  0xdd   : > { %908 = vmatpush1.bf16.msra.mxu1 %v2830_v14  ;;  %1263 = vmatprep.subr.msk.bf16.mxu0 %vm2831_vm11, %v2763_v53 }
  0xde   : > { %909 = vmatprep.subr.bf16.mxu1 %v2212_v34  ;;  %v671_v59 = vrot.slane %v206_v0, 7 }
  0xe0   : > { %1265 = vmatpush2.bf16.msk.msra.mxu0 %vm2833_vm6, %v2763_v53 }
  0xe1   : > { %910 = vmatpush2.bf16.msra.mxu1 %v2834_v6  ;;  %1267 = vmatprep.subr.msk.bf16.mxu0 %vm2835_vm2, %v2763_v53 }
  0xe2   : > { %911 = vmatprep.subr.bf16.mxu1 %v2248_v38 }
  0xe4   : > { %1269 = vmatpush2.bf16.msk.msra.mxu0 %vm2837_vm8, %v2763_v53 }
  0xe5   : > { %912 = vmatpush2.bf16.msra.mxu1 %v2838_v61  ;;  %1271 = vmatprep.subr.msk.bf16.mxu0 %vm2839_vm1, %v2763_v53 }
  0xe6   : > { %913 = vmatprep.subr.bf16.mxu1 %v2292_v40 }
  0xe8   : > { %1273 = vmatpush2.bf16.msk.msra.mxu0 %vm2841_vm12, %v2763_v53 }
  0xe9   : > { %914 = vmatpush2.bf16.msra.mxu1 %v2842_v22  ;;  %1275 = vmatprep.subr.msk.bf16.mxu0 %vm2843_vm13, %v2763_v53 }
  0xea   : > { %915 = vmatprep.subr.bf16.mxu1 %v2328_v42 }
  0xec   : > { %1277 = vmatpush2.bf16.msk.msra.mxu0 %vm2844_vm0, %v2763_v53 }
  0xed   : > { %916 = vmatpush2.bf16.msra.mxu1 %v2845_v17  ;;  %1279 = vmatprep.subr.msk.bf16.mxu0 %vm2378_vm7, %v2763_v53  ;;  %vm675_vm7 = vcmp.ge.s32.totalorder %v2852_v10, 0 }
  0xee   : > { %917 = vmatprep.subr.bf16.mxu1 %v2372_v46  ;;  %v678_v34 = vsel %vm675_vm7, 1, %v1516_v63  ;;  %v855_v46 = vrot.slane %v205_v2, 7 }
  0xef   : > { %v1220_v38 = vrot.slane %v678_v34, 9 }
  0xf0   : > { %1281 = vmatpush2.bf16.msk.msra.mxu0 %vm2392_vm15, %v2763_v53  ;;  %vm676_vm15 = vcmp.le.s32.totalorder %v2852_v10, 15  ;;  %v856_v35 = vrot.slane %v855_v46, 2 }
  0xf1   : > { %918 = vmatpush2.bf16.msra.mxu1 %v2382_v55  ;;  %1283 = vmatprep.subr.msk.bf16.mxu0 %vm2847_vm4, %v2763_v53  ;;  %v683_v27 = vsel %vm676_vm15, 1, %v1516_v63  ;;  %vm2580_vm10 = vmand %vm675_vm7, %vm676_vm15  ;;  %vm2584_vm3 = vcmp.ne.s32.totalorder %v1220_v38, 0  ;;  %v672_v55 = vrot.slane %v671_v59, 2 }
  0xf2   : > { %919 = vmatprep.subr.bf16.mxu1 %v2408_v47  ;;  %v1221_v31 = vrot.slane %v683_v27, 9  ;;  %vm682_vm6 = vmand %vm2580_vm10, %vm2584_vm3  ;;  %v858_v51 = vmul.f32 %v856_v35, %v206_v0  ;;  %v934_v41 = vmul.f32 %v856_v35, %v205_v2 }
  0xf3   : > { %v674_v33 = vmul.f32 %v672_v55, %v206_v0  ;;  %v783_v44 = vmul.f32 %v672_v55, %v205_v2 }
  0xf4   : > { %1285 = vmatpush2.bf16.msk.msra.mxu0 %vm2849_vm9, %v2763_v53  ;;  %vm686_vm2 = vcmp.ne.s32.totalorder %v1221_v31, 0 }
  0xf5   : > { %920 = vmatpush2.bf16.msra.mxu1 %v2428_v3  ;;  %vm687_vm12 = vmand %vm682_vm6, %vm686_vm2 }
  0xf6   : > { %921 = vmatprep.subr.bf16.mxu1 %v2419_v50  ;;  %v688_v47 = vsel %vm687_vm12, %v674_v33, 0.0 }
  0xf7   : > { %846 = vmatmul.mubr.bf16.vlgmr.msra.gmra.mxu0 %v1670_v5  ;;  %v693_v19 = vrot.slane %v688_v47, %v692_v9 }
  0xf9   : > { %922 = vmatpush2.bf16.msra.mxu1 %v2436_v54  ;;  %v697_v54 = vrot.slane %v688_v47, %v696_v48  ;;  %v703_v37 = vrot.slane %v693_v19, %v692_v9 }
  0xfa   : > { %923 = vmatprep.subr.bf16.mxu1 %v2850_v20 }
  0xfb   : > { %v707_v6 = vrot.slane %v697_v54, %v692_v9 }
  0xfd   : > { %924 = vmatpush2.bf16.msra.mxu1 %v2851_v24 }
 0x100   : > { %926 = vmatmul.mubr.bf16.vlgmr.msra.gmra.mxu1 %v1670_v5  ;;  %v208_v5 = vadd.s32 1, %v2852_v10 }
 0x102   : > { %vm784_vm14 = vcmp.ge.s32.totalorder %v208_v5, 0  ;;  %vm785_vm5 = vcmp.le.s32.totalorder %v208_v5, 15 }
 0x103   : > { %v859_v40 = vsel %vm784_vm14, 1, %v1516_v63  ;;  %v864_v39 = vsel %vm785_vm5, 1, %v1516_v63  ;;  %vm2588_vm11 = vmand %vm784_vm14, %vm785_vm5 }
 0x104   : > { %v1286_v28 = vrot.slane %v859_v40, 9  ;;  %v1287_v49 = vrot.slane %v864_v39, 9  ;;  %vm787_vm1 = vmand %vm2588_vm11, %vm2584_vm3 }
 0x105   : > { %vm788_vm4 = vmand %vm787_vm1, %vm686_vm2 }
 0x106   : > { %vm2596_vm8 = vcmp.ne.s32.totalorder %v1286_v28, 0  ;;  %vm867_vm0 = vcmp.ne.s32.totalorder %v1287_v49, 0  ;;  %v789_v43 = vsel %vm788_vm4, %v783_v44, 0.0 }
 0x107   : > { %vm863_vm13 = vmand %vm2580_vm10, %vm2596_vm8  ;;  %v794_v45 = vrot.slane %v789_v43, %v692_v9  ;;  %v798_v1 = vrot.slane %v789_v43, %v696_v48 }
 0x108   : > { %vm935_vm9 = vmand %vm2588_vm11, %vm2596_vm8 }
 0x109   : > { %vm868_vm7 = vmand %vm863_vm13, %vm867_vm0  ;;  %v804_v16 = vrot.slane %v794_v45, %v692_v9  ;;  %v808_v52 = vrot.slane %v798_v1, %v692_v9 }
 0x10a   : > { %vm936_vm15 = vmand %vm935_vm9, %vm867_vm0  ;;  %v869_v50 = vsel %vm868_vm7, %v858_v51, 0.0 }
 0x10b   : > { %v937_v3 = vsel %vm936_vm15, %v934_v41, 0.0  ;;  %v874_v57 = vrot.slane %v869_v50, %v692_v9  ;;  %v878_v15 = vrot.slane %v869_v50, %v696_v48 }
 0x10c   : > { %v942_v18 = vrot.slane %v937_v3, %v692_v9  ;;  %v946_v58 = vrot.slane %v937_v3, %v696_v48 }
 0x10d   : > { %v884_v21 = vrot.slane %v874_v57, %v692_v9  ;;  %v888_v61 = vrot.slane %v878_v15, %v692_v9 }
 0x10e   : > { %v952_v32 = vrot.slane %v942_v18, %v692_v9 }
 0x177   : > { %v2566_v23 = vpop.f32.mrf.mxu0 }
 0x178   : > { %v708_v22 = vmul.f32 %v703_v37, %v2566_v23 }
 0x179   : > { %v2568_v25 = vpop.f32.mrf.mxu0 }
 0x17a   : > { %v709_v24 = vmul.f32 %v707_v6, %v2568_v25 }
 0x17b   : > { %v667_v11 = vpop.f32.mrf.mxu0 }
 0x17d   : > { %v668_v53 = vpop.f32.mrf.mxu0 }
 0x180   : > { %v2570_v4 = vpop.f32.mrf.mxu1 }
 0x181   : > { %v809_v17 = vmul.f32 %v804_v16, %v2570_v4 }
 0x182   : > { %v2572_v26 = vpop.f32.mrf.mxu1 }
 0x183   : > { %v810_v12 = vmul.f32 %v808_v52, %v2572_v26  ;;  %v811_v10 = vadd.f32 %v809_v17, %v708_v22 }
 0x184   : > { %v780_v62 = vpop.f32.mrf.mxu1 }
 0x185   : > { %v956_v62 = vrot.slane %v946_v58, %v692_v9  ;;  %v812_v29 = vadd.f32 %v810_v12, %v709_v24 }
 0x186   : > { %v781_v13 = vpop.f32.mrf.mxu1 }
 0x1b7   : > { %v847_v8 = vpop.f32.mrf.mxu0 }
 0x1b8   : > { %v889_v11 = vmul.f32 %v884_v21, %v847_v8 }
 0x1b9   : > { %v849_v14 = vpop.f32.mrf.mxu0 }
 0x1ba   : > { %v890_v53 = vmul.f32 %v888_v61, %v849_v14  ;;  %v891_v23 = vadd.f32 %v889_v11, %v811_v10 }
 0x1bb   : > { %v851_v7 = vpop.f32.mrf.mxu0 }
 0x1bc   : > { %v892_v5 = vadd.f32 %v890_v53, %v812_v29 }
 0x1bd   : > { %v852_v20 = vpop.f32.mrf.mxu0 }
 0x1c0   : > { %v927_v13 = vpop.f32.mrf.mxu1 }
 0x1c1   : > { %v957_v60 = vmul.f32 %v952_v32, %v927_v13 }
 0x1c2   : > { %v929_v2 = vpop.f32.mrf.mxu1 }
 0x1c3   : > { %v958_v4 = vmul.f32 %v956_v62, %v929_v2  ;;  %v959_v63 = vadd.f32 %v957_v60, %v891_v23 }
 0x1c4   : > { %v931_v26 = vpop.f32.mrf.mxu1 }
 0x1c5   : > { %v960_v34 = vadd.f32 %v958_v4, %v892_v5 }
 0x1c6   : > { %v932_v25 = vpop.f32.mrf.mxu1 }
 0x1c7   : > { %v963_v0 = vcombine.low %v959_v63, %v960_v34 }
 0x1c9   : > { %965 = vst [vmem:[%s198_s25] sm:$0xff] %v963_v0 }
 0x1ca   : > { %1439 = shalt.err (!%p1436_p13)
}
 0x1cb   : > { %s1440_s6 = scalar_lea.hbm %s981_s30, 128  ;;  %s1444_s15 = scalar_lea.hbm %s2661_s2, 256 }
 0x1cc   : > { %p1441_p1 = scmp.ne.s32.totalorder %s981_s30, %s1440_s6  ;;  %p1445_p6 = scmp.lt.s32.totalorder %s981_s30, %s2661_s2 }
 0x1cd   : > { %p1446_p8 = scmp.lt.s32.totalorder %s1444_s15, %s1440_s6 }
 0x1ce   : > { %p1442_p4 = pnand %p1441_p1, %p1631_p12 }
 0x1cf   : > { %p1447_p9 = por %p1446_p8, %p1445_p6 }
 0x1d0   : > { %p1443_p2 = pneg %p1442_p4 }
 0x1d2   : > { %p1448_p0 = pnand %p1447_p9, %p1443_p2 }
 0x1d4   : > { %1451 = shalt.err (!%p1448_p0)
}
 0x1d5   : > { %1302 = dma.vmem_to_hbm [thread:$0]  (%p1631_p12), %s984_s26, 128, %s981_s30, %s967_s3  }
 0x1d6 PF: > { %s995_s24 = sand.u32 1, %s1490_s9   ;;  %p2863_p3 = scmp.ne.s32.totalorder %s2716_s19, 0 }
 0x1d7   : > { %p2864_p11 = scmp.ge.s32.totalorder %s1510_s14, 2  ;;  %s996_s18 = scalar_lea.sflag [#allocation4], %s995_s24 }
 0x1d9   : > { %p1313_p5 = pnand %p2864_p11, %p2863_p3 }
 0x1db   : > { %p1314_p7 = pneg %p1313_p5 }
 0x1dd   : > { %1485 = dma.done.wait (%p1314_p7), %s996_s18, 128  }
 0x1de   : > { %1487 = vsyncadd (%p1314_p7), %s996_s18, 4294967168  ;;  %s19_s14 = sadd.s32 1, %s1510_s14   ;;  %s2865_s9 = smov %s1494_s10 }
 0x1df   : > { %p16_p10 = scmp.ge.s32.totalorder %s19_s14, 4   ;;  %s2866_s10 = smov %s1498_s11 }
 0x1e0   : > { %s2867_s11 = smov %s1637_s22  ;;  %s2868_s12 = smov %s1506_s13 }
 0x1e1   : > { %s2869_s13 = smov %s2871_s28  ;;  %18 = sbr.rel (!%p16_p10) target bundleno = 7 (0x7), region = 78 }
 0x1e6   :  { %1001 = vsyncpa [#allocation3], 1 }
 0x1e7   :  { %1003 = vsyncpa [#allocation3 + $0x1], 1 }
 0x1e8   :  { %1004 = vsyncpa [#allocation6], 1 }
 0x1e9   :  { %1005 = vsyncpa [#allocation4], 1 }
 0x1ea   :  { %1007 = vsyncpa [#allocation4 + $0x1], 1 }

// kernel: tpu_custom_call.1
= control target key start
LH: loop header
LB: loop body
LE: loop exit
PB: predicated region body
PF: predicated region fallthrough
CT: control target
= control target key end

     0   :  { %7 = vsyncpa [#allocation3], 0  ;;  %s2674_s0 = inlined_call_operand.hbm [shape: f32[2,2,256], index: 0, kind: input, shape index: {}]   ;;  %s2675_s1 = inlined_call_operand.hbm [shape: bf16[2,4,256], index: 1, kind: input, shape index: {}]   ;;  %s2676_s2 = inlined_call_operand.hbm [shape: f32[2,4,256], index: 2, kind: output, shape index: {}]  }
   0x1   :  { %9 = vsyncpa [#allocation3 + $0x1], 0 }
   0x2   :  { %10 = vsyncpa [#allocation6], 0 }
   0x3   :  { %12 = vsyncpa [#allocation6 + $0x1], 0 }
   0x4   :  { %13 = vsyncpa [#allocation4], 0 }
   0x5   :  { %15 = vsyncpa [#allocation4 + $0x1], 0  ;;  %s1561_s9 = smov 0   ;;  %s1563_s10 = smov 0  }
   0x6   :  { %s1565_s11 = smov 0   ;;  %s1567_s12 = smov 0  }
   0x7   :  { %s1569_s13 = smov 0   ;;  %s1571_s14 = smov 0  }
   0x8 LB: > { %s1107_s15 = sadd.s32 4294967295, %s1538_s14   ;;  %s1108_s16 = sadd.s32 4294967294, %s1538_s14   ;;  %s1538_s14 = sphi %s1571_s14, %s21_s14   ;;  %s1534_s13 = sphi %s1569_s13, %s2874_s13   ;;  %s1530_s12 = sphi %s1567_s12, %s2873_s12   ;;  %s1526_s11 = sphi %s1565_s11, %s2872_s11   ;;  %s1522_s10 = sphi %s1563_s10, %s2871_s10   ;;  %s1518_s9 = sphi %s1561_s9, %s2870_s9  }
   0x9   : > { %s33_s17 = sadd.s32 1, %s1534_s13  ;;  %s42_s18 = sadd.s32 1, %s1526_s11 }
   0xa   : > { %p35_p0 = scmp.ge.s32.totalorder %s33_s17, 2  ;;  %p49_p1 = scmp.ne.s32.totalorder %s1526_s11, %s1522_s10 }
   0xb   : > { %p50_p2 = scmp.eq.s32.totalorder %s1538_s14, 0  ;;  %p55_p3 = scmp.ne.s32.totalorder %s1522_s10, %s1518_s9 }
   0xc   : > { %s2876_s17 = smov (%p35_p0, %s33_s17), 0  ;;  %p56_p5 = scmp.eq.s32.totalorder %s1107_s15, 0 }
   0xd   : > { %p1602_p4 = por %p50_p2, %p49_p1  ;;  %s37_s20 = ssub.s32 %s1534_s13, %s2876_s17 }
   0xe   : > { %p107_p6 = scmp.eq.s32.totalorder %s1107_s15, 1  ;;  %p40_p7 = scmp.eq.s32.totalorder %s37_s20, 0 }
   0xf   : > { %p1608_p8 = por %p56_p5, %p55_p3  ;;  %p113_p10 = scmp.eq.s32.totalorder %s1108_s16, 1 }
  0x10   : > { %p1612_p9 = por %p107_p6, %p49_p1  ;;  %p1345_p13 = scmp.lt.s32.totalorder %s1538_s14, 2 }
  0x11   : > { %s1617_s23 = scalar_select %p40_p7, %s1526_s11, %s42_s18  }
  0x12   : > { %p1619_p11 = por %p113_p10, %p55_p3  ;;  %s1626_s25 = sand.u32 1, %s1526_s11  }
  0x13   : > { %s1111_s26 = sshll.u32 %s1626_s25, 2  ;;  %s1323_s27 = sshll.u32 %s1534_s13, 6 }
  0x14   : > { %s145_s30 = scalar_lea.hbm %s2674_s0, %s1323_s27  ;;  %s137_s3 = scalar_lea.vmem [#allocation2], %s1111_s26 }
  0x15   : > { %s147_s4 = sshll.u32 %s137_s3, 4  ;;  %p1635_p0 = pnand %p1345_p13, %p1602_p4  ;;  %s148_s4 = int_to_ptr.vmem [resolvable:$true] %s147_s4 }
  0x16   : > { %p1117_p1 = scmp.ge.s32.totalorder %s1538_s14, 1  ;;  %p171_p2 = scmp.lt.s32.totalorder %s1538_s14, 3 }
  0x17   : > { %s134_s6 = scalar_lea.sflag [#allocation3], %s1626_s25  ;;  %p1400_p3 = pneg %p1635_p0 }
  0x18   : > { %s1411_s7 = scalar_lea.vmem %s148_s4, 64  ;;  %s1540_s8 = smov [#allocation2]  }
  0x19   : > { %p1412_p5 = scmp.ne.s32.totalorder %s148_s4, %s1411_s7  ;;  %s1416_s15 = sshll.u32 %s1540_s8, 4  ;;  %s1417_s15 = int_to_ptr.vmem [resolvable:$false] %s1416_s15 }
  0x1a   : > { %s1418_s16 = scalar_lea.vmem %s1417_s15, 128  ;;  %p1419_p4 = scmp.lt.s32.totalorder %s148_s4, %s1417_s15 }
  0x1b   : > { %p1414_p6 = pnand %p1412_p5, %p1400_p3  ;;  %p1420_p10 = scmp.lt.s32.totalorder %s1418_s16, %s1411_s7 }
  0x1d   : > { %p1415_p7 = pneg %p1414_p6  ;;  %p1421_p13 = por %p1420_p10, %p1419_p4 }
  0x1f   : > { %p1422_p12 = pnand %p1421_p13, %p1415_p7 }
  0x21   : > { %1425 = shalt.err (!%p1422_p12)
}
  0x22   : > { %1337 = dma.hbm_to_vmem [thread:$0]  (!%p1635_p0), %s145_s30, 64, %s148_s4, %s134_s6  }
  0x23   : > { %p1653_p5 = pnand %p1117_p1, %p171_p2  ;;  %s164_s28 = scalar_lea.hbm %s2675_s1, %s1323_s27 }
  0x24   : > { %s158_s29 = scalar_lea.vmem [#allocation5], %s1111_s26  ;;  %s155_s7 = scalar_lea.sflag [#allocation6], %s1626_s25 }
  0x25   : > { %s166_s3 = sshll.u32 %s158_s29, 4  ;;  %s1541_s30 = smov [#allocation5]   ;;  %s167_s3 = int_to_ptr.vmem [resolvable:$true] %s166_s3 }
  0x26   : > { %s1439_s8 = scalar_lea.vmem %s167_s3, 64  ;;  %s1444_s4 = sshll.u32 %s1541_s30, 4  ;;  %s1445_s4 = int_to_ptr.vmem [resolvable:$false] %s1444_s4 }
  0x27   : > { %p1440_p12 = scmp.ne.s32.totalorder %s167_s3, %s1439_s8  ;;  %s1446_s6 = scalar_lea.vmem %s1445_s4, 128 }
  0x28   : > { %p1447_p1 = scmp.lt.s32.totalorder %s167_s3, %s1445_s4  ;;  %p1448_p2 = scmp.lt.s32.totalorder %s1446_s6, %s1439_s8 }
  0x29   : > { %p1442_p6 = pnand %p1440_p12, %p1400_p3 }
  0x2a   : > { %p1449_p4 = por %p1448_p2, %p1447_p1 }
  0x2b   : > { %p1443_p7 = pneg %p1442_p6 }
  0x2d   : > { %p1450_p10 = pnand %p1449_p4, %p1443_p7 }
  0x2f   : > { %1453 = shalt.err (!%p1450_p10)
}
  0x30   : > { %1340 = dma.hbm_to_vmem [thread:$0]  (!%p1635_p0), %s164_s28, 64, %s167_s3, %s155_s7  }
  0x31   : > { %175 = sbr.rel (%p1653_p5) target bundleno = 451 (0x1c3), region = 28 }
  0x36   : > { %s1669_s25 = sand.u32 1, %s1522_s10  }
  0x37   : > { %s1118_s26 = sshll.u32 %s1669_s25, 2  ;;  %s178_s27 = scalar_lea.sflag [#allocation3], %s1669_s25 }
  0x38   : > { %s181_s15 = scalar_lea.vmem [#allocation2], %s1118_s26 }
  0x39   : > { %1505 = dma.done.wait (%p1608_p8), %s178_s27, 64  }
  0x3a   : > { %1507 = vsyncadd (%p1608_p8), %s178_s27, 4294967232  ;;  %s187_s5 = scalar_lea.sflag [#allocation6], %s1669_s25  ;;  %s190_s16 = scalar_lea.vmem [#allocation5], %s1118_s26 }
  0x3b   : > { %1509 = dma.done.wait (%p1608_p8), %s187_s5, 64  }
  0x3c   : > { %1511 = vsyncadd (%p1608_p8), %s187_s5, 4294967232  ;;  %v218_v0 = vld [vmem:[%s181_s15] sm:$0xf]  ;;  %v227_v3 = vlaneseq  ;;  %v2692_v52 = vmov 0.0   ;;  %v2734_v55 = vmov 0  ;;  %v2737_v63 = vmov 0 }
  0x3d   : > { %v219_v1 = vadd.f32 1.0, %v218_v0  ;;  %v1685_v5 = vld.sshfl [vmem:[%s190_s16] sm:$0x33 pattern:$0x76325410]  ;;  %s1120_s21 = sshll.u32 %s1669_s25, 3 }
  0x3e   : > { %v1689_v7 = vshrl.u32 %v227_v3, 7  ;;  %v1693_v8 = vcombine.high %v1685_v5, %v1685_v5  ;;  %v2687_v60 = vmov 1.0|1.0   ;;  %s1325_s18 = sshll.u32 %s1530_s12, 7  ;;  %s215_s19 = scalar_lea.vmem [#allocation7], %s1120_s21 }
  0x3f   : > { %v1682_v2 = vmul.f32 7.5, %v219_v1  ;;  %s1000_s20 = sshll.u32 %s215_s19, 4  ;;  %s998_s3 = scalar_lea.hbm %s2676_s2, %s1325_s18  ;;  %s1001_s20 = int_to_ptr.vmem [resolvable:$true] %s1000_s20 }
  0x40   : > { %678 = vmatprep.mubr.bf16.mxu0 %v1693_v8  ;;  %791 = vmatprep.mubr.bf16.mxu1 %v1693_v8  ;;  %v268_v12 = vsub.s32 1, %v1689_v7  ;;  %v272_v13 = vsub.s32 3, %v1689_v7  ;;  %v242_v14 = vadd.s32 112, %v1689_v7  ;;  %v243_v15 = vadd.s32 120, %v1689_v7  ;;  %s984_s7 = scalar_lea.sflag [#allocation4], %s1669_s25  ;;  %s1454_s8 = scalar_lea.vmem %s1001_s20, 128 }
  0x41   : > { %2732 = vst [vmem:[#allocation11_spill] sm:$0xff] %v1682_v2  ;;  %v2677_v4 = vfloor.f32 %v1682_v2  ;;  %v1706_v16 = vadd.s32 96, %v1689_v7  ;;  %v1709_v18 = vadd.s32 104, %v1689_v7  ;;  %v1712_v19 = vadd.s32 80, %v1689_v7  ;;  %p1455_p8 = scmp.ne.s32.totalorder %s1001_s20, %s1454_s8  ;;  %s1545_s30 = smov [#allocation7]  }
  0x42   : > { %v1715_v20 = vadd.s32 88, %v1689_v7  ;;  %v1718_v21 = vadd.s32 64, %v1689_v7  ;;  %v1721_v22 = vadd.s32 72, %v1689_v7  ;;  %v1724_v23 = vadd.s32 48, %v1689_v7  ;;  %s1458_s12 = sshll.u32 %s1545_s30, 4  ;;  %s1459_s12 = int_to_ptr.vmem [resolvable:$false] %s1458_s12 }
  0x43   : > { %v1326_v6 = vtrunc.f32 %v2677_v4  ;;  %v1727_v24 = vadd.s32 56, %v1689_v7  ;;  %v1730_v26 = vadd.s32 32, %v1689_v7  ;;  %v1733_v27 = vadd.s32 40, %v1689_v7  ;;  %p1456_p0 = pnand %p1455_p8, %p1612_p9  ;;  %s1460_s4 = scalar_lea.vmem %s1459_s12, 256 }
  0x44   : > { %v1736_v28 = vadd.s32 16, %v1689_v7  ;;  %v1739_v29 = vadd.s32 24, %v1689_v7  ;;  %v1742_v30 = vadd.s32 8, %v1689_v7  ;;  %v1745_v31 = vadd.s32 240, %v1689_v7  ;;  %p1461_p13 = scmp.lt.s32.totalorder %s1001_s20, %s1459_s12  ;;  %p1462_p5 = scmp.lt.s32.totalorder %s1460_s4, %s1454_s8 }
  0x45   : > { %v1695_v9 = vcvt.f32.s32 %v1326_v6  ;;  %vm538_vm1 = vcmp.lt.s32.totalorder %v1689_v7, 1  ;;  %v1749_v33 = vadd.s32 248, %v1689_v7  ;;  %v1752_v34 = vadd.s32 224, %v1689_v7  ;;  %p1457_p3 = pneg %p1456_p0 }
  0x46   : > { %v1755_v35 = vadd.s32 232, %v1689_v7  ;;  %v1758_v38 = vadd.s32 208, %v1689_v7  ;;  %v1761_v39 = vadd.s32 216, %v1689_v7  ;;  %v1764_v40 = vadd.s32 192, %v1689_v7  ;;  %p1463_p12 = por %p1462_p5, %p1461_p13 }
  0x47   : > { %2733 = vst [vmem:[#allocation12_spill] sm:$0xff] %v1695_v9  ;;  %v260_v10 = vmul.u32 16, %v1695_v9  ;;  %v261_v11 = vrot.slane %v1695_v9, 7  ;;  %v1767_v41 = vadd.s32 200, %v1689_v7  ;;  %v1770_v42 = vadd.s32 176, %v1689_v7 }
  0x48   : > { %v1773_v43 = vadd.s32 184, %v1689_v7  ;;  %v1780_v46 = vadd.s32 160, %v1689_v7  ;;  %v1783_v47 = vadd.s32 168, %v1689_v7  ;;  %v1786_v48 = vadd.s32 144, %v1689_v7  ;;  %p1464_p6 = pnand %p1463_p12, %p1457_p3 }
  0x49   : > { %v262_v17 = vadd.s32 %v261_v11, %v260_v10  ;;  %v1789_v49 = vadd.s32 152, %v1689_v7  ;;  %v1792_v50 = vadd.s32 128, %v1689_v7  ;;  %v1795_v51 = vadd.s32 136, %v1689_v7 }
  0x4b   : > { %vm263_vm0 = vcmp.lt.s32.totalorder %v262_v17, 0  ;;  %v264_v25 = vadd.s32 256, %v262_v17 }
  0x4d   : > { %v265_v32 = vsel %vm263_vm0, %v264_v25, %v262_v17 }
  0x4e   : > { %v269_v36 = vrot.slane %v265_v32, %v268_v12  ;;  %v273_v37 = vrot.slane %v265_v32, %v272_v13 }
  0x50   : > { %v1775_v44 = vrot.slane %v269_v36, %v268_v12  ;;  %v1777_v45 = vrot.slane %v273_v37, %v268_v12 }
  0x52   : > { %vm311_vm2 = vcmp.eq.s32.totalorder %v242_v14, %v1777_v45  ;;  %vm313_vm3 = vcmp.eq.s32.totalorder %v243_v15, %v1777_v45  ;;  %vm310_vm4 = vcmp.eq.s32.totalorder %v242_v14, %v1775_v44  ;;  %vm312_vm5 = vcmp.eq.s32.totalorder %v243_v15, %v1775_v44 }
  0x53   : > { %v1150_v53 = vsel %vm311_vm2, 1.0, %v2692_v52  ;;  %v1803_v54 = vsel %vm313_vm3, 1.0, %v2692_v52  ;;  %vm1805_vm6 = vmpackc.low %vm313_vm3, %vm311_vm2  ;;  %v1149_v56 = vsel %vm310_vm4, 1.0, %v2692_v52  ;;  %v1811_v57 = vsel %vm312_vm5, 1.0, %v2692_v52 }
  0x54   : > { %v2735_v55 = vsel %vm1805_vm6, 4294967295, %v2734_v55  ;;  %v503_v58 = vrot.slane %v1150_v53, 7  ;;  %v2679_v59 = vrot.slane %v1803_v54, 7  ;;  %1187 = vmatprep.subr.msk.bf16.mxu0 %vm1805_vm6, %v2687_v60  ;;  %v502_v61 = vrot.slane %v1149_v56, 7  ;;  %vm1818_vm7 = vmpackc.low %vm312_vm5, %vm310_vm4 }
  0x55   : > { %2736 = vst [vmem:[#allocation13_spill] sm:$0xff] %v2735_v55  ;;  %v2678_v62 = vrot.slane %v1811_v57, 7  ;;  %v2738_v63 = vsel %vm1818_vm7, 4294967295, %v2737_v63  ;;  %1189 = vmatpush1.bf16.msk.msra.mxu0 %vm1818_vm7, %v2687_v60  ;;  %vm307_vm8 = vcmp.eq.s32.totalorder %v1706_v16, %v1777_v45  ;;  %vm309_vm9 = vcmp.eq.s32.totalorder %v1709_v18, %v1777_v45 }
  0x56   : > { %2739 = vst [vmem:[#allocation14_spill] sm:$0xff] %v2738_v63  ;;  %vm306_vm10 = vcmp.eq.s32.totalorder %v1706_v16, %v1775_v44  ;;  %vm308_vm11 = vcmp.eq.s32.totalorder %v1709_v18, %v1775_v44  ;;  %v1146_v0 = vsel %vm307_vm8, 1.0, %v2692_v52  ;;  %v1148_v1 = vsel %vm309_vm9, 1.0, %v2692_v52  ;;  %vm1835_vm12 = vmpackc.low %vm309_vm9, %vm307_vm8 }
  0x57   : > { %v1145_v6 = vsel %vm306_vm10, 1.0, %v2692_v52  ;;  %v1147_v10 = vsel %vm308_vm11, 1.0, %v2692_v52  ;;  %v499_v11 = vrot.slane %v1146_v0, 7  ;;  %v501_v12 = vrot.slane %v1148_v1, 7  ;;  %1191 = vmatprep.subr.msk.bf16.mxu0 %vm1835_vm12, %v2687_v60  ;;  %vm1844_vm13 = vmpackc.low %vm308_vm11, %vm306_vm10 }
  0x58   : > { %v498_v13 = vrot.slane %v1145_v6, 7  ;;  %v500_v14 = vrot.slane %v1147_v10, 7  ;;  %v572_v16 = vsel %vm538_vm1, %v503_v58, %v2679_v59  ;;  %v571_v17 = vsel %vm538_vm1, %v502_v61, %v2678_v62 }
  0x59   : > { %vm303_vm14 = vcmp.eq.s32.totalorder %v1712_v19, %v1777_v45  ;;  %vm305_vm15 = vcmp.eq.s32.totalorder %v1715_v20, %v1777_v45  ;;  %1193 = vmatpush1.bf16.msk.msra.mxu0 %vm1844_vm13, %v2687_v60  ;;  %v574_v18 = vsel %vm538_vm1, %v501_v12, %v503_v58  ;;  %vm302_vm2 = vcmp.eq.s32.totalorder %v1712_v19, %v1775_v44 }
  0x5a   : > { %v573_v25 = vsel %vm538_vm1, %v500_v14, %v502_v61  ;;  %v1142_v32 = vsel %vm303_vm14, 1.0, %v2692_v52  ;;  %v1144_v36 = vsel %vm305_vm15, 1.0, %v2692_v52  ;;  %vm1869_vm0 = vmpackc.low %vm305_vm15, %vm303_vm14  ;;  %v1873_v53 = vpack.c.bf16 %v572_v16, %v574_v18 }
  0x5b   : > { %v1875_v56 = vpack.c.bf16 %v571_v17, %v573_v25  ;;  %v495_v0 = vrot.slane %v1142_v32, 7  ;;  %v497_v1 = vrot.slane %v1144_v36, 7  ;;  %1195 = vmatprep.subr.msk.bf16.mxu0 %vm1869_vm0, %v2687_v60  ;;  %vm304_vm3 = vcmp.eq.s32.totalorder %v1715_v20, %v1775_v44 }
  0x5c   : > { %2746 = vst [vmem:[#allocation15_spill] sm:$0xff] %v1873_v53  ;;  %v576_v58 = vsel %vm538_vm1, %v499_v11, %v501_v12  ;;  %v575_v61 = vsel %vm538_vm1, %v498_v13, %v500_v14  ;;  %759 = vmatprep.subr.bf16.mxu1 %v1873_v53  ;;  %v1141_v6 = vsel %vm302_vm2, 1.0, %v2692_v52  ;;  %v1143_v10 = vsel %vm304_vm3, 1.0, %v2692_v52  ;;  %vm1891_vm4 = vmpackc.low %vm304_vm3, %vm302_vm2 }
  0x5d   : > { %2747 = vst [vmem:[#allocation16_spill] sm:$0xff] %v1875_v56  ;;  %v578_v19 = vsel %vm538_vm1, %v497_v1, %v499_v11  ;;  %vm299_vm5 = vcmp.eq.s32.totalorder %v1718_v21, %v1777_v45  ;;  %760 = vmatpush1.bf16.msra.mxu1 %v1875_v56  ;;  %v494_v20 = vrot.slane %v1141_v6, 7  ;;  %v496_v12 = vrot.slane %v1143_v10, 7  ;;  %1197 = vmatpush1.bf16.msk.msra.mxu0 %vm1891_vm4, %v2687_v60 }
  0x5e   : > { %v1903_v14 = vpack.c.bf16 %v576_v58, %v578_v19  ;;  %vm301_vm8 = vcmp.eq.s32.totalorder %v1721_v22, %v1777_v45  ;;  %v1138_v17 = vsel %vm299_vm5, 1.0, %v2692_v52  ;;  %vm298_vm10 = vcmp.eq.s32.totalorder %v1718_v21, %v1775_v44 }
  0x5f   : > { %v1140_v11 = vsel %vm301_vm8, 1.0, %v2692_v52  ;;  %vm1909_vm9 = vmpackc.low %vm301_vm8, %vm299_vm5  ;;  %vm300_vm11 = vcmp.eq.s32.totalorder %v1721_v22, %v1775_v44  ;;  %v577_v25 = vsel %vm538_vm1, %v496_v12, %v498_v13  ;;  %v491_v32 = vrot.slane %v1138_v17, 7 }
  0x60   : > { %761 = vmatprep.subr.bf16.mxu1 %v1903_v14  ;;  %v493_v36 = vrot.slane %v1140_v11, 7  ;;  %1199 = vmatprep.subr.msk.bf16.mxu0 %vm1909_vm9, %v2687_v60  ;;  %v1137_v58 = vsel %vm298_vm10, 1.0, %v2692_v52  ;;  %vm1924_vm14 = vmpackc.low %vm300_vm11, %vm298_vm10  ;;  %v1928_v21 = vpack.c.bf16 %v575_v61, %v577_v25  ;;  %v1139_v22 = vsel %vm300_vm11, 1.0, %v2692_v52 }
  0x61   : > { %v490_v10 = vrot.slane %v1137_v58, 7  ;;  %v580_v13 = vsel %vm538_vm1, %v495_v0, %v497_v1  ;;  %v492_v19 = vrot.slane %v1139_v22, 7  ;;  %1201 = vmatpush1.bf16.msk.msra.mxu0 %vm1924_vm14, %v2687_v60  ;;  %v579_v11 = vsel %vm538_vm1, %v494_v20, %v496_v12 }
  0x62   : > { %v582_v17 = vsel %vm538_vm1, %v493_v36, %v495_v0  ;;  %vm295_vm15 = vcmp.eq.s32.totalorder %v1724_v23, %v1777_v45  ;;  %762 = vmatpush1.bf16.msra.mxu1 %v1928_v21  ;;  %vm297_vm2 = vcmp.eq.s32.totalorder %v1727_v24, %v1777_v45  ;;  %vm294_vm3 = vcmp.eq.s32.totalorder %v1724_v23, %v1775_v44 }
  0x63   : > { %v1943_v61 = vpack.c.bf16 %v580_v13, %v582_v17  ;;  %v1134_v1 = vsel %vm295_vm15, 1.0, %v2692_v52  ;;  %v581_v0 = vsel %vm538_vm1, %v492_v19, %v494_v20  ;;  %v1136_v12 = vsel %vm297_vm2, 1.0, %v2692_v52  ;;  %vm1953_vm5 = vmpackc.low %vm297_vm2, %vm295_vm15 }
  0x64   : > { %v487_v25 = vrot.slane %v1134_v1, 7  ;;  %vm296_vm8 = vcmp.eq.s32.totalorder %v1727_v24, %v1775_v44  ;;  %v1960_v22 = vpack.c.bf16 %v579_v11, %v581_v0  ;;  %v489_v13 = vrot.slane %v1136_v12, 7  ;;  %1203 = vmatprep.subr.msk.bf16.mxu0 %vm1953_vm5, %v2687_v60 }
  0x65   : > { %763 = vmatprep.subr.bf16.mxu1 %v1943_v61  ;;  %v1133_v23 = vsel %vm294_vm3, 1.0, %v2692_v52  ;;  %v1135_v20 = vsel %vm296_vm8, 1.0, %v2692_v52  ;;  %vm1967_vm10 = vmpackc.low %vm296_vm8, %vm294_vm3  ;;  %v584_v24 = vsel %vm538_vm1, %v491_v32, %v493_v36  ;;  %v583_v11 = vsel %vm538_vm1, %v490_v10, %v492_v19 }
  0x66   : > { %v486_v1 = vrot.slane %v1133_v23, 7  ;;  %v488_v4 = vrot.slane %v1135_v20, 7  ;;  %1205 = vmatpush1.bf16.msk.msra.mxu0 %vm1967_vm10, %v2687_v60  ;;  %764 = vmatpush1.bf16.msra.mxu1 %v1960_v22  ;;  %v586_v0 = vsel %vm538_vm1, %v489_v13, %v491_v32  ;;  %vm291_vm11 = vcmp.eq.s32.totalorder %v1730_v26, %v1777_v45  ;;  %v2854_v32 = vld [vmem:[#allocation14_spill] sm:$0xff] }
  0x67   : > { %vm293_vm15 = vcmp.eq.s32.totalorder %v1733_v27, %v1777_v45  ;;  %vm290_vm2 = vcmp.eq.s32.totalorder %v1730_v26, %v1775_v44  ;;  %v1987_v12 = vpack.c.bf16 %v584_v24, %v586_v0  ;;  %v1130_v19 = vsel %vm291_vm11, 1.0, %v2692_v52  ;;  %v2857_v24 = vld [vmem:[#allocation16_spill] sm:$0xff] }
  0x68   : > { %v585_v36 = vsel %vm538_vm1, %v488_v4, %v490_v10  ;;  %v1132_v23 = vsel %vm293_vm15, 1.0, %v2692_v52  ;;  %vm1993_vm3 = vmpackc.low %vm293_vm15, %vm291_vm11  ;;  %v483_v62 = vrot.slane %v1130_v19, 7  ;;  %vm292_vm8 = vcmp.eq.s32.totalorder %v1733_v27, %v1775_v44 }
  0x69   : > { %v1997_v20 = vpack.c.bf16 %v583_v11, %v585_v36  ;;  %v485_v59 = vrot.slane %v1132_v23, 7  ;;  %1207 = vmatprep.subr.msk.bf16.mxu0 %vm1993_vm3, %v2687_v60  ;;  %765 = vmatprep.subr.bf16.mxu1 %v1987_v12  ;;  %v1129_v26 = vsel %vm290_vm2, 1.0, %v2692_v52  ;;  %v1131_v10 = vsel %vm292_vm8, 1.0, %v2692_v52  ;;  %vm2007_vm11 = vmpackc.low %vm292_vm8, %vm290_vm2 }
  0x6a   : > { %v588_v11 = vsel %vm538_vm1, %v487_v25, %v489_v13  ;;  %v587_v0 = vsel %vm538_vm1, %v486_v1, %v488_v4  ;;  %v482_v36 = vrot.slane %v1129_v26, 7  ;;  %v484_v27 = vrot.slane %v1131_v10, 7  ;;  %1209 = vmatpush1.bf16.msk.msra.mxu0 %vm2007_vm11, %v2687_v60 }
  0x6b   : > { %766 = vmatpush1.bf16.msra.mxu1 %v1997_v20  ;;  %v590_v19 = vsel %vm538_vm1, %v485_v59, %v487_v25  ;;  %vm287_vm15 = vcmp.eq.s32.totalorder %v1736_v28, %v1777_v45  ;;  %vm289_vm2 = vcmp.eq.s32.totalorder %v1739_v29, %v1777_v45  ;;  %vm286_vm8 = vcmp.eq.s32.totalorder %v1736_v28, %v1775_v44 }
  0x6c   : > { %v2023_v23 = vpack.c.bf16 %v588_v11, %v590_v19  ;;  %v1126_v4 = vsel %vm287_vm15, 1.0, %v2692_v52  ;;  %v589_v13 = vsel %vm538_vm1, %v484_v27, %v486_v1  ;;  %v1128_v26 = vsel %vm289_vm2, 1.0, %v2692_v52  ;;  %vm2033_vm7 = vmpackc.low %vm289_vm2, %vm287_vm15 }
  0x6d   : > { %v479_v10 = vrot.slane %v1126_v4, 7  ;;  %v2762_v25 = vmov 0  ;;  %vm288_vm6 = vcmp.eq.s32.totalorder %v1739_v29, %v1775_v44  ;;  %v2040_v11 = vpack.c.bf16 %v587_v0, %v589_v13  ;;  %1211 = vmatprep.subr.msk.bf16.mxu0 %vm2033_vm7, %v2687_v60 }
  0x6e   : > { %v2763_v25 = vsel %vm2033_vm7, 4294967295, %v2762_v25  ;;  %767 = vmatprep.subr.bf16.mxu1 %v2023_v23  ;;  %v481_v19 = vrot.slane %v1128_v26, 7  ;;  %v1125_v28 = vsel %vm286_vm8, 1.0, %v2692_v52  ;;  %v1127_v1 = vsel %vm288_vm6, 1.0, %v2692_v52  ;;  %vm2047_vm15 = vmpackc.low %vm288_vm6, %vm286_vm8 }
  0x6f   : > { %v2764_v4 = vmov 0  ;;  %v478_v2 = vrot.slane %v1125_v28, 7  ;;  %v480_v9 = vrot.slane %v1127_v1, 7  ;;  %1213 = vmatpush1.bf16.msk.msra.mxu0 %vm2047_vm15, %v2687_v60  ;;  %v592_v29 = vsel %vm538_vm1, %v483_v62, %v485_v59  ;;  %768 = vmatpush1.bf16.msra.mxu1 %v2040_v11 }
  0x70   : > { %v2765_v4 = vsel %vm2047_vm15, 4294967295, %v2764_v4  ;;  %v591_v0 = vsel %vm538_vm1, %v482_v36, %v484_v27  ;;  %v594_v13 = vsel %vm538_vm1, %v481_v19, %v483_v62  ;;  %vm283_vm6 = vcmp.eq.s32.totalorder %v1689_v7, %v1777_v45 }
  0x71   : > { %vm285_vm2 = vcmp.eq.s32.totalorder %v1742_v30, %v1777_v45  ;;  %vm282_vm8 = vcmp.eq.s32.totalorder %v1689_v7, %v1775_v44  ;;  %v2067_v26 = vpack.c.bf16 %v592_v29, %v594_v13  ;;  %v593_v59 = vsel %vm538_vm1, %v480_v9, %v482_v36 }
  0x72   : > { %v1122_v27 = vsel %vm283_vm6, 1.0, %v2692_v52  ;;  %v1124_v28 = vsel %vm285_vm2, 1.0, %v2692_v52  ;;  %vm2073_vm15 = vmpackc.low %vm285_vm2, %vm283_vm6  ;;  %v2766_v62 = vmov 0  ;;  %v2077_v1 = vpack.c.bf16 %v591_v0, %v593_v59 }
  0x73   : > { %v2767_v62 = vsel %vm2073_vm15, 4294967295, %v2766_v62  ;;  %v475_v60 = vrot.slane %v1122_v27, 7  ;;  %v477_v56 = vrot.slane %v1124_v28, 7  ;;  %v2769_v53 = vmov 1.0|1.0   ;;  %769 = vmatprep.subr.bf16.mxu1 %v2067_v26 }
  0x74   : > { %2768 = vst [vmem:[#allocation17_spill] sm:$0xff] %v2077_v1  ;;  %1215 = vmatprep.subr.msk.bf16.mxu0 %vm2073_vm15, %v2769_v53  ;;  %vm284_vm7 = vcmp.eq.s32.totalorder %v1742_v30, %v1775_v44  ;;  %v1121_v36 = vsel %vm282_vm8, 1.0, %v2692_v52  ;;  %v2770_v13 = vmov 0  ;;  %v596_v0 = vsel %vm538_vm1, %v479_v10, %v481_v19  ;;  %770 = vmatpush1.bf16.msra.mxu1 %v2077_v1 }
  0x75   : > { %v1123_v29 = vsel %vm284_vm7, 1.0, %v2692_v52  ;;  %vm2087_vm6 = vmpackc.low %vm284_vm7, %vm282_vm8  ;;  %v595_v59 = vsel %vm538_vm1, %v478_v2, %v480_v9  ;;  %v474_v27 = vrot.slane %v1121_v36, 7  ;;  %v598_v28 = vsel %vm538_vm1, %v477_v56, %v479_v10 }
  0x76   : > { %v2771_v13 = vsel %vm2087_vm6, 4294967295, %v2770_v13  ;;  %v476_v30 = vrot.slane %v1123_v29, 7  ;;  %1217 = vmatpush1.bf16.msk.msra.mxu0 %vm2087_vm6, %v2769_v53  ;;  %vm343_vm7 = vcmp.eq.s32.totalorder %v1745_v31, %v1777_v45  ;;  %v2103_v52 = vpack.c.bf16 %v596_v0, %v598_v28 }
  0x77   : > { %vm345_vm2 = vcmp.eq.s32.totalorder %v1749_v33, %v1777_v45  ;;  %v2772_v9 = vmov 0.0   ;;  %vm342_vm8 = vcmp.eq.s32.totalorder %v1745_v31, %v1775_v44  ;;  %v2773_v10 = vmov 0 }
  0x78   : > { %v1182_v19 = vsel %vm343_vm7, 1.0, %v2772_v9  ;;  %v597_v36 = vsel %vm538_vm1, %v476_v30, %v478_v2  ;;  %v1184_v29 = vsel %vm345_vm2, 1.0, %v2772_v9  ;;  %vm2113_vm6 = vmpackc.low %vm345_vm2, %vm343_vm7  ;;  %vm344_vm15 = vcmp.eq.s32.totalorder %v1749_v33, %v1775_v44  ;;  %771 = vmatprep.subr.bf16.mxu1 %v2103_v52 }
  0x79   : > { %v535_v63 = vrot.slane %v1182_v19, 7  ;;  %v2774_v10 = vsel %vm2113_vm6, 4294967295, %v2773_v10  ;;  %v2120_v0 = vpack.c.bf16 %v595_v59, %v597_v36  ;;  %v537_v28 = vrot.slane %v1184_v29, 7  ;;  %1219 = vmatprep.subr.msk.bf16.mxu0 %vm2113_vm6, %v2769_v53  ;;  %vm2127_vm7 = vmpackc.low %vm344_vm15, %vm342_vm8 }
  0x7a   : > { %v1181_v2 = vsel %vm342_vm8, 1.0, %v2772_v9  ;;  %v1183_v31 = vsel %vm344_vm15, 1.0, %v2772_v9  ;;  %v2776_v19 = vmov 0  ;;  %1221 = vmatpush2.bf16.msk.msra.mxu0 %vm2127_vm7, %v2769_v53  ;;  %v600_v33 = vsel %vm538_vm1, %v475_v60, %v477_v56 }
  0x7b   : > { %2775 = vst [vmem:[#allocation18_spill] sm:$0xff] %v2120_v0  ;;  %v2777_v19 = vsel %vm2127_vm7, 4294967295, %v2776_v19  ;;  %v534_v55 = vrot.slane %v1181_v2, 7  ;;  %v536_v1 = vrot.slane %v1183_v31, 7  ;;  %v599_v59 = vsel %vm538_vm1, %v474_v27, %v476_v30  ;;  %772 = vmatpush1.bf16.msra.mxu1 %v2120_v0 }
  0x7c   : > { %2778 = vst [vmem:[#allocation19_spill] sm:$0xff] %v2777_v19  ;;  %v602_v36 = vsel %vm538_vm1, %v537_v28, %v475_v60  ;;  %vm339_vm15 = vcmp.eq.s32.totalorder %v1752_v34, %v1777_v45  ;;  %vm341_vm2 = vcmp.eq.s32.totalorder %v1755_v35, %v1777_v45  ;;  %vm338_vm8 = vcmp.eq.s32.totalorder %v1752_v34, %v1775_v44 }
  0x7d   : > { %v2147_v29 = vpack.c.bf16 %v600_v33, %v602_v36  ;;  %v601_v56 = vsel %vm538_vm1, %v536_v1, %v474_v27  ;;  %v1178_v30 = vsel %vm339_vm15, 1.0, %v2772_v9  ;;  %v1180_v2 = vsel %vm341_vm2, 1.0, %v2772_v9  ;;  %vm2153_vm7 = vmpackc.low %vm341_vm2, %vm339_vm15 }
  0x7e   : > { %v2779_v60 = vmov 0  ;;  %v2157_v31 = vpack.c.bf16 %v599_v59, %v601_v56  ;;  %v531_v0 = vrot.slane %v1178_v30, 7  ;;  %v533_v19 = vrot.slane %v1180_v2, 7  ;;  %1223 = vmatprep.subr.msk.bf16.mxu0 %vm2153_vm7, %v2769_v53 }
  0x7f   : > { %v2780_v60 = vsel %vm2153_vm7, 4294967295, %v2779_v60  ;;  %vm340_vm6 = vcmp.eq.s32.totalorder %v1755_v35, %v1775_v44  ;;  %773 = vmatprep.subr.bf16.mxu1 %v2147_v29  ;;  %v1177_v34 = vsel %vm338_vm8, 1.0, %v2772_v9  ;;  %v2782_v33 = vmov 0 }
  0x80   : > { %2781 = vst [vmem:[#allocation20_spill] sm:$0xff] %v2157_v31  ;;  %v1179_v27 = vsel %vm340_vm6, 1.0, %v2772_v9  ;;  %vm2167_vm15 = vmpackc.low %vm340_vm6, %vm338_vm8  ;;  %v540_v59 = vsel %vm538_vm1, %v535_v63, %v537_v28  ;;  %v539_v36 = vsel %vm538_vm1, %v534_v55, %v536_v1  ;;  %774 = vmatpush1.bf16.msra.mxu1 %v2157_v31  ;;  %v530_v56 = vrot.slane %v1177_v34, 7 }
  0x81   : > { %v2783_v33 = vsel %vm2167_vm15, 4294967295, %v2782_v33  ;;  %v532_v35 = vrot.slane %v1179_v27, 7  ;;  %1225 = vmatpush2.bf16.msk.msra.mxu0 %vm2167_vm15, %v2769_v53  ;;  %v542_v30 = vsel %vm538_vm1, %v533_v19, %v535_v63  ;;  %vm335_vm6 = vcmp.eq.s32.totalorder %v1758_v38, %v1777_v45 }
  0x82   : > { %2784 = vst [vmem:[#allocation21_spill] sm:$0xff] %v2783_v33  ;;  %v2183_v2 = vpack.c.bf16 %v540_v59, %v542_v30  ;;  %vm337_vm2 = vcmp.eq.s32.totalorder %v1761_v39, %v1777_v45  ;;  %v1174_v1 = vsel %vm335_vm6, 1.0, %v2772_v9  ;;  %vm334_vm8 = vcmp.eq.s32.totalorder %v1758_v38, %v1775_v44  ;;  %v2828_v15 = vld [vmem:[#allocation18_spill] sm:$0xff] }
  0x83   : > { %v541_v28 = vsel %vm538_vm1, %v532_v35, %v534_v55  ;;  %v1176_v34 = vsel %vm337_vm2, 1.0, %v2772_v9  ;;  %v527_v27 = vrot.slane %v1174_v1, 7  ;;  %vm2193_vm15 = vmpackc.low %vm337_vm2, %vm335_vm6  ;;  %v2785_v63 = vmov 0 }
  0x84   : > { %v2786_v63 = vsel %vm2193_vm15, 4294967295, %v2785_v63  ;;  %vm336_vm7 = vcmp.eq.s32.totalorder %v1761_v39, %v1775_v44  ;;  %775 = vmatprep.subr.bf16.mxu1 %v2183_v2  ;;  %v2200_v59 = vpack.c.bf16 %v539_v36, %v541_v28  ;;  %v529_v30 = vrot.slane %v1176_v34, 7  ;;  %1227 = vmatprep.subr.msk.bf16.mxu0 %vm2193_vm15, %v2769_v53 }
  0x85   : > { %v1173_v38 = vsel %vm334_vm8, 1.0, %v2772_v9  ;;  %v1175_v55 = vsel %vm336_vm7, 1.0, %v2772_v9  ;;  %vm2207_vm6 = vmpackc.low %vm336_vm7, %vm334_vm8  ;;  %v2788_v1 = vmov 0  ;;  %v544_v39 = vsel %vm538_vm1, %v531_v0, %v533_v19 }
  0x86   : > { %2787 = vst [vmem:[#allocation22_spill] sm:$0xff] %v2200_v59  ;;  %v2789_v1 = vsel %vm2207_vm6, 4294967295, %v2788_v1  ;;  %v526_v31 = vrot.slane %v1173_v38, 7  ;;  %v528_v33 = vrot.slane %v1175_v55, 7  ;;  %1229 = vmatpush2.bf16.msk.msra.mxu0 %vm2207_vm6, %v2769_v53  ;;  %v543_v36 = vsel %vm538_vm1, %v530_v56, %v532_v35  ;;  %776 = vmatpush2.bf16.msra.mxu1 %v2200_v59 }
  0x87   : > { %2790 = vst [vmem:[#allocation23_spill] sm:$0xff] %v2789_v1  ;;  %v546_v28 = vsel %vm538_vm1, %v529_v30, %v531_v0  ;;  %vm331_vm7 = vcmp.eq.s32.totalorder %v1764_v40, %v1777_v45  ;;  %vm333_vm2 = vcmp.eq.s32.totalorder %v1767_v41, %v1777_v45  ;;  %vm330_vm8 = vcmp.eq.s32.totalorder %v1764_v40, %v1775_v44  ;;  %v2832_v16 = vld [vmem:[#allocation20_spill] sm:$0xff] }
  0x88   : > { %v2227_v34 = vpack.c.bf16 %v544_v39, %v546_v28  ;;  %v545_v19 = vsel %vm538_vm1, %v528_v33, %v530_v56  ;;  %v1170_v35 = vsel %vm331_vm7, 1.0, %v2772_v9  ;;  %v1172_v38 = vsel %vm333_vm2, 1.0, %v2772_v9  ;;  %vm2233_vm6 = vmpackc.low %vm333_vm2, %vm331_vm7 }
  0x89   : > { %v2791_v0 = vmov 0  ;;  %v2237_v55 = vpack.c.bf16 %v543_v36, %v545_v19  ;;  %v523_v59 = vrot.slane %v1170_v35, 7  ;;  %v525_v1 = vrot.slane %v1172_v38, 7  ;;  %1231 = vmatprep.subr.msk.bf16.mxu0 %vm2233_vm6, %v2769_v53  ;;  %v2830_v37 = vld [vmem:[#allocation21_spill] sm:$0xff] }
  0x8a   : > { %v2792_v0 = vsel %vm2233_vm6, 4294967295, %v2791_v0  ;;  %vm332_vm15 = vcmp.eq.s32.totalorder %v1767_v41, %v1775_v44  ;;  %777 = vmatprep.subr.bf16.mxu1 %v2227_v34  ;;  %v1169_v40 = vsel %vm330_vm8, 1.0, %v2772_v9  ;;  %v2794_v39 = vmov 0 }
  0x8b   : > { %2793 = vst [vmem:[#allocation24_spill] sm:$0xff] %v2237_v55  ;;  %v1171_v56 = vsel %vm332_vm15, 1.0, %v2772_v9  ;;  %vm2247_vm7 = vmpackc.low %vm332_vm15, %vm330_vm8  ;;  %v548_v36 = vsel %vm538_vm1, %v527_v27, %v529_v30  ;;  %v547_v28 = vsel %vm538_vm1, %v526_v31, %v528_v33  ;;  %778 = vmatpush2.bf16.msra.mxu1 %v2237_v55  ;;  %v522_v19 = vrot.slane %v1169_v40, 7 }
  0x8c   : > { %v2795_v39 = vsel %vm2247_vm7, 4294967295, %v2794_v39  ;;  %v524_v41 = vrot.slane %v1171_v56, 7  ;;  %1233 = vmatpush2.bf16.msk.msra.mxu0 %vm2247_vm7, %v2769_v53  ;;  %v550_v35 = vsel %vm538_vm1, %v525_v1, %v527_v27  ;;  %vm327_vm15 = vcmp.eq.s32.totalorder %v1770_v42, %v1777_v45 }
  0x8d   : > { %2796 = vst [vmem:[#allocation25_spill] sm:$0xff] %v2795_v39  ;;  %v2263_v38 = vpack.c.bf16 %v548_v36, %v550_v35  ;;  %vm329_vm2 = vcmp.eq.s32.totalorder %v1773_v43, %v1777_v45  ;;  %v1166_v33 = vsel %vm327_vm15, 1.0, %v2772_v9  ;;  %vm326_vm8 = vcmp.eq.s32.totalorder %v1770_v42, %v1775_v44 }
  0x8e   : > { %v549_v30 = vsel %vm538_vm1, %v524_v41, %v526_v31  ;;  %v1168_v40 = vsel %vm329_vm2, 1.0, %v2772_v9  ;;  %v519_v56 = vrot.slane %v1166_v33, 7  ;;  %vm2273_vm7 = vmpackc.low %vm329_vm2, %vm327_vm15  ;;  %v2797_v27 = vmov 0 }
  0x8f   : > { %v2798_v27 = vsel %vm2273_vm7, 4294967295, %v2797_v27  ;;  %vm328_vm6 = vcmp.eq.s32.totalorder %v1773_v43, %v1775_v44  ;;  %779 = vmatprep.subr.bf16.mxu1 %v2263_v38  ;;  %v2280_v36 = vpack.c.bf16 %v547_v28, %v549_v30  ;;  %v521_v35 = vrot.slane %v1168_v40, 7  ;;  %1235 = vmatprep.subr.msk.bf16.mxu0 %vm2273_vm7, %v2769_v53 }
  0x90   : > { %v1165_v42 = vsel %vm326_vm8, 1.0, %v2772_v9  ;;  %v1167_v31 = vsel %vm328_vm6, 1.0, %v2772_v9  ;;  %vm2287_vm15 = vmpackc.low %vm328_vm6, %vm326_vm8  ;;  %v2800_v33 = vmov 0  ;;  %v552_v43 = vsel %vm538_vm1, %v523_v59, %v525_v1 }
  0x91   : > { %2799 = vst [vmem:[#allocation26_spill] sm:$0xff] %v2280_v36  ;;  %v2801_v33 = vsel %vm2287_vm15, 4294967295, %v2800_v33  ;;  %v518_v55 = vrot.slane %v1165_v42, 7  ;;  %v520_v39 = vrot.slane %v1167_v31, 7  ;;  %1237 = vmatpush2.bf16.msk.msra.mxu0 %vm2287_vm15, %v2769_v53  ;;  %v551_v28 = vsel %vm538_vm1, %v522_v19, %v524_v41  ;;  %780 = vmatpush2.bf16.msra.mxu1 %v2280_v36 }
  0x92   : > { %2802 = vst [vmem:[#allocation27_spill] sm:$0xff] %v2801_v33  ;;  %v554_v30 = vsel %vm538_vm1, %v521_v35, %v523_v59  ;;  %vm323_vm6 = vcmp.eq.s32.totalorder %v1780_v46, %v1777_v45  ;;  %vm325_vm2 = vcmp.eq.s32.totalorder %v1783_v47, %v1777_v45  ;;  %vm322_vm8 = vcmp.eq.s32.totalorder %v1780_v46, %v1775_v44  ;;  %v2840_v6 = vld [vmem:[#allocation24_spill] sm:$0xff] }
  0x93   : > { %v2307_v40 = vpack.c.bf16 %v552_v43, %v554_v30  ;;  %v553_v1 = vsel %vm538_vm1, %v520_v39, %v522_v19  ;;  %v1162_v41 = vsel %vm323_vm6, 1.0, %v2772_v9  ;;  %v1164_v42 = vsel %vm325_vm2, 1.0, %v2772_v9  ;;  %vm2313_vm15 = vmpackc.low %vm325_vm2, %vm323_vm6 }
  0x94   : > { %v2803_v59 = vmov 0  ;;  %v2317_v31 = vpack.c.bf16 %v551_v28, %v553_v1  ;;  %v515_v36 = vrot.slane %v1162_v41, 7  ;;  %v517_v33 = vrot.slane %v1164_v42, 7  ;;  %1239 = vmatprep.subr.msk.bf16.mxu0 %vm2313_vm15, %v2769_v53  ;;  %v2838_v18 = vld [vmem:[#allocation25_spill] sm:$0xff] }
  0x95   : > { %v2804_v59 = vsel %vm2313_vm15, 4294967295, %v2803_v59  ;;  %vm324_vm7 = vcmp.eq.s32.totalorder %v1783_v47, %v1775_v44  ;;  %781 = vmatprep.subr.bf16.mxu1 %v2307_v40  ;;  %v1161_v46 = vsel %vm322_vm8, 1.0, %v2772_v9  ;;  %v2806_v43 = vmov 0 }
  0x96   : > { %2805 = vst [vmem:[#allocation28_spill] sm:$0xff] %v2317_v31  ;;  %v1163_v19 = vsel %vm324_vm7, 1.0, %v2772_v9  ;;  %vm2327_vm6 = vmpackc.low %vm324_vm7, %vm322_vm8  ;;  %v556_v28 = vsel %vm538_vm1, %v519_v56, %v521_v35  ;;  %v555_v30 = vsel %vm538_vm1, %v518_v55, %v520_v39  ;;  %782 = vmatpush2.bf16.msra.mxu1 %v2317_v31  ;;  %v514_v1 = vrot.slane %v1161_v46, 7 }
  0x97   : > { %v2807_v43 = vsel %vm2327_vm6, 4294967295, %v2806_v43  ;;  %v516_v47 = vrot.slane %v1163_v19, 7  ;;  %1241 = vmatpush2.bf16.msk.msra.mxu0 %vm2327_vm6, %v2769_v53  ;;  %v558_v41 = vsel %vm538_vm1, %v517_v33, %v519_v56  ;;  %vm319_vm7 = vcmp.eq.s32.totalorder %v1786_v48, %v1777_v45 }
  0x98   : > { %2808 = vst [vmem:[#allocation29_spill] sm:$0xff] %v2807_v43  ;;  %v2343_v42 = vpack.c.bf16 %v556_v28, %v558_v41  ;;  %vm321_vm2 = vcmp.eq.s32.totalorder %v1789_v49, %v1777_v45  ;;  %v1158_v39 = vsel %vm319_vm7, 1.0, %v2772_v9  ;;  %vm318_vm8 = vcmp.eq.s32.totalorder %v1786_v48, %v1775_v44 }
  0x99   : > { %v557_v35 = vsel %vm538_vm1, %v516_v47, %v518_v55  ;;  %v1160_v46 = vsel %vm321_vm2, 1.0, %v2772_v9  ;;  %v511_v19 = vrot.slane %v1158_v39, 7  ;;  %vm2353_vm6 = vmpackc.low %vm321_vm2, %vm319_vm7  ;;  %v2809_v56 = vmov 0 }
  0x9a   : > { %v2810_v56 = vsel %vm2353_vm6, 4294967295, %v2809_v56  ;;  %vm320_vm15 = vcmp.eq.s32.totalorder %v1789_v49, %v1775_v44  ;;  %783 = vmatprep.subr.bf16.mxu1 %v2343_v42  ;;  %v2360_v28 = vpack.c.bf16 %v555_v30, %v557_v35  ;;  %v513_v41 = vrot.slane %v1160_v46, 7  ;;  %1243 = vmatprep.subr.msk.bf16.mxu0 %vm2353_vm6, %v2769_v53 }
  0x9b   : > { %v1157_v48 = vsel %vm318_vm8, 1.0, %v2772_v9  ;;  %v1159_v55 = vsel %vm320_vm15, 1.0, %v2772_v9  ;;  %vm2367_vm7 = vmpackc.low %vm320_vm15, %vm318_vm8  ;;  %v2812_v39 = vmov 0  ;;  %v560_v49 = vsel %vm538_vm1, %v515_v36, %v517_v33 }
  0x9c   : > { %2811 = vst [vmem:[#allocation30_spill] sm:$0xff] %v2360_v28  ;;  %v2813_v39 = vsel %vm2367_vm7, 4294967295, %v2812_v39  ;;  %v510_v31 = vrot.slane %v1157_v48, 7  ;;  %v512_v43 = vrot.slane %v1159_v55, 7  ;;  %1245 = vmatpush2.bf16.msk.msra.mxu0 %vm2367_vm7, %v2769_v53  ;;  %v559_v30 = vsel %vm538_vm1, %v514_v1, %v516_v47  ;;  %784 = vmatpush2.bf16.msra.mxu1 %v2360_v28 }
  0x9d   : > { %v562_v35 = vsel %vm538_vm1, %v513_v41, %v515_v36  ;;  %vm315_vm15 = vcmp.eq.s32.totalorder %v1792_v50, %v1777_v45  ;;  %vm317_vm2 = vcmp.eq.s32.totalorder %v1795_v51, %v1777_v45  ;;  %vm314_vm8 = vcmp.eq.s32.totalorder %v1792_v50, %v1775_v44 }
  0x9e   : > { %v2387_v46 = vpack.c.bf16 %v560_v49, %v562_v35  ;;  %v561_v33 = vsel %vm538_vm1, %v512_v43, %v514_v1  ;;  %v1154_v47 = vsel %vm315_vm15, 1.0, %v2772_v9  ;;  %v1156_v48 = vsel %vm317_vm2, 1.0, %v2772_v9  ;;  %vm2393_vm7 = vmpackc.low %vm317_vm2, %vm315_vm15 }
  0x9f   : > { %v2397_v55 = vpack.c.bf16 %v559_v30, %v561_v33  ;;  %v507_v28 = vrot.slane %v1154_v47, 7  ;;  %v509_v45 = vrot.slane %v1156_v48, 7  ;;  %1247 = vmatprep.subr.msk.bf16.mxu0 %vm2393_vm7, %v2769_v53  ;;  %vm316_vm6 = vcmp.eq.s32.totalorder %v1795_v51, %v1775_v44  ;;  %v2846_v58 = vld [vmem:[#allocation29_spill] sm:$0xff] }
  0xa0   : > { %785 = vmatprep.subr.bf16.mxu1 %v2387_v46  ;;  %v1153_v50 = vsel %vm314_vm8, 1.0, %v2772_v9  ;;  %v1155_v1 = vsel %vm316_vm6, 1.0, %v2772_v9  ;;  %vm2407_vm15 = vmpackc.low %vm316_vm6, %vm314_vm8  ;;  %v564_v30 = vsel %vm538_vm1, %v511_v19, %v513_v41  ;;  %v563_v35 = vsel %vm538_vm1, %v510_v31, %v512_v43 }
  0xa1   : > { %786 = vmatpush2.bf16.msra.mxu1 %v2397_v55  ;;  %v506_v33 = vrot.slane %v1153_v50, 7  ;;  %v508_v44 = vrot.slane %v1155_v1, 7  ;;  %1249 = vmatpush2.bf16.msk.msra.mxu0 %vm2407_vm15, %v2769_v53  ;;  %v566_v51 = vsel %vm538_vm1, %v509_v45, %v511_v19  ;;  %v568_v9 = vsel %vm538_vm1, %v507_v28, %v509_v45 }
  0xa2   : > { %v2423_v47 = vpack.c.bf16 %v564_v30, %v566_v51  ;;  %1253 = vmatprep.subr.msk.bf16.mxu0 %vm1835_vm12, %v2769_v53  ;;  %v2818_v43 = vrot.slane %v1803_v54, 7  ;;  %v2819_v45 = vrot.slane %v1811_v57, 7  ;;  %vm2821_vm12 = vnez %v2765_v4  ;;  %v2826_v57 = vld [vmem:[#allocation19_spill] sm:$0xff] }
  0xa3   : > { %v565_v48 = vsel %vm538_vm1, %v508_v44, %v510_v31  ;;  %v567_v19 = vsel %vm538_vm1, %v506_v33, %v508_v44  ;;  %vm2839_vm6 = vnez %v2838_v18  ;;  %vm2841_vm2 = vnez %v2798_v27  ;;  %v2851_v17 = vld [vmem:[#allocation30_spill] sm:$0xff] }
  0xa4   : > { %v570_v41 = vsel %vm538_vm1, %v2818_v43, %v507_v28  ;;  %v569_v1 = vsel %vm538_vm1, %v2819_v45, %v506_v33  ;;  %787 = vmatprep.subr.bf16.mxu1 %v2423_v47  ;;  %v2443_v3 = vpack.c.bf16 %v563_v35, %v565_v48  ;;  %679 = vmatmul.mubr.bf16.vlgmr.msra.gmra.mxu0 %v1685_v5  ;;  %v713_v48 = vsub.s32 2, %v1689_v7 }
  0xa5   : > { %v2434_v50 = vpack.c.bf16 %v568_v9, %v570_v41  ;;  %1255 = vmatpush1.bf16.msk.msra.mxu0 %vm1844_vm13, %v2769_v53  ;;  %862 = vmatprep.mubr.bf16.mxu0 %v1693_v8  ;;  %v2451_v54 = vpack.c.bf16 %v567_v19, %v569_v1  ;;  %vm2820_vm1 = vnez %v2763_v25  ;;  %vm2822_vm13 = vnez %v2767_v62 }
  0xa6   : > { %788 = vmatpush2.bf16.msra.mxu1 %v2443_v3  ;;  %1257 = vmatprep.subr.msk.bf16.mxu0 %vm1869_vm0, %v2769_v53  ;;  %vm2823_vm0 = vnez %v2771_v13  ;;  %v709_v9 = vsub.s32 0, %v1689_v7 }
  0xa7   : > { %789 = vmatprep.subr.bf16.mxu1 %v2434_v50 }
  0xa9   : > { %1259 = vmatpush1.bf16.msk.msra.mxu0 %vm1891_vm4, %v2769_v53  ;;  %vm2825_vm4 = vnez %v2774_v10  ;;  %v2858_v10 = vld [vmem:[#allocation12_spill] sm:$0xff] }
  0xaa   : > { %790 = vmatpush2.bf16.msra.mxu1 %v2451_v54  ;;  %1261 = vmatprep.subr.msk.bf16.mxu0 %vm1909_vm9, %v2769_v53  ;;  %vm2827_vm9 = vnez %v2826_v57 }
  0xab   : > { %910 = vmatprep.subr.bf16.mxu1 %v1903_v14  ;;  %v2836_v14 = vld [vmem:[#allocation22_spill] sm:$0xff] }
  0xad   : > { %792 = vmatmul.mubr.bf16.vlgmr.msra.gmra.mxu1 %v1685_v5  ;;  %1263 = vmatpush1.bf16.msk.msra.mxu0 %vm1924_vm14, %v2769_v53  ;;  %vm2829_vm14 = vnez %v2780_v60 }
  0xae   : > { %911 = vmatpush1.bf16.msra.mxu1 %v1928_v21  ;;  %1265 = vmatprep.subr.msk.bf16.mxu0 %vm1953_vm5, %v2769_v53  ;;  %vm2831_vm5 = vnez %v2830_v37  ;;  %v2842_v21 = vld [vmem:[#allocation27_spill] sm:$0xff] }
  0xaf   : > { %912 = vmatprep.subr.bf16.mxu1 %v1943_v61  ;;  %942 = vmatprep.mubr.bf16.mxu1 %v1693_v8  ;;  %v2824_v8 = vld [vmem:[#allocation17_spill] sm:$0xff]  ;;  %vm2843_vm8 = vnez %v2842_v21  ;;  %v2844_v61 = vld [vmem:[#allocation26_spill] sm:$0xff] }
  0xb1   : > { %1267 = vmatpush1.bf16.msk.msra.mxu0 %vm1967_vm10, %v2769_v53  ;;  %vm2833_vm10 = vnez %v2786_v63  ;;  %v1544_v63 = vmov 0  }
  0xb2   : > { %913 = vmatpush1.bf16.msra.mxu1 %v1960_v22  ;;  %1269 = vmatprep.subr.msk.bf16.mxu0 %vm1993_vm3, %v2769_v53  ;;  %v2848_v22 = vld [vmem:[#allocation28_spill] sm:$0xff] }
  0xb3   : > { %914 = vmatprep.subr.bf16.mxu1 %v1987_v12  ;;  %v2852_v12 = vld [vmem:[#allocation13_spill] sm:$0xff] }
  0xb5   : > { %1271 = vmatpush1.bf16.msk.msra.mxu0 %vm2007_vm11, %v2769_v53  ;;  %vm2837_vm11 = vnez %v2792_v0 }
  0xb6   : > { %915 = vmatpush1.bf16.msra.mxu1 %v1997_v20  ;;  %1273 = vmatprep.subr.msk.bf16.mxu0 %vm2820_vm1, %v2769_v53  ;;  %vm2845_vm1 = vnez %v2804_v59  ;;  %v2856_v20 = vld [vmem:[#allocation15_spill] sm:$0xff] }
  0xb7   : > { %916 = vmatprep.subr.bf16.mxu1 %v2023_v23 }
  0xb9   : > { %1275 = vmatpush1.bf16.msk.msra.mxu0 %vm2821_vm12, %v2769_v53  ;;  %vm2847_vm12 = vnez %v2846_v58 }
  0xba   : > { %917 = vmatpush1.bf16.msra.mxu1 %v2040_v11  ;;  %1277 = vmatprep.subr.msk.bf16.mxu0 %vm2822_vm13, %v2769_v53  ;;  %vm2849_vm13 = vnez %v2810_v56 }
  0xbb   : > { %918 = vmatprep.subr.bf16.mxu1 %v2067_v26 }
  0xbd   : > { %1279 = vmatpush1.bf16.msk.msra.mxu0 %vm2823_vm0, %v2769_v53  ;;  %vm2850_vm0 = vnez %v2813_v39 }
  0xbe   : > { %919 = vmatpush1.bf16.msra.mxu1 %v2824_v8  ;;  %1281 = vmatprep.subr.msk.bf16.mxu0 %vm2825_vm4, %v2769_v53  ;;  %vm2853_vm4 = vnez %v2852_v12 }
  0xbf   : > { %920 = vmatprep.subr.bf16.mxu1 %v2103_v52  ;;  %v2834_v52 = vld [vmem:[#allocation23_spill] sm:$0xff] }
  0xc0   : > { %vm2835_vm3 = vnez %v2834_v52 }
  0xc1   : > { %1283 = vmatpush1.bf16.msk.msra.mxu0 %vm2827_vm9, %v2769_v53  ;;  %vm2855_vm9 = vnez %v2854_v32 }
  0xc2   : > { %921 = vmatpush1.bf16.msra.mxu1 %v2828_v15  ;;  %1285 = vmatprep.subr.msk.bf16.mxu0 %vm2829_vm14, %v2769_v53 }
  0xc3   : > { %922 = vmatprep.subr.bf16.mxu1 %v2147_v29  ;;  %v2859_v29 = vld [vmem:[#allocation11_spill] sm:$0xff] }
  0xc4   : > { %v2860_v60 = vfloor.f32 %v2859_v29 }
  0xc5   : > { %1287 = vmatpush2.bf16.msk.msra.mxu0 %vm2831_vm5, %v2769_v53 }
  0xc6   : > { %923 = vmatpush1.bf16.msra.mxu1 %v2832_v16  ;;  %1289 = vmatprep.subr.msk.bf16.mxu0 %vm2833_vm10, %v2769_v53 }
  0xc7   : > { %924 = vmatprep.subr.bf16.mxu1 %v2183_v2  ;;  %v222_v2 = vsub.f32 %v2859_v29, %v2860_v60 }
  0xc9   : > { %1291 = vmatpush2.bf16.msk.msra.mxu0 %vm2835_vm3, %v2769_v53  ;;  %v223_v0 = vsub.f32 1.0, %v222_v2 }
  0xca   : > { %925 = vmatpush1.bf16.msra.mxu1 %v2836_v14  ;;  %1293 = vmatprep.subr.msk.bf16.mxu0 %vm2837_vm11, %v2769_v53 }
  0xcb   : > { %926 = vmatprep.subr.bf16.mxu1 %v2227_v34  ;;  %v688_v59 = vrot.slane %v223_v0, 7 }
  0xcd   : > { %1295 = vmatpush2.bf16.msk.msra.mxu0 %vm2839_vm6, %v2769_v53 }
  0xce   : > { %927 = vmatpush2.bf16.msra.mxu1 %v2840_v6  ;;  %1297 = vmatprep.subr.msk.bf16.mxu0 %vm2841_vm2, %v2769_v53 }
  0xcf   : > { %928 = vmatprep.subr.bf16.mxu1 %v2263_v38 }
  0xd1   : > { %1299 = vmatpush2.bf16.msk.msra.mxu0 %vm2843_vm8, %v2769_v53 }
  0xd2   : > { %929 = vmatpush2.bf16.msra.mxu1 %v2844_v61  ;;  %1301 = vmatprep.subr.msk.bf16.mxu0 %vm2845_vm1, %v2769_v53 }
  0xd3   : > { %930 = vmatprep.subr.bf16.mxu1 %v2307_v40 }
  0xd5   : > { %1303 = vmatpush2.bf16.msk.msra.mxu0 %vm2847_vm12, %v2769_v53 }
  0xd6   : > { %931 = vmatpush2.bf16.msra.mxu1 %v2848_v22  ;;  %1305 = vmatprep.subr.msk.bf16.mxu0 %vm2849_vm13, %v2769_v53 }
  0xd7   : > { %932 = vmatprep.subr.bf16.mxu1 %v2343_v42 }
  0xd9   : > { %1307 = vmatpush2.bf16.msk.msra.mxu0 %vm2850_vm0, %v2769_v53 }
  0xda   : > { %933 = vmatpush2.bf16.msra.mxu1 %v2851_v17  ;;  %1309 = vmatprep.subr.msk.bf16.mxu0 %vm2393_vm7, %v2769_v53  ;;  %vm692_vm7 = vcmp.ge.s32.totalorder %v2858_v10, 0 }
  0xdb   : > { %934 = vmatprep.subr.bf16.mxu1 %v2387_v46  ;;  %v695_v34 = vsel %vm692_vm7, 1, %v1544_v63  ;;  %v872_v46 = vrot.slane %v222_v2, 7 }
  0xdc   : > { %v1250_v38 = vrot.slane %v695_v34, 9 }
  0xdd   : > { %1311 = vmatpush2.bf16.msk.msra.mxu0 %vm2407_vm15, %v2769_v53  ;;  %vm693_vm15 = vcmp.le.s32.totalorder %v2858_v10, 15  ;;  %v873_v35 = vrot.slane %v872_v46, 2 }
  0xde   : > { %935 = vmatpush2.bf16.msra.mxu1 %v2397_v55  ;;  %1313 = vmatprep.subr.msk.bf16.mxu0 %vm2853_vm4, %v2769_v53  ;;  %v700_v27 = vsel %vm693_vm15, 1, %v1544_v63  ;;  %vm2595_vm10 = vmand %vm692_vm7, %vm693_vm15  ;;  %vm2599_vm3 = vcmp.ne.s32.totalorder %v1250_v38, 0  ;;  %v689_v55 = vrot.slane %v688_v59, 2 }
  0xdf   : > { %936 = vmatprep.subr.bf16.mxu1 %v2423_v47  ;;  %v1251_v31 = vrot.slane %v700_v27, 9  ;;  %vm699_vm6 = vmand %vm2595_vm10, %vm2599_vm3  ;;  %v875_v51 = vmul.f32 %v873_v35, %v223_v0  ;;  %v951_v41 = vmul.f32 %v873_v35, %v222_v2 }
  0xe0   : > { %v691_v33 = vmul.f32 %v689_v55, %v223_v0  ;;  %v800_v44 = vmul.f32 %v689_v55, %v222_v2 }
  0xe1   : > { %1315 = vmatpush2.bf16.msk.msra.mxu0 %vm2855_vm9, %v2769_v53  ;;  %vm703_vm2 = vcmp.ne.s32.totalorder %v1251_v31, 0 }
  0xe2   : > { %937 = vmatpush2.bf16.msra.mxu1 %v2443_v3  ;;  %vm704_vm12 = vmand %vm699_vm6, %vm703_vm2 }
  0xe3   : > { %938 = vmatprep.subr.bf16.mxu1 %v2434_v50  ;;  %v705_v47 = vsel %vm704_vm12, %v691_v33, 0.0 }
  0xe4   : > { %863 = vmatmul.mubr.bf16.vlgmr.msra.gmra.mxu0 %v1685_v5  ;;  %v710_v19 = vrot.slane %v705_v47, %v709_v9 }
  0xe6   : > { %939 = vmatpush2.bf16.msra.mxu1 %v2451_v54  ;;  %v714_v54 = vrot.slane %v705_v47, %v713_v48  ;;  %v720_v37 = vrot.slane %v710_v19, %v709_v9 }
  0xe7   : > { %940 = vmatprep.subr.bf16.mxu1 %v2856_v20 }
  0xe8   : > { %v724_v6 = vrot.slane %v714_v54, %v709_v9 }
  0xea   : > { %941 = vmatpush2.bf16.msra.mxu1 %v2857_v24 }
  0xed   : > { %943 = vmatmul.mubr.bf16.vlgmr.msra.gmra.mxu1 %v1685_v5  ;;  %v225_v5 = vadd.s32 1, %v2858_v10 }
  0xef   : > { %vm801_vm14 = vcmp.ge.s32.totalorder %v225_v5, 0  ;;  %vm802_vm5 = vcmp.le.s32.totalorder %v225_v5, 15 }
  0xf0   : > { %v876_v40 = vsel %vm801_vm14, 1, %v1544_v63  ;;  %v881_v39 = vsel %vm802_vm5, 1, %v1544_v63  ;;  %vm2603_vm11 = vmand %vm801_vm14, %vm802_vm5 }
  0xf1   : > { %v1316_v28 = vrot.slane %v876_v40, 9  ;;  %v1317_v49 = vrot.slane %v881_v39, 9  ;;  %vm804_vm1 = vmand %vm2603_vm11, %vm2599_vm3 }
  0xf2   : > { %vm805_vm4 = vmand %vm804_vm1, %vm703_vm2 }
  0xf3   : > { %vm2611_vm8 = vcmp.ne.s32.totalorder %v1316_v28, 0  ;;  %vm884_vm0 = vcmp.ne.s32.totalorder %v1317_v49, 0  ;;  %v806_v43 = vsel %vm805_vm4, %v800_v44, 0.0 }
  0xf4   : > { %vm880_vm13 = vmand %vm2595_vm10, %vm2611_vm8  ;;  %v811_v45 = vrot.slane %v806_v43, %v709_v9  ;;  %v815_v1 = vrot.slane %v806_v43, %v713_v48 }
  0xf5   : > { %vm952_vm9 = vmand %vm2603_vm11, %vm2611_vm8 }
  0xf6   : > { %vm885_vm7 = vmand %vm880_vm13, %vm884_vm0  ;;  %v821_v16 = vrot.slane %v811_v45, %v709_v9  ;;  %v825_v52 = vrot.slane %v815_v1, %v709_v9 }
  0xf7   : > { %vm953_vm15 = vmand %vm952_vm9, %vm884_vm0  ;;  %v886_v50 = vsel %vm885_vm7, %v875_v51, 0.0 }
  0xf8   : > { %v954_v3 = vsel %vm953_vm15, %v951_v41, 0.0  ;;  %v891_v57 = vrot.slane %v886_v50, %v709_v9  ;;  %v895_v15 = vrot.slane %v886_v50, %v713_v48 }
  0xf9   : > { %v959_v18 = vrot.slane %v954_v3, %v709_v9  ;;  %v963_v58 = vrot.slane %v954_v3, %v713_v48 }
  0xfa   : > { %v901_v21 = vrot.slane %v891_v57, %v709_v9  ;;  %v905_v61 = vrot.slane %v895_v15, %v709_v9 }
  0xfb   : > { %v969_v32 = vrot.slane %v959_v18, %v709_v9 }
 0x164   : > { %v2581_v23 = vpop.f32.mrf.mxu0 }
 0x165   : > { %v725_v22 = vmul.f32 %v720_v37, %v2581_v23 }
 0x166   : > { %v2583_v25 = vpop.f32.mrf.mxu0 }
 0x167   : > { %v726_v24 = vmul.f32 %v724_v6, %v2583_v25 }
 0x168   : > { %v684_v11 = vpop.f32.mrf.mxu0 }
 0x16a   : > { %v685_v53 = vpop.f32.mrf.mxu0 }
 0x16d   : > { %v2585_v4 = vpop.f32.mrf.mxu1 }
 0x16e   : > { %v826_v17 = vmul.f32 %v821_v16, %v2585_v4 }
 0x16f   : > { %v2587_v26 = vpop.f32.mrf.mxu1 }
 0x170   : > { %v827_v12 = vmul.f32 %v825_v52, %v2587_v26  ;;  %v828_v10 = vadd.f32 %v826_v17, %v725_v22 }
 0x171   : > { %v797_v62 = vpop.f32.mrf.mxu1 }
 0x172   : > { %v973_v62 = vrot.slane %v963_v58, %v709_v9  ;;  %v829_v29 = vadd.f32 %v827_v12, %v726_v24 }
 0x173   : > { %v798_v13 = vpop.f32.mrf.mxu1 }
 0x1a4   : > { %v864_v8 = vpop.f32.mrf.mxu0 }
 0x1a5   : > { %v906_v11 = vmul.f32 %v901_v21, %v864_v8 }
 0x1a6   : > { %v866_v14 = vpop.f32.mrf.mxu0 }
 0x1a7   : > { %v907_v53 = vmul.f32 %v905_v61, %v866_v14  ;;  %v908_v23 = vadd.f32 %v906_v11, %v828_v10 }
 0x1a8   : > { %v868_v7 = vpop.f32.mrf.mxu0 }
 0x1a9   : > { %v909_v5 = vadd.f32 %v907_v53, %v829_v29 }
 0x1aa   : > { %v869_v20 = vpop.f32.mrf.mxu0 }
 0x1ad   : > { %v944_v13 = vpop.f32.mrf.mxu1 }
 0x1ae   : > { %v974_v60 = vmul.f32 %v969_v32, %v944_v13 }
 0x1af   : > { %v946_v2 = vpop.f32.mrf.mxu1 }
 0x1b0   : > { %v975_v4 = vmul.f32 %v973_v62, %v946_v2  ;;  %v976_v63 = vadd.f32 %v974_v60, %v908_v23 }
 0x1b1   : > { %v948_v26 = vpop.f32.mrf.mxu1 }
 0x1b2   : > { %v977_v34 = vadd.f32 %v975_v4, %v909_v5 }
 0x1b3   : > { %v949_v25 = vpop.f32.mrf.mxu1 }
 0x1b4   : > { %v980_v0 = vcombine.low %v976_v63, %v977_v34 }
 0x1b6   : > { %982 = vst [vmem:[%s215_s19] sm:$0xff] %v980_v0 }
 0x1b7   : > { %1467 = shalt.err (!%p1464_p6)
}
 0x1b8   : > { %s1468_s6 = scalar_lea.hbm %s998_s3, 128  ;;  %s1472_s27 = scalar_lea.hbm %s2676_s2, 256 }
 0x1b9   : > { %p1469_p7 = scmp.ne.s32.totalorder %s998_s3, %s1468_s6  ;;  %p1473_p4 = scmp.lt.s32.totalorder %s998_s3, %s2676_s2 }
 0x1ba   : > { %p1474_p10 = scmp.lt.s32.totalorder %s1472_s27, %s1468_s6 }
 0x1bb   : > { %p1470_p1 = pnand %p1469_p7, %p1612_p9 }
 0x1bc   : > { %p1475_p8 = por %p1474_p10, %p1473_p4 }
 0x1bd   : > { %p1471_p2 = pneg %p1470_p1 }
 0x1bf   : > { %p1476_p0 = pnand %p1475_p8, %p1471_p2 }
 0x1c1   : > { %1479 = shalt.err (!%p1476_p0)
}
 0x1c2   : > { %1332 = dma.vmem_to_hbm [thread:$0]  (%p1612_p9), %s1001_s20, 128, %s998_s3, %s984_s7  }
 0x1c3 PF: > { %s1012_s16 = sand.u32 1, %s1518_s9   ;;  %p2869_p3 = scmp.ge.s32.totalorder %s1538_s14, 2 }
 0x1c4   : > { %s1013_s21 = scalar_lea.sflag [#allocation4], %s1012_s16 }
 0x1c5   : > { %p1342_p13 = pnand %p2869_p3, %p1619_p11 }
 0x1c7   : > { %p1343_p5 = pneg %p1342_p13 }
 0x1c9   : > { %1513 = dma.done.wait (%p1343_p5), %s1013_s21, 128  }
 0x1ca   : > { %1515 = vsyncadd (%p1343_p5), %s1013_s21, 4294967168  ;;  %s21_s14 = sadd.s32 1, %s1538_s14   ;;  %s2870_s9 = smov %s1522_s10 }
 0x1cb   : > { %p18_p12 = scmp.ge.s32.totalorder %s21_s14, 4   ;;  %s2871_s10 = smov %s1526_s11 }
 0x1cc   : > { %s2872_s11 = smov %s1617_s23  ;;  %s2873_s12 = smov %s1534_s13 }
 0x1cd   : > { %s2874_s13 = smov %s2876_s17  ;;  %20 = sbr.rel (!%p18_p12) target bundleno = 8 (0x8), region = 86 }
 0x1d2   :  { %1018 = vsyncpa [#allocation3], 1 }
 0x1d3   :  { %1020 = vsyncpa [#allocation3 + $0x1], 1 }
 0x1d4   :  { %1021 = vsyncpa [#allocation6], 1 }
 0x1d5   :  { %1023 = vsyncpa [#allocation6 + $0x1], 1 }
 0x1d6   :  { %1024 = vsyncpa [#allocation4], 1 }
 0x1d7   :  { %1026 = vsyncpa [#allocation4 + $0x1], 1 }

// kernel: tpu_custom_call.1
= control target key start
LH: loop header
LB: loop body
LE: loop exit
PB: predicated region body
PF: predicated region fallthrough
CT: control target
= control target key end

     0   :  { %7 = vsyncpa [#allocation3], 0  ;;  %s4096_s0 = inlined_call_operand.hbm [shape: f32[2,2,256], index: 0, kind: input, shape index: {}]   ;;  %s4097_s1 = inlined_call_operand.hbm [shape: bf16[2,4,256], index: 1, kind: input, shape index: {}]   ;;  %s4098_s2 = inlined_call_operand.hbm [shape: f32[2,4,256], index: 2, kind: output, shape index: {}]  }
   0x1   :  { %9 = vsyncpa [#allocation3 + $0x1], 0 }
   0x2   :  { %10 = vsyncpa [#allocation6], 0 }
   0x3   :  { %12 = vsyncpa [#allocation6 + $0x1], 0 }
   0x4   :  { %13 = vsyncpa [#allocation4], 0 }
   0x5   :  { %15 = vsyncpa [#allocation4 + $0x1], 0  ;;  %s2441_s9 = smov 0   ;;  %s2443_s10 = smov 0  }
   0x6   :  { %s2445_s11 = smov 0   ;;  %s2447_s12 = smov 0  }
   0x7   :  { %s2449_s13 = smov 0   ;;  %s2451_s14 = smov 0  }
   0x8 LB: > { %s1668_s15 = sadd.s32 4294967295, %s2419_s14   ;;  %s1669_s16 = sadd.s32 4294967294, %s2419_s14   ;;  %s2419_s14 = sphi %s2451_s14, %s21_s14   ;;  %s2415_s13 = sphi %s2449_s13, %s4279_s13   ;;  %s2411_s12 = sphi %s2447_s12, %s4278_s12   ;;  %s2407_s11 = sphi %s2445_s11, %s4277_s11   ;;  %s2403_s10 = sphi %s2443_s10, %s4276_s10   ;;  %s2399_s9 = sphi %s2441_s9, %s4275_s9  }
   0x9   : > { %s33_s17 = sadd.s32 1, %s2415_s13  ;;  %s42_s18 = sadd.s32 1, %s2407_s11 }
   0xa   : > { %p35_p0 = scmp.ge.s32.totalorder %s33_s17, 2  ;;  %p49_p1 = scmp.ne.s32.totalorder %s2407_s11, %s2403_s10 }
   0xb   : > { %p50_p2 = scmp.eq.s32.totalorder %s2419_s14, 0  ;;  %p55_p3 = scmp.ne.s32.totalorder %s2403_s10, %s2399_s9 }
   0xc   : > { %s4281_s17 = smov (%p35_p0, %s33_s17), 0  ;;  %p56_p5 = scmp.eq.s32.totalorder %s1668_s15, 0 }
   0xd   : > { %p2482_p4 = por %p50_p2, %p49_p1  ;;  %s37_s20 = ssub.s32 %s2415_s13, %s4281_s17 }
   0xe   : > { %p107_p6 = scmp.eq.s32.totalorder %s1668_s15, 1  ;;  %p40_p7 = scmp.eq.s32.totalorder %s37_s20, 0 }
   0xf   : > { %p2488_p8 = por %p56_p5, %p55_p3  ;;  %p113_p10 = scmp.eq.s32.totalorder %s1669_s16, 1 }
  0x10   : > { %p2492_p9 = por %p107_p6, %p49_p1  ;;  %p2226_p13 = scmp.lt.s32.totalorder %s2419_s14, 2 }
  0x11   : > { %s2497_s23 = scalar_select %p40_p7, %s2407_s11, %s42_s18  }
  0x12   : > { %p2499_p11 = por %p113_p10, %p55_p3  ;;  %s2506_s25 = sand.u32 1, %s2407_s11  }
  0x13   : > { %s1672_s26 = sshll.u32 %s2506_s25, 2  ;;  %s2204_s27 = sshll.u32 %s2415_s13, 6 }
  0x14   : > { %s145_s30 = scalar_lea.hbm %s4096_s0, %s2204_s27  ;;  %s137_s3 = scalar_lea.vmem [#allocation2], %s1672_s26 }
  0x15   : > { %s147_s4 = sshll.u32 %s137_s3, 4  ;;  %p2515_p0 = pnand %p2226_p13, %p2482_p4  ;;  %s148_s4 = int_to_ptr.vmem [resolvable:$true] %s147_s4 }
  0x16   : > { %p1678_p1 = scmp.ge.s32.totalorder %s2419_s14, 1  ;;  %p171_p2 = scmp.lt.s32.totalorder %s2419_s14, 3 }
  0x17   : > { %s134_s6 = scalar_lea.sflag [#allocation3], %s2506_s25  ;;  %p2281_p3 = pneg %p2515_p0 }
  0x18   : > { %s2292_s7 = scalar_lea.vmem %s148_s4, 64  ;;  %s2421_s8 = smov [#allocation2]  }
  0x19   : > { %p2293_p5 = scmp.ne.s32.totalorder %s148_s4, %s2292_s7  ;;  %s2297_s15 = sshll.u32 %s2421_s8, 4  ;;  %s2298_s15 = int_to_ptr.vmem [resolvable:$false] %s2297_s15 }
  0x1a   : > { %s2299_s16 = scalar_lea.vmem %s2298_s15, 128  ;;  %p2300_p4 = scmp.lt.s32.totalorder %s148_s4, %s2298_s15 }
  0x1b   : > { %p2295_p6 = pnand %p2293_p5, %p2281_p3  ;;  %p2301_p10 = scmp.lt.s32.totalorder %s2299_s16, %s2292_s7 }
  0x1d   : > { %p2296_p7 = pneg %p2295_p6  ;;  %p2302_p13 = por %p2301_p10, %p2300_p4 }
  0x1f   : > { %p2303_p12 = pnand %p2302_p13, %p2296_p7 }
  0x21   : > { %2306 = shalt.err (!%p2303_p12)
}
  0x22   : > { %2218 = dma.hbm_to_vmem [thread:$0]  (!%p2515_p0), %s145_s30, 64, %s148_s4, %s134_s6  }
  0x23   : > { %p2533_p5 = pnand %p1678_p1, %p171_p2  ;;  %s164_s28 = scalar_lea.hbm %s4097_s1, %s2204_s27 }
  0x24   : > { %s158_s29 = scalar_lea.vmem [#allocation5], %s1672_s26  ;;  %s155_s7 = scalar_lea.sflag [#allocation6], %s2506_s25 }
  0x25   : > { %s166_s3 = sshll.u32 %s158_s29, 4  ;;  %s2422_s30 = smov [#allocation5]   ;;  %s167_s3 = int_to_ptr.vmem [resolvable:$true] %s166_s3 }
  0x26   : > { %s2320_s8 = scalar_lea.vmem %s167_s3, 64  ;;  %s2325_s4 = sshll.u32 %s2422_s30, 4  ;;  %s2326_s4 = int_to_ptr.vmem [resolvable:$false] %s2325_s4 }
  0x27   : > { %p2321_p12 = scmp.ne.s32.totalorder %s167_s3, %s2320_s8  ;;  %s2327_s6 = scalar_lea.vmem %s2326_s4, 128 }
  0x28   : > { %p2328_p1 = scmp.lt.s32.totalorder %s167_s3, %s2326_s4  ;;  %p2329_p2 = scmp.lt.s32.totalorder %s2327_s6, %s2320_s8 }
  0x29   : > { %p2323_p6 = pnand %p2321_p12, %p2281_p3 }
  0x2a   : > { %p2330_p4 = por %p2329_p2, %p2328_p1 }
  0x2b   : > { %p2324_p7 = pneg %p2323_p6 }
  0x2d   : > { %p2331_p10 = pnand %p2330_p4, %p2324_p7 }
  0x2f   : > { %2334 = shalt.err (!%p2331_p10)
}
  0x30   : > { %2221 = dma.hbm_to_vmem [thread:$0]  (!%p2515_p0), %s164_s28, 64, %s167_s3, %s155_s7  }
  0x31   : > { %175 = sbr.rel (%p2533_p5) target bundleno = 423 (0x1a7), region = 28  ;;  %s2549_s25 = sand.u32 (!%p2533_p5), 1, %s2403_s10  }
  0x32   : > { %s1679_s26 = sshll.u32 (!%p2533_p5), %s2549_s25, 2  ;;  %s178_s27 = scalar_lea.sflag (!%p2533_p5), [#allocation3], %s2549_s25 }
  0x33   : > { %s181_s15 = scalar_lea.vmem (!%p2533_p5), [#allocation2], %s1679_s26 }
  0x36   : > { %2386 = dma.done.wait (%p2488_p8), %s178_s27, 64  }
  0x37   : > { %2388 = vsyncadd (%p2488_p8), %s178_s27, 4294967232  ;;  %s187_s5 = scalar_lea.sflag [#allocation6], %s2549_s25  ;;  %s2558_s16 = scalar_lea.vmem [#allocation5], %s1679_s26 }
  0x38   : > { %2390 = dma.done.wait (%p2488_p8), %s187_s5, 64  }
  0x39   : > { %2392 = vsyncadd (%p2488_p8), %s187_s5, 4294967232  ;;  %v218_v0 = vld [vmem:[%s181_s15] sm:$0xf]  ;;  %v227_v2 = vlaneseq  ;;  %v2423_v43 = vmov 1.0|1.0   ;;  %s1681_s21 = sshll.u32 %s2549_s25, 3 }
  0x3a   : > { %v219_v1 = vadd.f32 1.0, %v218_v0  ;;  %v2570_v6 = vld.sshfl [vmem:[%s2558_s16] sm:$0x33 pattern:$0x76325410]  ;;  %s2206_s18 = sshll.u32 %s2411_s12, 7 }
  0x3b   : > { %v2567_v5 = vshrl.u32 %v227_v2, 7  ;;  %v2576_v8 = vcombine.high %v2570_v6, %v2570_v6  ;;  %s215_s19 = scalar_lea.vmem [#allocation7], %s1681_s21  ;;  %s1559_s3 = scalar_lea.hbm %s4098_s2, %s2206_s18 }
  0x3c   : > { %v2564_v3 = vmul.f32 7.5, %v219_v1  ;;  %s1561_s20 = sshll.u32 %s215_s19, 4  ;;  %s1545_s7 = scalar_lea.sflag [#allocation4], %s2549_s25  ;;  %s1562_s20 = int_to_ptr.vmem [resolvable:$true] %s1561_s20 }
  0x3d   : > { %551 = vmatprep.mubr.bf16.mxu0 %v2576_v8  ;;  %870 = vmatprep.mubr.bf16.mxu1 %v2576_v8  ;;  %v270_v10 = vsub.s32 1, %v2567_v5  ;;  %v274_v14 = vsub.s32 3, %v2567_v5  ;;  %v2592_v18 = vadd.s32 112, %v2567_v5  ;;  %v2595_v19 = vadd.s32 120, %v2567_v5  ;;  %s2335_s8 = scalar_lea.vmem %s1562_s20, 128  ;;  %s2425_s30 = smov [#allocation7]  }
  0x3e   : > { %v221_v4 = vfloor.f32 %v2564_v3  ;;  %v2598_v20 = vadd.s32 96, %v2567_v5  ;;  %v2601_v26 = vadd.s32 104, %v2567_v5  ;;  %v2604_v27 = vadd.s32 80, %v2567_v5  ;;  %p2336_p8 = scmp.ne.s32.totalorder %s1562_s20, %s2335_s8  ;;  %s2339_s12 = sshll.u32 %s2425_s30, 4  ;;  %s2340_s12 = int_to_ptr.vmem [resolvable:$false] %s2339_s12 }
  0x3f   : > { %v2607_v28 = vadd.s32 88, %v2567_v5  ;;  %v2667_v44 = vadd.s32 64, %v2567_v5  ;;  %v2670_v45 = vadd.s32 72, %v2567_v5  ;;  %v2693_v46 = vadd.s32 48, %v2567_v5  ;;  %s2341_s4 = scalar_lea.vmem %s2340_s12, 256  ;;  %p2342_p13 = scmp.lt.s32.totalorder %s1562_s20, %s2340_s12 }
  0x40   : > { %v2207_v7 = vtrunc.f32 %v221_v4  ;;  %v2696_v47 = vadd.s32 56, %v2567_v5  ;;  %v2714_v48 = vadd.s32 32, %v2567_v5  ;;  %v2722_v49 = vadd.s32 40, %v2567_v5  ;;  %p2337_p0 = pnand %p2336_p8, %p2492_p9  ;;  %p2343_p5 = scmp.lt.s32.totalorder %s2341_s4, %s2335_s8 }
  0x41   : > { %v2725_v50 = vadd.s32 16, %v2567_v5  ;;  %v2733_v51 = vadd.s32 24, %v2567_v5  ;;  %v2736_v52 = vadd.s32 8, %v2567_v5  ;;  %v2750_v53 = vadd.s32 240, %v2567_v5 }
  0x42   : > { %v2578_v9 = vcvt.f32.s32 %v2207_v7  ;;  %v2753_v54 = vadd.s32 248, %v2567_v5  ;;  %v2767_v55 = vadd.s32 224, %v2567_v5  ;;  %v2770_v56 = vadd.s32 232, %v2567_v5  ;;  %p2338_p3 = pneg %p2337_p0  ;;  %p2344_p12 = por %p2343_p5, %p2342_p13 }
  0x43   : > { %v2784_v57 = vadd.s32 208, %v2567_v5  ;;  %v2787_v58 = vadd.s32 216, %v2567_v5  ;;  %v2801_v59 = vadd.s32 192, %v2567_v5  ;;  %v2804_v60 = vadd.s32 200, %v2567_v5 }
  0x44   : > { %v2584_v11 = vadd.s32 1, %v2578_v9  ;;  %v265_v12 = vmul.u32 16, %v2578_v9  ;;  %v266_v13 = vrot.slane %v2578_v9, 7  ;;  %v2818_v61 = vadd.s32 176, %v2567_v5  ;;  %p2345_p6 = pnand %p2344_p12, %p2338_p3 }
  0x45   : > { %v2821_v62 = vadd.s32 184, %v2567_v5  ;;  %v2835_v63 = vadd.s32 160, %v2567_v5  ;;  %v2838_v0 = vadd.s32 168, %v2567_v5  ;;  %v2852_v1 = vadd.s32 144, %v2567_v5 }
  0x46   : > { %v267_v15 = vadd.s32 %v266_v13, %v265_v12  ;;  %v596_v16 = vrot.slane %v2584_v11, 7  ;;  %v913_v17 = vmul.u32 16, %v2584_v11  ;;  %v2855_v2 = vadd.s32 152, %v2567_v5 }
  0x47   : > { %v2869_v7 = vadd.s32 128, %v2567_v5 }
  0x48   : > { %v271_v21 = vrot.slane %v267_v15, %v270_v10  ;;  %v275_v22 = vrot.slane %v267_v15, %v274_v14  ;;  %v597_v23 = vadd.s32 %v596_v16, %v265_v12  ;;  %v914_v24 = vadd.s32 %v913_v17, %v266_v13 }
  0x49   : > { %v1231_v25 = vadd.s32 %v913_v17, %v596_v16 }
  0x4a   : > { %v2609_v29 = vrot.slane %v271_v21, %v270_v10  ;;  %v2611_v30 = vrot.slane %v275_v22, %v270_v10  ;;  %v601_v31 = vrot.slane %v597_v23, %v270_v10  ;;  %v605_v32 = vrot.slane %v597_v23, %v274_v14 }
  0x4b   : > { %v918_v33 = vrot.slane %v914_v24, %v270_v10  ;;  %v922_v34 = vrot.slane %v914_v24, %v274_v14  ;;  %v1235_v35 = vrot.slane %v1231_v25, %v270_v10  ;;  %v1239_v36 = vrot.slane %v1231_v25, %v274_v14 }
  0x4c   : > { %v2613_v37 = vrot.slane %v601_v31, %v270_v10  ;;  %v2615_v38 = vrot.slane %v605_v32, %v270_v10  ;;  %vm313_vm0 = vcmp.eq.s32.totalorder %v2592_v18, %v2611_v30  ;;  %vm315_vm1 = vcmp.eq.s32.totalorder %v2595_v19, %v2611_v30 }
  0x4d   : > { %v2621_v39 = vrot.slane %v918_v33, %v270_v10  ;;  %v2623_v40 = vrot.slane %v922_v34, %v270_v10  ;;  %v2625_v41 = vrot.slane %v1235_v35, %v270_v10  ;;  %v2627_v42 = vrot.slane %v1239_v36, %v270_v10  ;;  %vm1747_vm2 = vmpackc.low %vm315_vm1, %vm313_vm0 }
  0x4e   : > { %1748 = vmatprep.subr.msk.bf16.mxu0 %vm1747_vm2, %v2423_v43  ;;  %vm312_vm3 = vcmp.eq.s32.totalorder %v2592_v18, %v2609_v29  ;;  %vm314_vm4 = vcmp.eq.s32.totalorder %v2595_v19, %v2609_v29  ;;  %vm643_vm5 = vcmp.eq.s32.totalorder %v2592_v18, %v2615_v38  ;;  %vm645_vm6 = vcmp.eq.s32.totalorder %v2595_v19, %v2615_v38 }
  0x4f   : > { %vm1749_vm7 = vmpackc.low %vm314_vm4, %vm312_vm3  ;;  %vm642_vm8 = vcmp.eq.s32.totalorder %v2592_v18, %v2613_v37  ;;  %vm644_vm9 = vcmp.eq.s32.totalorder %v2595_v19, %v2613_v37  ;;  %vm309_vm10 = vcmp.eq.s32.totalorder %v2598_v20, %v2611_v30  ;;  %vm311_vm11 = vcmp.eq.s32.totalorder %v2601_v26, %v2611_v30 }
  0x50   : > { %1750 = vmatpush1.bf16.msk.msra.mxu0 %vm1749_vm7, %v2423_v43  ;;  %vm1877_vm12 = vmpackc.low %vm645_vm6, %vm643_vm5  ;;  %vm308_vm13 = vcmp.eq.s32.totalorder %v2598_v20, %v2609_v29  ;;  %vm310_vm14 = vcmp.eq.s32.totalorder %v2601_v26, %v2609_v29  ;;  %vm639_vm0 = vcmp.eq.s32.totalorder %v2598_v20, %v2615_v38  ;;  %vm641_vm1 = vcmp.eq.s32.totalorder %v2601_v26, %v2615_v38 }
  0x51   : > { %1878 = vmatprep.subr.msk.bf16.mxu1 %vm1877_vm12, %v2423_v43  ;;  %vm1879_vm15 = vmpackc.low %vm644_vm9, %vm642_vm8  ;;  %vm638_vm3 = vcmp.eq.s32.totalorder %v2598_v20, %v2613_v37  ;;  %vm640_vm4 = vcmp.eq.s32.totalorder %v2601_v26, %v2613_v37  ;;  %vm305_vm6 = vcmp.eq.s32.totalorder %v2604_v27, %v2611_v30  ;;  %vm307_vm7 = vcmp.eq.s32.totalorder %v2607_v28, %v2611_v30 }
  0x52   : > { %1880 = vmatpush1.bf16.msk.msra.mxu1 %vm1879_vm15, %v2423_v43  ;;  %vm1751_vm2 = vmpackc.low %vm311_vm11, %vm309_vm10  ;;  %vm304_vm9 = vcmp.eq.s32.totalorder %v2604_v27, %v2609_v29  ;;  %vm306_vm10 = vcmp.eq.s32.totalorder %v2607_v28, %v2609_v29  ;;  %vm635_vm12 = vcmp.eq.s32.totalorder %v2604_v27, %v2615_v38  ;;  %vm634_vm15 = vcmp.eq.s32.totalorder %v2604_v27, %v2613_v37 }
  0x53   : > { %1752 = vmatprep.subr.msk.bf16.mxu0 %vm1751_vm2, %v2423_v43  ;;  %vm1753_vm5 = vmpackc.low %vm310_vm14, %vm308_vm13  ;;  %vm637_vm13 = vcmp.eq.s32.totalorder %v2607_v28, %v2615_v38  ;;  %vm301_vm2 = vcmp.eq.s32.totalorder %v2667_v44, %v2611_v30  ;;  %v2872_v10 = vadd.s32 136, %v2567_v5  ;;  %v577_v36 = vsub.s32 0, %v2567_v5 }
  0x54   : > { %1754 = vmatpush1.bf16.msk.msra.mxu0 %vm1753_vm5, %v2423_v43  ;;  %vm1881_vm8 = vmpackc.low %vm641_vm1, %vm639_vm0  ;;  %vm636_vm0 = vcmp.eq.s32.totalorder %v2607_v28, %v2613_v37  ;;  %vm300_vm5 = vcmp.eq.s32.totalorder %v2667_v44, %v2609_v29 }
  0x55   : > { %1882 = vmatprep.subr.msk.bf16.mxu1 %vm1881_vm8, %v2423_v43  ;;  %vm1883_vm11 = vmpackc.low %vm640_vm4, %vm638_vm3  ;;  %vm303_vm3 = vcmp.eq.s32.totalorder %v2670_v45, %v2611_v30  ;;  %vm631_vm8 = vcmp.eq.s32.totalorder %v2667_v44, %v2615_v38 }
  0x56   : > { %1884 = vmatpush1.bf16.msk.msra.mxu1 %vm1883_vm11, %v2423_v43  ;;  %vm1755_vm14 = vmpackc.low %vm307_vm7, %vm305_vm6  ;;  %vm302_vm6 = vcmp.eq.s32.totalorder %v2670_v45, %v2609_v29  ;;  %vm630_vm11 = vcmp.eq.s32.totalorder %v2667_v44, %v2613_v37 }
  0x57   : > { %1756 = vmatprep.subr.msk.bf16.mxu0 %vm1755_vm14, %v2423_v43  ;;  %vm1757_vm1 = vmpackc.low %vm306_vm10, %vm304_vm9  ;;  %vm633_vm9 = vcmp.eq.s32.totalorder %v2670_v45, %v2615_v38  ;;  %vm297_vm14 = vcmp.eq.s32.totalorder %v2693_v46, %v2611_v30 }
  0x58   : > { %1758 = vmatpush1.bf16.msk.msra.mxu0 %vm1757_vm1, %v2423_v43  ;;  %vm1885_vm4 = vmpackc.low %vm637_vm13, %vm635_vm12  ;;  %vm632_vm12 = vcmp.eq.s32.totalorder %v2670_v45, %v2613_v37  ;;  %vm296_vm1 = vcmp.eq.s32.totalorder %v2693_v46, %v2609_v29 }
  0x59   : > { %1886 = vmatprep.subr.msk.bf16.mxu1 %vm1885_vm4, %v2423_v43  ;;  %vm1887_vm7 = vmpackc.low %vm636_vm0, %vm634_vm15  ;;  %vm299_vm15 = vcmp.eq.s32.totalorder %v2696_v47, %v2611_v30  ;;  %vm627_vm4 = vcmp.eq.s32.totalorder %v2693_v46, %v2615_v38 }
  0x5a   : > { %1888 = vmatpush1.bf16.msk.msra.mxu1 %vm1887_vm7, %v2423_v43  ;;  %vm1759_vm10 = vmpackc.low %vm303_vm3, %vm301_vm2  ;;  %vm298_vm2 = vcmp.eq.s32.totalorder %v2696_v47, %v2609_v29  ;;  %vm626_vm7 = vcmp.eq.s32.totalorder %v2693_v46, %v2613_v37 }
  0x5b   : > { %1760 = vmatprep.subr.msk.bf16.mxu0 %vm1759_vm10, %v2423_v43  ;;  %vm1761_vm13 = vmpackc.low %vm302_vm6, %vm300_vm5  ;;  %vm629_vm5 = vcmp.eq.s32.totalorder %v2696_v47, %v2615_v38  ;;  %vm293_vm10 = vcmp.eq.s32.totalorder %v2714_v48, %v2611_v30 }
  0x5c   : > { %1762 = vmatpush1.bf16.msk.msra.mxu0 %vm1761_vm13, %v2423_v43  ;;  %vm1889_vm0 = vmpackc.low %vm633_vm9, %vm631_vm8  ;;  %vm628_vm8 = vcmp.eq.s32.totalorder %v2696_v47, %v2613_v37  ;;  %vm292_vm13 = vcmp.eq.s32.totalorder %v2714_v48, %v2609_v29 }
  0x5d   : > { %1890 = vmatprep.subr.msk.bf16.mxu1 %vm1889_vm0, %v2423_v43  ;;  %vm1891_vm3 = vmpackc.low %vm632_vm12, %vm630_vm11  ;;  %vm295_vm11 = vcmp.eq.s32.totalorder %v2722_v49, %v2611_v30  ;;  %vm623_vm0 = vcmp.eq.s32.totalorder %v2714_v48, %v2615_v38 }
  0x5e   : > { %1892 = vmatpush1.bf16.msk.msra.mxu1 %vm1891_vm3, %v2423_v43  ;;  %vm1763_vm6 = vmpackc.low %vm299_vm15, %vm297_vm14  ;;  %vm294_vm14 = vcmp.eq.s32.totalorder %v2722_v49, %v2609_v29  ;;  %vm622_vm3 = vcmp.eq.s32.totalorder %v2714_v48, %v2613_v37 }
  0x5f   : > { %1764 = vmatprep.subr.msk.bf16.mxu0 %vm1763_vm6, %v2423_v43  ;;  %vm1765_vm9 = vmpackc.low %vm298_vm2, %vm296_vm1  ;;  %vm625_vm1 = vcmp.eq.s32.totalorder %v2722_v49, %v2615_v38  ;;  %vm289_vm6 = vcmp.eq.s32.totalorder %v2725_v50, %v2611_v30 }
  0x60   : > { %1766 = vmatpush1.bf16.msk.msra.mxu0 %vm1765_vm9, %v2423_v43  ;;  %vm1893_vm12 = vmpackc.low %vm629_vm5, %vm627_vm4  ;;  %vm624_vm4 = vcmp.eq.s32.totalorder %v2722_v49, %v2613_v37  ;;  %vm288_vm9 = vcmp.eq.s32.totalorder %v2725_v50, %v2609_v29 }
  0x61   : > { %1894 = vmatprep.subr.msk.bf16.mxu1 %vm1893_vm12, %v2423_v43  ;;  %vm1895_vm15 = vmpackc.low %vm628_vm8, %vm626_vm7  ;;  %vm291_vm7 = vcmp.eq.s32.totalorder %v2733_v51, %v2611_v30  ;;  %vm619_vm12 = vcmp.eq.s32.totalorder %v2725_v50, %v2615_v38 }
  0x62   : > { %1896 = vmatpush1.bf16.msk.msra.mxu1 %vm1895_vm15, %v2423_v43  ;;  %vm1767_vm2 = vmpackc.low %vm295_vm11, %vm293_vm10  ;;  %vm290_vm10 = vcmp.eq.s32.totalorder %v2733_v51, %v2609_v29  ;;  %vm620_vm15 = vcmp.eq.s32.totalorder %v2733_v51, %v2613_v37 }
  0x63   : > { %1768 = vmatprep.subr.msk.bf16.mxu0 %vm1767_vm2, %v2423_v43  ;;  %vm1769_vm5 = vmpackc.low %vm294_vm14, %vm292_vm13  ;;  %vm621_vm13 = vcmp.eq.s32.totalorder %v2733_v51, %v2615_v38  ;;  %vm618_vm14 = vcmp.eq.s32.totalorder %v2725_v50, %v2613_v37  ;;  %vm287_vm2 = vcmp.eq.s32.totalorder %v2736_v52, %v2611_v30 }
  0x64   : > { %1770 = vmatpush1.bf16.msk.msra.mxu0 %vm1769_vm5, %v2423_v43  ;;  %vm1897_vm8 = vmpackc.low %vm625_vm1, %vm623_vm0  ;;  %vm285_vm1 = vcmp.eq.s32.totalorder %v2567_v5, %v2611_v30 }
  0x65   : > { %1898 = vmatprep.subr.msk.bf16.mxu1 %vm1897_vm8, %v2423_v43  ;;  %vm1899_vm11 = vmpackc.low %vm624_vm4, %vm622_vm3  ;;  %vm284_vm3 = vcmp.eq.s32.totalorder %v2567_v5, %v2609_v29  ;;  %vm286_vm4 = vcmp.eq.s32.totalorder %v2736_v52, %v2609_v29  ;;  %vm333_vm8 = vcmp.eq.s32.totalorder %v2801_v59, %v2611_v30 }
  0x66   : > { %1900 = vmatpush1.bf16.msk.msra.mxu1 %vm1899_vm11, %v2423_v43  ;;  %vm1771_vm0 = vmpackc.low %vm291_vm7, %vm289_vm6  ;;  %vm615_vm6 = vcmp.eq.s32.totalorder %v2567_v5, %v2615_v38  ;;  %vm617_vm7 = vcmp.eq.s32.totalorder %v2736_v52, %v2615_v38  ;;  %vm335_vm11 = vcmp.eq.s32.totalorder %v2804_v60, %v2611_v30 }
  0x67   : > { %1772 = vmatprep.subr.msk.bf16.mxu0 %vm1771_vm0, %v2423_v43  ;;  %vm1773_vm5 = vmpackc.low %vm290_vm10, %vm288_vm9  ;;  %vm345_vm10 = vcmp.eq.s32.totalorder %v2750_v53, %v2611_v30  ;;  %vm347_vm0 = vcmp.eq.s32.totalorder %v2753_v54, %v2611_v30 }
  0x68   : > { %1774 = vmatpush1.bf16.msk.msra.mxu0 %vm1773_vm5, %v2423_v43  ;;  %vm1901_vm9 = vmpackc.low %vm621_vm13, %vm619_vm12  ;;  %vm675_vm13 = vcmp.eq.s32.totalorder %v2750_v53, %v2615_v38  ;;  %vm677_vm5 = vcmp.eq.s32.totalorder %v2753_v54, %v2615_v38 }
  0x69   : > { %1902 = vmatprep.subr.msk.bf16.mxu1 %vm1901_vm9, %v2423_v43  ;;  %vm1903_vm12 = vmpackc.low %vm620_vm15, %vm618_vm14  ;;  %vm341_vm15 = vcmp.eq.s32.totalorder %v2767_v55, %v2611_v30  ;;  %vm343_vm9 = vcmp.eq.s32.totalorder %v2770_v56, %v2611_v30 }
  0x6a   : > { %1904 = vmatpush1.bf16.msk.msra.mxu1 %vm1903_vm12, %v2423_v43  ;;  %vm1775_vm14 = vmpackc.low %vm287_vm2, %vm285_vm1  ;;  %vm671_vm2 = vcmp.eq.s32.totalorder %v2767_v55, %v2615_v38  ;;  %vm673_vm12 = vcmp.eq.s32.totalorder %v2770_v56, %v2615_v38 }
  0x6b   : > { %1776 = vmatprep.subr.msk.bf16.mxu0 %vm1775_vm14, %v2423_v43  ;;  %vm1777_vm1 = vmpackc.low %vm286_vm4, %vm284_vm3  ;;  %vm667_vm4 = vcmp.eq.s32.totalorder %v2784_v57, %v2615_v38 }
  0x6c   : > { %1778 = vmatpush1.bf16.msk.msra.mxu0 %vm1777_vm1, %v2423_v43  ;;  %vm1905_vm3 = vmpackc.low %vm617_vm7, %vm615_vm6  ;;  %vm4105_vm1 = vcmp.eq.s32.totalorder %v2567_v5, %v2613_v37  ;;  %vm4106_vm6 = vcmp.eq.s32.totalorder %v2736_v52, %v2613_v37 }
  0x6d   : > { %1906 = vmatprep.subr.msk.bf16.mxu1 %vm1905_vm3, %v2423_v43  ;;  %vm1907_vm7 = vmpackc.low %vm4106_vm6, %vm4105_vm1  ;;  %vm665_vm1 = vcmp.eq.s32.totalorder %v2804_v60, %v2615_v38 }
  0x6e   : > { %1908 = vmatpush1.bf16.msk.msra.mxu1 %vm1907_vm7, %v2423_v43  ;;  %vm1779_vm3 = vmpackc.low %vm347_vm0, %vm345_vm10  ;;  %vm4107_vm10 = vcmp.eq.s32.totalorder %v2750_v53, %v2609_v29  ;;  %vm4108_vm0 = vcmp.eq.s32.totalorder %v2753_v54, %v2609_v29 }
  0x6f   : > { %1780 = vmatprep.subr.msk.bf16.mxu0 %vm1779_vm3, %v2423_v43  ;;  %vm1781_vm6 = vmpackc.low %vm4108_vm0, %vm4107_vm10  ;;  %vm663_vm3 = vcmp.eq.s32.totalorder %v2801_v59, %v2615_v38  ;;  %vm331_vm0 = vcmp.eq.s32.totalorder %v2821_v62, %v2611_v30 }
  0x70   : > { %1782 = vmatpush2.bf16.msk.msra.mxu0 %vm1781_vm6, %v2423_v43  ;;  %vm1909_vm10 = vmpackc.low %vm677_vm5, %vm675_vm13  ;;  %vm4109_vm13 = vcmp.eq.s32.totalorder %v2750_v53, %v2613_v37  ;;  %vm4110_vm5 = vcmp.eq.s32.totalorder %v2753_v54, %v2613_v37 }
  0x71   : > { %1910 = vmatprep.subr.msk.bf16.mxu1 %vm1909_vm10, %v2423_v43  ;;  %vm1911_vm14 = vmpackc.low %vm4110_vm5, %vm4109_vm13  ;;  %vm329_vm10 = vcmp.eq.s32.totalorder %v2818_v61, %v2611_v30 }
  0x72   : > { %1912 = vmatpush2.bf16.msk.msra.mxu1 %vm1911_vm14, %v2423_v43  ;;  %vm1783_vm13 = vmpackc.low %vm343_vm9, %vm341_vm15  ;;  %vm4111_vm15 = vcmp.eq.s32.totalorder %v2767_v55, %v2609_v29  ;;  %vm4112_vm9 = vcmp.eq.s32.totalorder %v2770_v56, %v2609_v29 }
  0x73   : > { %1784 = vmatprep.subr.msk.bf16.mxu0 %vm1783_vm13, %v2423_v43  ;;  %vm1785_vm7 = vmpackc.low %vm4112_vm9, %vm4111_vm15 }
  0x74   : > { %1786 = vmatpush2.bf16.msk.msra.mxu0 %vm1785_vm7, %v2423_v43  ;;  %vm1913_vm15 = vmpackc.low %vm673_vm12, %vm671_vm2  ;;  %vm4113_vm2 = vcmp.eq.s32.totalorder %v2767_v55, %v2613_v37  ;;  %vm4114_vm12 = vcmp.eq.s32.totalorder %v2770_v56, %v2613_v37  ;;  %vm657_vm7 = vcmp.eq.s32.totalorder %v2838_v0, %v2615_v38 }
  0x75   : > { %1914 = vmatprep.subr.msk.bf16.mxu1 %vm1913_vm15, %v2423_v43  ;;  %vm1915_vm6 = vmpackc.low %vm4114_vm12, %vm4113_vm2  ;;  %vm4115_vm2 = vcmp.eq.s32.totalorder %v2784_v57, %v2611_v30  ;;  %vm4116_vm12 = vcmp.eq.s32.totalorder %v2787_v58, %v2611_v30  ;;  %vm325_vm15 = vcmp.eq.s32.totalorder %v2835_v63, %v2611_v30 }
  0x76   : > { %1916 = vmatpush2.bf16.msk.msra.mxu1 %vm1915_vm6, %v2423_v43  ;;  %vm1787_vm5 = vmpackc.low %vm4116_vm12, %vm4115_vm2  ;;  %vm4117_vm2 = vcmp.eq.s32.totalorder %v2784_v57, %v2609_v29  ;;  %vm4118_vm12 = vcmp.eq.s32.totalorder %v2787_v58, %v2609_v29  ;;  %vm323_vm6 = vcmp.eq.s32.totalorder %v2855_v2, %v2611_v30 }
  0x77   : > { %1788 = vmatprep.subr.msk.bf16.mxu0 %vm1787_vm5, %v2423_v43  ;;  %vm1789_vm14 = vmpackc.low %vm4118_vm12, %vm4117_vm2  ;;  %vm4119_vm2 = vcmp.eq.s32.totalorder %v2787_v58, %v2615_v38  ;;  %vm655_vm5 = vcmp.eq.s32.totalorder %v2835_v63, %v2615_v38 }
  0x78   : > { %1790 = vmatpush2.bf16.msk.msra.mxu0 %vm1789_vm14, %v2423_v43  ;;  %vm1917_vm12 = vmpackc.low %vm4119_vm2, %vm667_vm4  ;;  %vm4120_vm4 = vcmp.eq.s32.totalorder %v2784_v57, %v2613_v37  ;;  %vm4121_vm2 = vcmp.eq.s32.totalorder %v2787_v58, %v2613_v37 }
  0x79   : > { %1918 = vmatprep.subr.msk.bf16.mxu1 %vm1917_vm12, %v2423_v43  ;;  %vm1919_vm13 = vmpackc.low %vm4121_vm2, %vm4120_vm4  ;;  %vm654_vm2 = vcmp.eq.s32.totalorder %v2835_v63, %v2613_v37  ;;  %vm321_vm12 = vcmp.eq.s32.totalorder %v2852_v1, %v2611_v30 }
  0x7a   : > { %1920 = vmatpush2.bf16.msk.msra.mxu1 %vm1919_vm13, %v2423_v43  ;;  %vm1791_vm4 = vmpackc.low %vm335_vm11, %vm333_vm8  ;;  %vm4122_vm8 = vcmp.eq.s32.totalorder %v2801_v59, %v2609_v29  ;;  %vm4123_vm11 = vcmp.eq.s32.totalorder %v2804_v60, %v2609_v29 }
  0x7b   : > { %1792 = vmatprep.subr.msk.bf16.mxu0 %vm1791_vm4, %v2423_v43  ;;  %vm1793_vm9 = vmpackc.low %vm4123_vm11, %vm4122_vm8  ;;  %vm651_vm11 = vcmp.eq.s32.totalorder %v2852_v1, %v2615_v38 }
  0x7c   : > { %1794 = vmatpush2.bf16.msk.msra.mxu0 %vm1793_vm9, %v2423_v43  ;;  %vm1921_vm8 = vmpackc.low %vm665_vm1, %vm663_vm3  ;;  %vm4124_vm9 = vcmp.eq.s32.totalorder %v2801_v59, %v2613_v37  ;;  %vm4125_vm1 = vcmp.eq.s32.totalorder %v2804_v60, %v2613_v37 }
  0x7d   : > { %1922 = vmatprep.subr.msk.bf16.mxu1 %vm1921_vm8, %v2423_v43  ;;  %vm1923_vm3 = vmpackc.low %vm4125_vm1, %vm4124_vm9  ;;  %vm4147_vm1 = vcmp.eq.s32.totalorder %v2592_v18, %v2623_v40 }
  0x7e   : > { %1924 = vmatpush2.bf16.msk.msra.mxu1 %vm1923_vm3, %v2423_v43  ;;  %vm1795_vm9 = vmpackc.low %vm331_vm0, %vm329_vm10  ;;  %vm4126_vm0 = vcmp.eq.s32.totalorder %v2818_v61, %v2609_v29  ;;  %vm4127_vm10 = vcmp.eq.s32.totalorder %v2821_v62, %v2609_v29  ;;  %vm1302_vm3 = vcmp.eq.s32.totalorder %v2787_v58, %v2625_v41 }
  0x7f   : > { %1796 = vmatprep.subr.msk.bf16.mxu0 %vm1795_vm9, %v2423_v43  ;;  %vm1797_vm14 = vmpackc.low %vm4127_vm10, %vm4126_vm0  ;;  %vm4128_vm0 = vcmp.eq.s32.totalorder %v2818_v61, %v2615_v38  ;;  %vm4129_vm10 = vcmp.eq.s32.totalorder %v2821_v62, %v2615_v38  ;;  %vm647_vm9 = vcmp.eq.s32.totalorder %v2869_v7, %v2615_v38 }
  0x80   : > { %1798 = vmatpush2.bf16.msk.msra.mxu0 %vm1797_vm14, %v2423_v43  ;;  %vm1925_vm8 = vmpackc.low %vm4129_vm10, %vm4128_vm0  ;;  %vm4130_vm0 = vcmp.eq.s32.totalorder %v2818_v61, %v2613_v37  ;;  %vm4131_vm10 = vcmp.eq.s32.totalorder %v2821_v62, %v2613_v37  ;;  %vm646_vm14 = vcmp.eq.s32.totalorder %v2869_v7, %v2613_v37 }
  0x81   : > { %1926 = vmatprep.subr.msk.bf16.mxu1 %vm1925_vm8, %v2423_v43  ;;  %vm1927_vm13 = vmpackc.low %vm4131_vm10, %vm4130_vm0  ;;  %vm4132_vm0 = vcmp.eq.s32.totalorder %v2838_v0, %v2611_v30  ;;  %vm1300_vm8 = vcmp.eq.s32.totalorder %v2784_v57, %v2625_v41 }
  0x82   : > { %1928 = vmatpush2.bf16.msk.msra.mxu1 %vm1927_vm13, %v2423_v43  ;;  %vm1799_vm10 = vmpackc.low %vm4132_vm0, %vm325_vm15  ;;  %vm4133_vm15 = vcmp.eq.s32.totalorder %v2835_v63, %v2609_v29  ;;  %vm4134_vm0 = vcmp.eq.s32.totalorder %v2838_v0, %v2609_v29 }
  0x83   : > { %1800 = vmatprep.subr.msk.bf16.mxu0 %vm1799_vm10, %v2423_v43  ;;  %vm1801_vm4 = vmpackc.low %vm4134_vm0, %vm4133_vm15  ;;  %vm979_vm15 = vcmp.eq.s32.totalorder %v2801_v59, %v2621_v39  ;;  %vm1298_vm0 = vcmp.eq.s32.totalorder %v2804_v60, %v2625_v41 }
  0x84   : > { %1802 = vmatpush2.bf16.msk.msra.mxu0 %vm1801_vm4, %v2423_v43  ;;  %vm1929_vm10 = vmpackc.low %vm657_vm7, %vm655_vm5  ;;  %vm4135_vm7 = vcmp.eq.s32.totalorder %v2838_v0, %v2613_v37  ;;  %vm1296_vm4 = vcmp.eq.s32.totalorder %v2801_v59, %v2625_v41 }
  0x85   : > { %1930 = vmatprep.subr.msk.bf16.mxu1 %vm1929_vm10, %v2423_v43  ;;  %vm1931_vm5 = vmpackc.low %vm4135_vm7, %vm654_vm2 }
  0x86   : > { %1932 = vmatpush2.bf16.msk.msra.mxu1 %vm1931_vm5, %v2423_v43  ;;  %vm1803_vm2 = vmpackc.low %vm323_vm6, %vm321_vm12  ;;  %vm4136_vm5 = vcmp.eq.s32.totalorder %v2852_v1, %v2609_v29  ;;  %vm4137_vm6 = vcmp.eq.s32.totalorder %v2855_v2, %v2609_v29 }
  0x87   : > { %1804 = vmatprep.subr.msk.bf16.mxu0 %vm1803_vm2, %v2423_v43  ;;  %vm1805_vm12 = vmpackc.low %vm4137_vm6, %vm4136_vm5  ;;  %vm4138_vm2 = vcmp.eq.s32.totalorder %v2855_v2, %v2615_v38  ;;  %vm1248_vm6 = vcmp.eq.s32.totalorder %v2567_v5, %v2625_v41 }
  0x88   : > { %1806 = vmatpush2.bf16.msk.msra.mxu0 %vm1805_vm12, %v2423_v43  ;;  %vm1933_vm5 = vmpackc.low %vm4138_vm2, %vm651_vm11  ;;  %vm4139_vm12 = vcmp.eq.s32.totalorder %v2852_v1, %v2613_v37  ;;  %vm4140_vm11 = vcmp.eq.s32.totalorder %v2855_v2, %v2613_v37 }
  0x89   : > { %1934 = vmatprep.subr.msk.bf16.mxu1 %vm1933_vm5, %v2423_v43  ;;  %vm1935_vm2 = vmpackc.low %vm4140_vm11, %vm4139_vm12  ;;  %vm4141_vm5 = vcmp.eq.s32.totalorder %v2869_v7, %v2611_v30  ;;  %vm4142_vm12 = vcmp.eq.s32.totalorder %v2872_v10, %v2611_v30 }
  0x8a   : > { %1936 = vmatpush2.bf16.msk.msra.mxu1 %vm1935_vm2, %v2423_v43  ;;  %vm1807_vm11 = vmpackc.low %vm4142_vm12, %vm4141_vm5  ;;  %vm4143_vm2 = vcmp.eq.s32.totalorder %v2869_v7, %v2609_v29  ;;  %vm4144_vm5 = vcmp.eq.s32.totalorder %v2872_v10, %v2609_v29 }
  0x8b   : > { %1808 = vmatprep.subr.msk.bf16.mxu0 %vm1807_vm11, %v2423_v43  ;;  %vm1809_vm12 = vmpackc.low %vm4144_vm5, %vm4143_vm2  ;;  %vm4145_vm11 = vcmp.eq.s32.totalorder %v2872_v10, %v2615_v38 }
  0x8c   : > { %1810 = vmatpush2.bf16.msk.msra.mxu0 %vm1809_vm12, %v2423_v43  ;;  %vm1937_vm2 = vmpackc.low %vm4145_vm11, %vm647_vm9  ;;  %vm4146_vm9 = vcmp.eq.s32.totalorder %v2872_v10, %v2613_v37  ;;  %vm4152_vm11 = vcmp.eq.s32.totalorder %v2595_v19, %v2627_v42 }
  0x8d   : > { %1938 = vmatprep.subr.msk.bf16.mxu1 %vm1937_vm2, %v2423_v43  ;;  %vm1939_vm12 = vmpackc.low %vm4146_vm9, %vm646_vm14  ;;  %vm4148_vm2 = vcmp.eq.s32.totalorder %v2595_v19, %v2623_v40  ;;  %vm4149_vm14 = vcmp.eq.s32.totalorder %v2592_v18, %v2621_v39  ;;  %vm4150_vm9 = vcmp.eq.s32.totalorder %v2595_v19, %v2621_v39 }
  0x8e   : > { %1940 = vmatpush2.bf16.msk.msra.mxu1 %vm1939_vm12, %v2423_v43  ;;  %vm2005_vm13 = vmpackc.low %vm4148_vm2, %vm4147_vm1  ;;  %vm4151_vm12 = vcmp.eq.s32.totalorder %v2592_v18, %v2627_v42  ;;  %vm4154_vm2 = vcmp.eq.s32.totalorder %v2595_v19, %v2625_v41  ;;  %v222_v19 = vsub.f32 %v2564_v3, %v221_v4 }
  0x8f   : > { %552 = vmatmul.mubr.bf16.vlgmr.msra.gmra.mxu0 %v2570_v6  ;;  %2006 = vmatprep.subr.msk.bf16.mxu0 %vm2005_vm13, %v2423_v43  ;;  %vm2007_vm7 = vmpackc.low %vm4150_vm9, %vm4149_vm14  ;;  %vm4153_vm13 = vcmp.eq.s32.totalorder %v2592_v18, %v2625_v41  ;;  %vm4155_vm14 = vcmp.eq.s32.totalorder %v2598_v20, %v2623_v40 }
  0x90   : > { %2008 = vmatpush1.bf16.msk.msra.mxu0 %vm2007_vm7, %v2423_v43  ;;  %vm2135_vm1 = vmpackc.low %vm4152_vm11, %vm4151_vm12  ;;  %1187 = vmatprep.mubr.bf16.mxu0 %v2576_v8  ;;  %vm4156_vm11 = vcmp.eq.s32.totalorder %v2601_v26, %v2623_v40  ;;  %vm4157_vm12 = vcmp.eq.s32.totalorder %v2598_v20, %v2621_v39  ;;  %v223_v22 = vsub.f32 1.0, %v222_v19  ;;  %v909_v31 = vrot.slane %v222_v19, 7 }
  0x91   : > { %871 = vmatmul.mubr.bf16.vlgmr.msra.gmra.mxu1 %v2570_v6  ;;  %2136 = vmatprep.subr.msk.bf16.mxu1 %vm2135_vm1, %v2423_v43  ;;  %vm2137_vm7 = vmpackc.low %vm4154_vm2, %vm4153_vm13  ;;  %vm4158_vm1 = vcmp.eq.s32.totalorder %v2601_v26, %v2621_v39  ;;  %vm4159_vm2 = vcmp.eq.s32.totalorder %v2598_v20, %v2627_v42  ;;  %v2278_v6 = vld.sshfl [vmem:[%s2558_s16] sm:$0x33 pattern:$0x76325410] }
  0x92   : > { %2138 = vmatpush1.bf16.msk.msra.mxu1 %vm2137_vm7, %v2423_v43  ;;  %vm2009_vm9 = vmpackc.low %vm4156_vm11, %vm4155_vm14  ;;  %1504 = vmatprep.mubr.bf16.mxu1 %v2576_v8  ;;  %vm4160_vm7 = vcmp.eq.s32.totalorder %v2601_v26, %v2627_v42  ;;  %vm4161_vm11 = vcmp.eq.s32.totalorder %v2598_v20, %v2625_v41  ;;  %v2424_v20 = vmov 0   ;;  %v261_v25 = vrot.slane %v223_v22, 7 }
  0x93   : > { %2010 = vmatprep.subr.msk.bf16.mxu0 %vm2009_vm9, %v2423_v43  ;;  %vm2011_vm13 = vmpackc.low %vm4158_vm1, %vm4157_vm12  ;;  %vm4162_vm9 = vcmp.eq.s32.totalorder %v2601_v26, %v2625_v41  ;;  %vm4163_vm12 = vcmp.eq.s32.totalorder %v2604_v27, %v2623_v40  ;;  %vm4164_vm1 = vcmp.eq.s32.totalorder %v2607_v28, %v2623_v40  ;;  %v910_v35 = vrot.slane %v909_v31, 2 }
  0x94   : > { %2012 = vmatpush1.bf16.msk.msra.mxu0 %vm2011_vm13, %v2423_v43  ;;  %vm2139_vm14 = vmpackc.low %vm4160_vm7, %vm4159_vm2  ;;  %vm4165_vm2 = vcmp.eq.s32.totalorder %v2604_v27, %v2621_v39  ;;  %vm4166_vm7 = vcmp.eq.s32.totalorder %v2607_v28, %v2621_v39  ;;  %v262_v30 = vrot.slane %v261_v25, 2 }
  0x95   : > { %2140 = vmatprep.subr.msk.bf16.mxu1 %vm2139_vm14, %v2423_v43  ;;  %vm2141_vm5 = vmpackc.low %vm4162_vm9, %vm4161_vm11  ;;  %vm4168_vm11 = vcmp.eq.s32.totalorder %v2607_v28, %v2627_v42 }
  0x96   : > { %2142 = vmatpush1.bf16.msk.msra.mxu1 %vm2141_vm5, %v2423_v43  ;;  %vm2013_vm13 = vmpackc.low %vm4164_vm1, %vm4163_vm12  ;;  %vm4167_vm5 = vcmp.eq.s32.totalorder %v2604_v27, %v2627_v42  ;;  %vm4169_vm12 = vcmp.eq.s32.totalorder %v2604_v27, %v2625_v41  ;;  %vm4170_vm1 = vcmp.eq.s32.totalorder %v2607_v28, %v2625_v41  ;;  %v264_v33 = vmul.f32 %v262_v30, %v223_v22 }
  0x97   : > { %2014 = vmatprep.subr.msk.bf16.mxu0 %vm2013_vm13, %v2423_v43  ;;  %vm2015_vm14 = vmpackc.low %vm4166_vm7, %vm4165_vm2  ;;  %vm4171_vm2 = vcmp.eq.s32.totalorder %v2667_v44, %v2623_v40  ;;  %vm4172_vm7 = vcmp.eq.s32.totalorder %v2670_v45, %v2623_v40  ;;  %v595_v34 = vmul.f32 %v262_v30, %v222_v19 }
  0x98   : > { %2016 = vmatpush1.bf16.msk.msra.mxu0 %vm2015_vm14, %v2423_v43  ;;  %vm2143_vm9 = vmpackc.low %vm4168_vm11, %vm4167_vm5  ;;  %vm4173_vm5 = vcmp.eq.s32.totalorder %v2667_v44, %v2621_v39  ;;  %vm4174_vm11 = vcmp.eq.s32.totalorder %v2670_v45, %v2621_v39 }
  0x99   : > { %2144 = vmatprep.subr.msk.bf16.mxu1 %vm2143_vm9, %v2423_v43  ;;  %vm2145_vm13 = vmpackc.low %vm4170_vm1, %vm4169_vm12  ;;  %vm4175_vm12 = vcmp.eq.s32.totalorder %v2667_v44, %v2627_v42  ;;  %vm4176_vm1 = vcmp.eq.s32.totalorder %v2670_v45, %v2627_v42 }
  0x9a   : > { %2146 = vmatpush1.bf16.msk.msra.mxu1 %vm2145_vm13, %v2423_v43  ;;  %vm2017_vm14 = vmpackc.low %vm4172_vm7, %vm4171_vm2  ;;  %vm4177_vm2 = vcmp.eq.s32.totalorder %v2667_v44, %v2625_v41  ;;  %vm4178_vm7 = vcmp.eq.s32.totalorder %v2670_v45, %v2625_v41 }
  0x9b   : > { %2018 = vmatprep.subr.msk.bf16.mxu0 %vm2017_vm14, %v2423_v43  ;;  %vm2019_vm9 = vmpackc.low %vm4174_vm11, %vm4173_vm5  ;;  %vm4179_vm5 = vcmp.eq.s32.totalorder %v2693_v46, %v2623_v40  ;;  %vm4180_vm11 = vcmp.eq.s32.totalorder %v2696_v47, %v2623_v40 }
  0x9c   : > { %2020 = vmatpush1.bf16.msk.msra.mxu0 %vm2019_vm9, %v2423_v43  ;;  %vm2147_vm13 = vmpackc.low %vm4176_vm1, %vm4175_vm12  ;;  %vm4181_vm12 = vcmp.eq.s32.totalorder %v2693_v46, %v2621_v39  ;;  %vm4182_vm1 = vcmp.eq.s32.totalorder %v2696_v47, %v2621_v39 }
  0x9d   : > { %2148 = vmatprep.subr.msk.bf16.mxu1 %vm2147_vm13, %v2423_v43  ;;  %vm2149_vm14 = vmpackc.low %vm4178_vm7, %vm4177_vm2  ;;  %vm4183_vm2 = vcmp.eq.s32.totalorder %v2693_v46, %v2627_v42  ;;  %vm4184_vm7 = vcmp.eq.s32.totalorder %v2696_v47, %v2627_v42 }
  0x9e   : > { %2150 = vmatpush1.bf16.msk.msra.mxu1 %vm2149_vm14, %v2423_v43  ;;  %vm2021_vm9 = vmpackc.low %vm4180_vm11, %vm4179_vm5  ;;  %vm4185_vm5 = vcmp.eq.s32.totalorder %v2693_v46, %v2625_v41  ;;  %vm4186_vm11 = vcmp.eq.s32.totalorder %v2696_v47, %v2625_v41 }
  0x9f   : > { %2022 = vmatprep.subr.msk.bf16.mxu0 %vm2021_vm9, %v2423_v43  ;;  %vm2023_vm13 = vmpackc.low %vm4182_vm1, %vm4181_vm12  ;;  %vm4187_vm12 = vcmp.eq.s32.totalorder %v2714_v48, %v2623_v40  ;;  %vm4188_vm1 = vcmp.eq.s32.totalorder %v2722_v49, %v2623_v40 }
  0xa0   : > { %2024 = vmatpush1.bf16.msk.msra.mxu0 %vm2023_vm13, %v2423_v43  ;;  %vm2151_vm14 = vmpackc.low %vm4184_vm7, %vm4183_vm2  ;;  %vm4189_vm2 = vcmp.eq.s32.totalorder %v2714_v48, %v2621_v39  ;;  %vm4190_vm7 = vcmp.eq.s32.totalorder %v2722_v49, %v2621_v39 }
  0xa1   : > { %2152 = vmatprep.subr.msk.bf16.mxu1 %vm2151_vm14, %v2423_v43  ;;  %vm2153_vm9 = vmpackc.low %vm4186_vm11, %vm4185_vm5  ;;  %vm4191_vm5 = vcmp.eq.s32.totalorder %v2714_v48, %v2627_v42  ;;  %vm4192_vm11 = vcmp.eq.s32.totalorder %v2722_v49, %v2627_v42 }
  0xa2   : > { %2154 = vmatpush1.bf16.msk.msra.mxu1 %vm2153_vm9, %v2423_v43  ;;  %vm2025_vm13 = vmpackc.low %vm4188_vm1, %vm4187_vm12  ;;  %vm4193_vm12 = vcmp.eq.s32.totalorder %v2714_v48, %v2625_v41  ;;  %vm4194_vm1 = vcmp.eq.s32.totalorder %v2722_v49, %v2625_v41 }
  0xa3   : > { %2026 = vmatprep.subr.msk.bf16.mxu0 %vm2025_vm13, %v2423_v43  ;;  %vm2027_vm14 = vmpackc.low %vm4190_vm7, %vm4189_vm2  ;;  %vm4195_vm2 = vcmp.eq.s32.totalorder %v2725_v50, %v2623_v40  ;;  %vm4196_vm7 = vcmp.eq.s32.totalorder %v2733_v51, %v2623_v40 }
  0xa4   : > { %2028 = vmatpush1.bf16.msk.msra.mxu0 %vm2027_vm14, %v2423_v43  ;;  %vm2155_vm9 = vmpackc.low %vm4192_vm11, %vm4191_vm5  ;;  %vm4197_vm5 = vcmp.eq.s32.totalorder %v2725_v50, %v2621_v39  ;;  %vm4198_vm11 = vcmp.eq.s32.totalorder %v2733_v51, %v2621_v39 }
  0xa5   : > { %2156 = vmatprep.subr.msk.bf16.mxu1 %vm2155_vm9, %v2423_v43  ;;  %vm2157_vm13 = vmpackc.low %vm4194_vm1, %vm4193_vm12  ;;  %vm932_vm12 = vcmp.eq.s32.totalorder %v2567_v5, %v2623_v40  ;;  %vm4199_vm1 = vcmp.eq.s32.totalorder %v2725_v50, %v2627_v42 }
  0xa6   : > { %2158 = vmatpush1.bf16.msk.msra.mxu1 %vm2157_vm13, %v2423_v43  ;;  %vm2029_vm14 = vmpackc.low %vm4196_vm7, %vm4195_vm2  ;;  %vm4200_vm13 = vcmp.eq.s32.totalorder %v2733_v51, %v2627_v42  ;;  %vm931_vm7 = vcmp.eq.s32.totalorder %v2567_v5, %v2621_v39 }
  0xa7   : > { %2030 = vmatprep.subr.msk.bf16.mxu0 %vm2029_vm14, %v2423_v43  ;;  %vm2031_vm9 = vmpackc.low %vm4198_vm11, %vm4197_vm5  ;;  %vm4201_vm14 = vcmp.eq.s32.totalorder %v2725_v50, %v2625_v41  ;;  %vm4202_vm5 = vcmp.eq.s32.totalorder %v2733_v51, %v2625_v41 }
  0xa8   : > { %2032 = vmatpush1.bf16.msk.msra.mxu0 %vm2031_vm9, %v2423_v43  ;;  %vm2159_vm2 = vmpackc.low %vm4200_vm13, %vm4199_vm1  ;;  %vm1249_vm9 = vcmp.eq.s32.totalorder %v2567_v5, %v2627_v42  ;;  %vm4203_vm1 = vcmp.eq.s32.totalorder %v2736_v52, %v2623_v40 }
  0xa9   : > { %2160 = vmatprep.subr.msk.bf16.mxu1 %vm2159_vm2, %v2423_v43  ;;  %vm2161_vm11 = vmpackc.low %vm4202_vm5, %vm4201_vm14  ;;  %vm4204_vm2 = vcmp.eq.s32.totalorder %v2736_v52, %v2621_v39  ;;  %vm4205_vm14 = vcmp.eq.s32.totalorder %v2736_v52, %v2627_v42 }
  0xaa   : > { %2162 = vmatpush1.bf16.msk.msra.mxu1 %vm2161_vm11, %v2423_v43  ;;  %vm2033_vm13 = vmpackc.low %vm4203_vm1, %vm932_vm12  ;;  %vm4206_vm12 = vcmp.eq.s32.totalorder %v2736_v52, %v2625_v41  ;;  %vm4207_vm1 = vcmp.eq.s32.totalorder %v2750_v53, %v2623_v40 }
  0xab   : > { %2034 = vmatprep.subr.msk.bf16.mxu0 %vm2033_vm13, %v2423_v43  ;;  %vm2035_vm10 = vmpackc.low %vm4204_vm2, %vm931_vm7  ;;  %vm4208_vm7 = vcmp.eq.s32.totalorder %v2753_v54, %v2623_v40 }
  0xac   : > { %2036 = vmatpush1.bf16.msk.msra.mxu0 %vm2035_vm10, %v2423_v43  ;;  %vm2163_vm5 = vmpackc.low %vm4205_vm14, %vm1249_vm9  ;;  %vm4209_vm10 = vcmp.eq.s32.totalorder %v2750_v53, %v2621_v39  ;;  %vm4210_vm9 = vcmp.eq.s32.totalorder %v2753_v54, %v2621_v39  ;;  %vm4212_vm14 = vcmp.eq.s32.totalorder %v2753_v54, %v2627_v42 }
  0xad   : > { %2164 = vmatprep.subr.msk.bf16.mxu1 %vm2163_vm5, %v2423_v43  ;;  %vm2165_vm11 = vmpackc.low %vm4206_vm12, %vm1248_vm6  ;;  %vm4211_vm6 = vcmp.eq.s32.totalorder %v2750_v53, %v2627_v42  ;;  %vm4213_vm12 = vcmp.eq.s32.totalorder %v2750_v53, %v2625_v41 }
  0xae   : > { %2166 = vmatpush1.bf16.msk.msra.mxu1 %vm2165_vm11, %v2423_v43  ;;  %vm2037_vm13 = vmpackc.low %vm4208_vm7, %vm4207_vm1  ;;  %vm4214_vm11 = vcmp.eq.s32.totalorder %v2753_v54, %v2625_v41  ;;  %vm4215_vm7 = vcmp.eq.s32.totalorder %v2767_v55, %v2623_v40 }
  0xaf   : > { %2038 = vmatprep.subr.msk.bf16.mxu0 %vm2037_vm13, %v2423_v43  ;;  %vm2039_vm2 = vmpackc.low %vm4210_vm9, %vm4209_vm10  ;;  %vm4216_vm13 = vcmp.eq.s32.totalorder %v2770_v56, %v2623_v40  ;;  %vm4217_vm9 = vcmp.eq.s32.totalorder %v2767_v55, %v2621_v39 }
  0xb0   : > { %2040 = vmatpush2.bf16.msk.msra.mxu0 %vm2039_vm2, %v2423_v43  ;;  %vm2167_vm5 = vmpackc.low %vm4212_vm14, %vm4211_vm6  ;;  %vm4218_vm2 = vcmp.eq.s32.totalorder %v2770_v56, %v2621_v39  ;;  %vm4219_vm14 = vcmp.eq.s32.totalorder %v2767_v55, %v2627_v42 }
  0xb1   : > { %2168 = vmatprep.subr.msk.bf16.mxu1 %vm2167_vm5, %v2423_v43  ;;  %vm2169_vm1 = vmpackc.low %vm4214_vm11, %vm4213_vm12  ;;  %vm4220_vm5 = vcmp.eq.s32.totalorder %v2770_v56, %v2627_v42  ;;  %vm4221_vm11 = vcmp.eq.s32.totalorder %v2767_v55, %v2625_v41 }
  0xb2   : > { %2170 = vmatpush2.bf16.msk.msra.mxu1 %vm2169_vm1, %v2423_v43  ;;  %vm2041_vm10 = vmpackc.low %vm4216_vm13, %vm4215_vm7  ;;  %vm4222_vm1 = vcmp.eq.s32.totalorder %v2770_v56, %v2625_v41  ;;  %vm4223_vm13 = vcmp.eq.s32.totalorder %v2784_v57, %v2623_v40 }
  0xb3   : > { %2042 = vmatprep.subr.msk.bf16.mxu0 %vm2041_vm10, %v2423_v43  ;;  %vm2043_vm6 = vmpackc.low %vm4218_vm2, %vm4217_vm9  ;;  %vm4224_vm10 = vcmp.eq.s32.totalorder %v2787_v58, %v2623_v40  ;;  %vm4225_vm2 = vcmp.eq.s32.totalorder %v2784_v57, %v2621_v39 }
  0xb4   : > { %2044 = vmatpush2.bf16.msk.msra.mxu0 %vm2043_vm6, %v2423_v43  ;;  %vm2171_vm12 = vmpackc.low %vm4220_vm5, %vm4219_vm14  ;;  %vm4226_vm6 = vcmp.eq.s32.totalorder %v2787_v58, %v2621_v39  ;;  %vm4227_vm5 = vcmp.eq.s32.totalorder %v2784_v57, %v2627_v42 }
  0xb5   : > { %2172 = vmatprep.subr.msk.bf16.mxu1 %vm2171_vm12, %v2423_v43  ;;  %vm2173_vm7 = vmpackc.low %vm4222_vm1, %vm4221_vm11  ;;  %vm4228_vm12 = vcmp.eq.s32.totalorder %v2787_v58, %v2627_v42 }
  0xb6   : > { %2174 = vmatpush2.bf16.msk.msra.mxu1 %vm2173_vm7, %v2423_v43  ;;  %vm2045_vm9 = vmpackc.low %vm4224_vm10, %vm4223_vm13  ;;  %vm4229_vm7 = vcmp.eq.s32.totalorder %v2801_v59, %v2623_v40  ;;  %vm4230_vm13 = vcmp.eq.s32.totalorder %v2804_v60, %v2623_v40 }
  0xb7   : > { %2046 = vmatprep.subr.msk.bf16.mxu0 %vm2045_vm9, %v2423_v43  ;;  %vm2047_vm14 = vmpackc.low %vm4226_vm6, %vm4225_vm2  ;;  %vm4231_vm9 = vcmp.eq.s32.totalorder %v2804_v60, %v2621_v39 }
  0xb8   : > { %2048 = vmatpush2.bf16.msk.msra.mxu0 %vm2047_vm14, %v2423_v43  ;;  %vm2175_vm11 = vmpackc.low %vm4228_vm12, %vm4227_vm5  ;;  %vm4235_vm5 = vcmp.eq.s32.totalorder %v2821_v62, %v2623_v40 }
  0xb9   : > { %2176 = vmatprep.subr.msk.bf16.mxu1 %vm2175_vm11, %v2423_v43  ;;  %vm2177_vm1 = vmpackc.low %vm1302_vm3, %vm1300_vm8  ;;  %vm4232_vm3 = vcmp.eq.s32.totalorder %v2801_v59, %v2627_v42  ;;  %vm4233_vm8 = vcmp.eq.s32.totalorder %v2804_v60, %v2627_v42  ;;  %vm4236_vm11 = vcmp.eq.s32.totalorder %v2818_v61, %v2621_v39 }
  0xba   : > { %2178 = vmatpush2.bf16.msk.msra.mxu1 %vm2177_vm1, %v2423_v43  ;;  %vm2049_vm10 = vmpackc.low %vm4230_vm13, %vm4229_vm7  ;;  %vm4237_vm1 = vcmp.eq.s32.totalorder %v2821_v62, %v2621_v39 }
  0xbb   : > { %2050 = vmatprep.subr.msk.bf16.mxu0 %vm2049_vm10, %v2423_v43  ;;  %vm2051_vm2 = vmpackc.low %vm4231_vm9, %vm979_vm15  ;;  %vm4234_vm15 = vcmp.eq.s32.totalorder %v2818_v61, %v2623_v40  ;;  %vm4240_vm10 = vcmp.eq.s32.totalorder %v2818_v61, %v2625_v41  ;;  %vm4241_vm9 = vcmp.eq.s32.totalorder %v2821_v62, %v2625_v41 }
  0xbc   : > { %2052 = vmatpush2.bf16.msk.msra.mxu0 %vm2051_vm2, %v2423_v43  ;;  %vm2179_vm6 = vmpackc.low %vm4233_vm8, %vm4232_vm3  ;;  %vm4242_vm3 = vcmp.eq.s32.totalorder %v2835_v63, %v2623_v40  ;;  %vm4243_vm8 = vcmp.eq.s32.totalorder %v2838_v0, %v2623_v40 }
  0xbd   : > { %2180 = vmatprep.subr.msk.bf16.mxu1 %vm2179_vm6, %v2423_v43  ;;  %vm2181_vm14 = vmpackc.low %vm1298_vm0, %vm1296_vm4  ;;  %vm4238_vm0 = vcmp.eq.s32.totalorder %v2818_v61, %v2627_v42  ;;  %vm4239_vm4 = vcmp.eq.s32.totalorder %v2821_v62, %v2627_v42 }
  0xbe   : > { %2182 = vmatpush2.bf16.msk.msra.mxu1 %vm2181_vm14, %v2423_v43  ;;  %vm2053_vm12 = vmpackc.low %vm4235_vm5, %vm4234_vm15  ;;  %vm4244_vm14 = vcmp.eq.s32.totalorder %v2835_v63, %v2621_v39  ;;  %vm4245_vm15 = vcmp.eq.s32.totalorder %v2838_v0, %v2621_v39 }
  0xbf   : > { %2054 = vmatprep.subr.msk.bf16.mxu0 %vm2053_vm12, %v2423_v43  ;;  %vm2055_vm7 = vmpackc.low %vm4237_vm1, %vm4236_vm11  ;;  %vm4246_vm12 = vcmp.eq.s32.totalorder %v2835_v63, %v2627_v42  ;;  %vm4247_vm11 = vcmp.eq.s32.totalorder %v2838_v0, %v2627_v42 }
  0xc0   : > { %2056 = vmatpush2.bf16.msk.msra.mxu0 %vm2055_vm7, %v2423_v43  ;;  %vm2183_vm13 = vmpackc.low %vm4239_vm4, %vm4238_vm0  ;;  %vm4248_vm7 = vcmp.eq.s32.totalorder %v2835_v63, %v2625_v41  ;;  %vm4249_vm0 = vcmp.eq.s32.totalorder %v2838_v0, %v2625_v41 }
  0xc1   : > { %2184 = vmatprep.subr.msk.bf16.mxu1 %vm2183_vm13, %v2423_v43  ;;  %vm2185_vm2 = vmpackc.low %vm4241_vm9, %vm4240_vm10  ;;  %vm4250_vm13 = vcmp.eq.s32.totalorder %v2852_v1, %v2623_v40  ;;  %vm4251_vm10 = vcmp.eq.s32.totalorder %v2855_v2, %v2623_v40 }
  0xc2   : > { %2186 = vmatpush2.bf16.msk.msra.mxu1 %vm2185_vm2, %v2423_v43  ;;  %vm2057_vm6 = vmpackc.low %vm4243_vm8, %vm4242_vm3  ;;  %vm4252_vm2 = vcmp.eq.s32.totalorder %v2852_v1, %v2621_v39  ;;  %vm4253_vm3 = vcmp.eq.s32.totalorder %v2855_v2, %v2621_v39 }
  0xc3   : > { %2058 = vmatprep.subr.msk.bf16.mxu0 %vm2057_vm6, %v2423_v43  ;;  %vm2059_vm5 = vmpackc.low %vm4245_vm15, %vm4244_vm14  ;;  %vm4254_vm6 = vcmp.eq.s32.totalorder %v2852_v1, %v2627_v42  ;;  %vm4255_vm14 = vcmp.eq.s32.totalorder %v2855_v2, %v2627_v42 }
  0xc4   : > { %2060 = vmatpush2.bf16.msk.msra.mxu0 %vm2059_vm5, %v2423_v43  ;;  %vm2187_vm1 = vmpackc.low %vm4247_vm11, %vm4246_vm12  ;;  %vm4256_vm5 = vcmp.eq.s32.totalorder %v2852_v1, %v2625_v41  ;;  %vm4257_vm12 = vcmp.eq.s32.totalorder %v2855_v2, %v2625_v41 }
  0xc5   : > { %2188 = vmatprep.subr.msk.bf16.mxu1 %vm2187_vm1, %v2423_v43  ;;  %vm2189_vm4 = vmpackc.low %vm4249_vm0, %vm4248_vm7  ;;  %vm4258_vm1 = vcmp.eq.s32.totalorder %v2869_v7, %v2623_v40  ;;  %vm4259_vm7 = vcmp.eq.s32.totalorder %v2872_v10, %v2623_v40  ;;  %v581_v40 = vsub.s32 2, %v2567_v5 }
  0xc6   : > { %2190 = vmatpush2.bf16.msk.msra.mxu1 %vm2189_vm4, %v2423_v43  ;;  %vm2061_vm9 = vmpackc.low %vm4251_vm10, %vm4250_vm13  ;;  %vm4260_vm4 = vcmp.eq.s32.totalorder %v2869_v7, %v2621_v39  ;;  %vm4261_vm13 = vcmp.eq.s32.totalorder %v2872_v10, %v2621_v39  ;;  %v912_v39 = vmul.f32 %v910_v35, %v223_v22 }
  0xc7   : > { %2062 = vmatprep.subr.msk.bf16.mxu0 %vm2061_vm9, %v2423_v43  ;;  %vm2063_vm8 = vmpackc.low %vm4253_vm3, %vm4252_vm2  ;;  %vm4262_vm9 = vcmp.eq.s32.totalorder %v2869_v7, %v2627_v42  ;;  %vm4263_vm2 = vcmp.eq.s32.totalorder %v2872_v10, %v2627_v42 }
  0xc8   : > { %2064 = vmatpush2.bf16.msk.msra.mxu0 %vm2063_vm8, %v2423_v43  ;;  %vm2191_vm15 = vmpackc.low %vm4255_vm14, %vm4254_vm6  ;;  %vm4264_vm8 = vcmp.eq.s32.totalorder %v2869_v7, %v2625_v41  ;;  %vm4265_vm6 = vcmp.eq.s32.totalorder %v2872_v10, %v2625_v41  ;;  %v1230_v41 = vmul.f32 %v910_v35, %v222_v19 }
  0xc9   : > { %2192 = vmatprep.subr.msk.bf16.mxu1 %vm2191_vm15, %v2423_v43  ;;  %vm2193_vm11 = vmpackc.low %vm4257_vm12, %vm4256_vm5  ;;  %vm560_vm15 = vcmp.ge.s32.totalorder %v2578_v9, 0  ;;  %vm561_vm5 = vcmp.le.s32.totalorder %v2578_v9, 15  ;;  %vm879_vm12 = vcmp.ge.s32.totalorder %v2584_v11, 0 }
  0xca   : > { %2194 = vmatpush2.bf16.msk.msra.mxu1 %vm2193_vm11, %v2423_v43  ;;  %vm2065_vm0 = vmpackc.low %vm4259_vm7, %vm4258_vm1  ;;  %v563_v21 = vsel %vm560_vm15, 1, %v2424_v20  ;;  %v568_v24 = vsel %vm561_vm5, 1, %v2424_v20  ;;  %vm880_vm11 = vcmp.le.s32.totalorder %v2584_v11, 15  ;;  %v1196_v26 = vsel %vm879_vm12, 1, %v2424_v20 }
  0xcb   : > { %2066 = vmatprep.subr.msk.bf16.mxu0 %vm2065_vm0, %v2423_v43  ;;  %vm2067_vm10 = vmpackc.low %vm4261_vm13, %vm4260_vm4  ;;  %v1811_v23 = vrot.slane %v563_v21, 9  ;;  %v1812_v27 = vrot.slane %v568_v24, 9  ;;  %v2069_v9 = vrot.slane %v1196_v26, 9  ;;  %v1201_v29 = vsel %vm880_vm11, 1, %v2424_v20 }
  0xcc   : > { %2068 = vmatpush2.bf16.msk.msra.mxu0 %vm2067_vm10, %v2423_v43  ;;  %vm2195_vm3 = vmpackc.low %vm4263_vm2, %vm4262_vm9  ;;  %v2070_v11 = vrot.slane %v1201_v29, 9 }
  0xcd   : > { %2196 = vmatprep.subr.msk.bf16.mxu1 %vm2195_vm3, %v2423_v43  ;;  %vm2197_vm14 = vmpackc.low %vm4265_vm6, %vm4264_vm8  ;;  %vm4024_vm7 = vcmp.ne.s32.totalorder %v1811_v23, 0  ;;  %vm571_vm13 = vcmp.ne.s32.totalorder %v1812_v27, 0  ;;  %vm4040_vm9 = vcmp.ne.s32.totalorder %v2069_v9, 0 }
  0xce   : > { %2198 = vmatpush2.bf16.msk.msra.mxu1 %vm2197_vm14, %v2423_v43  ;;  %vm4020_vm1 = vmand %vm560_vm15, %vm561_vm5  ;;  %vm1204_vm6 = vcmp.ne.s32.totalorder %v2070_v11, 0 }
  0xcf   : > { %1188 = vmatmul.mubr.bf16.vlgmr.msra.gmra.mxu0 %v2278_v6  ;;  %vm4028_vm0 = vmand %vm879_vm12, %vm880_vm11 }
  0xd0   : > { %vm567_vm4 = vmand %vm4020_vm1, %vm4024_vm7 }
  0xd1   : > { %1505 = vmatmul.mubr.bf16.vlgmr.msra.gmra.mxu1 %v2278_v6  ;;  %vm882_vm10 = vmand %vm4028_vm0, %vm4024_vm7 }
  0xd2   : > { %vm572_vm2 = vmand %vm567_vm4, %vm571_vm13 }
  0xd3   : > { %vm883_vm3 = vmand %vm882_vm10, %vm571_vm13  ;;  %v573_v37 = vsel %vm572_vm2, %v264_v33, 0.0 }
  0xd4   : > { %vm1200_vm8 = vmand %vm4020_vm1, %vm4040_vm9  ;;  %v884_v38 = vsel %vm883_vm3, %v595_v34, 0.0  ;;  %v578_v42 = vrot.slane %v573_v37, %v577_v36  ;;  %v582_v46 = vrot.slane %v573_v37, %v581_v40 }
  0xd5   : > { %vm1513_vm14 = vmand %vm4028_vm0, %vm4040_vm9  ;;  %v889_v43 = vrot.slane %v884_v38, %v577_v36  ;;  %v893_v45 = vrot.slane %v884_v38, %v581_v40 }
  0xd6   : > { %vm1205_vm15 = vmand %vm1200_vm8, %vm1204_vm6  ;;  %v588_v48 = vrot.slane %v578_v42, %v577_v36  ;;  %v592_v54 = vrot.slane %v582_v46, %v577_v36 }
  0xd7   : > { %vm1514_vm5 = vmand %vm1513_vm14, %vm1204_vm6  ;;  %v1206_v44 = vsel %vm1205_vm15, %v912_v39, 0.0  ;;  %v899_v49 = vrot.slane %v889_v43, %v577_v36  ;;  %v903_v51 = vrot.slane %v893_v45, %v577_v36 }
  0xd8   : > { %v1515_v47 = vsel %vm1514_vm5, %v1230_v41, 0.0  ;;  %v1211_v50 = vrot.slane %v1206_v44, %v577_v36  ;;  %v1215_v52 = vrot.slane %v1206_v44, %v581_v40 }
  0xd9   : > { %v1520_v53 = vrot.slane %v1515_v47, %v577_v36  ;;  %v1524_v5 = vrot.slane %v1515_v47, %v581_v40 }
  0xda   : > { %v1221_v57 = vrot.slane %v1211_v50, %v577_v36  ;;  %v1225_v59 = vrot.slane %v1215_v52, %v577_v36 }
  0xdb   : > { %v1530_v60 = vrot.slane %v1520_v53, %v577_v36  ;;  %v1534_v1 = vrot.slane %v1524_v5, %v577_v36 }
 0x14f   : > { %v553_v8 = vpop.f32.mrf.mxu0 }
 0x150   : > { %v593_v55 = vmul.f32 %v588_v48, %v553_v8 }
 0x151   : > { %v4011_v12 = vpop.f32.mrf.mxu0  ;;  %v872_v13 = vpop.f32.mrf.mxu1 }
 0x152   : > { %v904_v56 = vmul.f32 %v899_v49, %v872_v13  ;;  %v594_v62 = vmul.f32 %v592_v54, %v4011_v12 }
 0x153   : > { %v557_v14 = vpop.f32.mrf.mxu0  ;;  %v874_v15 = vpop.f32.mrf.mxu1 }
 0x154   : > { %v905_v58 = vmul.f32 %v903_v51, %v874_v15  ;;  %v906_v63 = vadd.f32 %v904_v56, %v593_v55 }
 0x155   : > { %v558_v16 = vpop.f32.mrf.mxu0  ;;  %v876_v17 = vpop.f32.mrf.mxu1 }
 0x156   : > { %v907_v10 = vadd.f32 %v905_v58, %v594_v62 }
 0x157   : > { %v877_v18 = vpop.f32.mrf.mxu1 }
 0x18f   : > { %v1189_v61 = vpop.f32.mrf.mxu0 }
 0x190   : > { %v1226_v0 = vmul.f32 %v1221_v57, %v1189_v61 }
 0x191   : > { %v1191_v2 = vpop.f32.mrf.mxu0  ;;  %v1506_v7 = vpop.f32.mrf.mxu1 }
 0x192   : > { %v1228_v6 = vadd.f32 %v1226_v0, %v906_v63  ;;  %v1227_v14 = vmul.f32 %v1225_v59, %v1191_v2  ;;  %v1535_v8 = vmul.f32 %v1530_v60, %v1506_v7 }
 0x193   : > { %v1193_v13 = vpop.f32.mrf.mxu0  ;;  %v1508_v16 = vpop.f32.mrf.mxu1 }
 0x194   : > { %v1229_v15 = vadd.f32 %v1227_v14, %v907_v10  ;;  %v1536_v17 = vmul.f32 %v1534_v1, %v1508_v16  ;;  %v1537_v12 = vadd.f32 %v1535_v8, %v1228_v6 }
 0x195   : > { %v1194_v18 = vpop.f32.mrf.mxu0  ;;  %v1510_v19 = vpop.f32.mrf.mxu1 }
 0x196   : > { %v1538_v20 = vadd.f32 %v1536_v17, %v1229_v15 }
 0x197   : > { %v1511_v21 = vpop.f32.mrf.mxu1 }
 0x198   : > { %v1541_v22 = vcombine.low %v1537_v12, %v1538_v20 }
 0x19a   : > { %1543 = vst [vmem:[%s215_s19] sm:$0xff] %v1541_v22 }
 0x19b   : > { %2348 = shalt.err (!%p2345_p6)
}
 0x19c   : > { %s2349_s6 = scalar_lea.hbm %s1559_s3, 128  ;;  %s2353_s27 = scalar_lea.hbm %s4098_s2, 256 }
 0x19d   : > { %p2350_p7 = scmp.ne.s32.totalorder %s1559_s3, %s2349_s6  ;;  %p2354_p4 = scmp.lt.s32.totalorder %s1559_s3, %s4098_s2 }
 0x19e   : > { %p2355_p10 = scmp.lt.s32.totalorder %s2353_s27, %s2349_s6 }
 0x19f   : > { %p2351_p1 = pnand %p2350_p7, %p2492_p9 }
 0x1a0   : > { %p2356_p8 = por %p2355_p10, %p2354_p4 }
 0x1a1   : > { %p2352_p2 = pneg %p2351_p1 }
 0x1a3   : > { %p2357_p0 = pnand %p2356_p8, %p2352_p2 }
 0x1a5   : > { %2360 = shalt.err (!%p2357_p0)
}
 0x1a6   : > { %2213 = dma.vmem_to_hbm [thread:$0]  (%p2492_p9), %s1562_s20, 128, %s1559_s3, %s1545_s7  }
 0x1a7 PF: > { %s1573_s16 = sand.u32 1, %s2399_s9   ;;  %p4274_p3 = scmp.ge.s32.totalorder %s2419_s14, 2 }
 0x1a8   : > { %s1574_s21 = scalar_lea.sflag [#allocation4], %s1573_s16 }
 0x1a9   : > { %p2223_p13 = pnand %p4274_p3, %p2499_p11 }
 0x1ab   : > { %p2224_p5 = pneg %p2223_p13 }
 0x1ad   : > { %2394 = dma.done.wait (%p2224_p5), %s1574_s21, 128  }
 0x1ae   : > { %2396 = vsyncadd (%p2224_p5), %s1574_s21, 4294967168  ;;  %s21_s14 = sadd.s32 1, %s2419_s14   ;;  %s4275_s9 = smov %s2403_s10 }
 0x1af   : > { %p18_p12 = scmp.ge.s32.totalorder %s21_s14, 4   ;;  %s4276_s10 = smov %s2407_s11 }
 0x1b0   : > { %s4277_s11 = smov %s2497_s23  ;;  %s4278_s12 = smov %s2415_s13 }
 0x1b1   : > { %s4279_s13 = smov %s4281_s17  ;;  %20 = sbr.rel (!%p18_p12) target bundleno = 8 (0x8), region = 86 }
 0x1b6   :  { %1579 = vsyncpa [#allocation3], 1 }
 0x1b7   :  { %1581 = vsyncpa [#allocation3 + $0x1], 1 }
 0x1b8   :  { %1582 = vsyncpa [#allocation6], 1 }
 0x1b9   :  { %1584 = vsyncpa [#allocation6 + $0x1], 1 }
 0x1ba   :  { %1585 = vsyncpa [#allocation4], 1 }
 0x1bb   :  { %1587 = vsyncpa [#allocation4 + $0x1], 1 }

</bundles_post_ra>
